<compile_context>
chip_gen: v7x
topology: tpu7x:2x2x1
jax: 0.10.0
libtpu: 0.0.40
codegen_flags: <defaults>
</compile_context>

<pallas_src>
import functools

import numpy as np
import jax
import jax.numpy as jnp
from jax.experimental import pallas as pl
from jax.experimental.pallas import tpu as pltpu


def _make_kernel(C, H, W, n_stages):
    """Fused (ConvTranspose2d k4 s2 p1 -> BN -> ReLU) x n_stages kernel body."""

    def kernel(*refs):
        f32 = jnp.float32

        def mm(a, b):
            # Mosaic dot lowering supports DEFAULT / HIGHEST; DEFAULT (single
            # bf16 pass) is too lossy for the 1e-3 tolerance, so keep HIGHEST.
            return jnp.dot(a, b, precision=jax.lax.Precision.HIGHEST,
                           preferred_element_type=f32)

        it = iter(refs)
        x_ref = next(it)          # (1, H, C*W)  lane-packed input slab
        rpad0_ref = next(it)      # (H+2, H)     row zero-pad selection
        stages = []
        for s in range(n_stages):
            m_ref = next(it)      # (2, 2, C*w, 2*C*w)  tap matrices [py][a]
            sh_ref = next(it)     # (1, 2*C*w)          BN shift row
            rint_ref = next(it) if s < n_stages - 1 else None  # (2, 2h+2, h)
            stages.append((m_ref, sh_ref, rint_ref))
        out_ref = next(it)        # (1, 2, h_last, 2*C*w_last)

        h, w = H, W
        # Row-padded lane-packed slab: p[r, ci*w + c] = x[ci, r-1, c]
        # (zero rows at r = 0 and r = h+1; the column zero border is folded
        #  into the tap matrices, so no physical column padding is needed).
        p = mm(rpad0_ref[...], x_ref[0])                       # (h+2, C*w)

        for (m_ref, sh_ref, rint_ref) in stages:
            sh = sh_ref[...]                                   # (1, 2*C*w)
            # The three unique row-shifted windows, computed once and shared
            # by all (row-parity, row-tap) pairs.
            rows = [p[r:r + h, :] for r in range(3)]
            z = []
            for py in range(2):
                # z[py][i, co*2w + 2j + px] = y[co, 2i+py, 2j+px]
                acc = (sh + mm(rows[py], m_ref[py, 0])
                          + mm(rows[py + 1], m_ref[py, 1]))
                z.append(jnp.maximum(acc, 0.0))                # folded BN + ReLU

            if rint_ref is not None:
                # Row-interleave the parity slabs + re-pad rows for the next
                # stage: 2 selection matmuls on the otherwise idle MXU.
                p = mm(rint_ref[0], z[0]) + mm(rint_ref[1], z[1])  # (2h+2, 2*C*w)
                h, w = 2 * h, 2 * w
            else:
                # Consume each parity slab immediately: one lane-dense
                # (h, 2*C*w) unmasked store per parity.
                out_ref[0, 0, :, :] = z[0]
                out_ref[0, 1, :, :] = z[1]

    return kernel


def prepare_params(stage_params, H, W):
    """Build all constant kernel inputs host-side (hoisted out of the kernel).

    stage_params: list of (w_pt (Cin,Cout,4,4), bn_scale (C,), bn_shift (C,)).
    Returns (rpad0, m_0, sh_0, rint_0, ..., m_{S-1}, sh_{S-1}) where, for a
    stage with per-channel input width w,
      m[py, a][ci*w + c, co*2w + 2j + px] =
          scale[co] * W_pt[ci, co, 3-py-2a, 3-px-2b]   with b = c - j - px + 1
    (zero if b not in {0,1} or c outside [0,w)), i.e. the ConvTranspose
    k=4/s=2/p=1 sub-pixel taps, BN scale, column-parity interleave and column
    zero border are all folded in; sh is the BN shift broadcast along each co
    lane block; rint[py] row-interleaves/zero-pads parity slabs for the next
    stage.
    """
    C = int(np.asarray(stage_params[0][0]).shape[0])
    n_stages = len(stage_params)
    consts = []

    rpad0 = np.zeros((H + 2, H), np.float32)
    rpad0[np.arange(H) + 1, np.arange(H)] = 1.0
    consts.append(jnp.asarray(rpad0))

    h, w = H, W
    for s, (w_pt, scale, shift) in enumerate(stage_params):
        w_pt = np.asarray(w_pt, np.float32)
        scale = np.asarray(scale, np.float32)
        shift = np.asarray(shift, np.float32)
        # (ky, kx, ci, co) with the BN scale folded into co.
        wf = np.transpose(w_pt * scale[None, :, None, None], (2, 3, 0, 1))

        m = np.zeros((2, 2, C * w, 2 * C * w), np.float32)
        ci_rows = np.arange(C) * w
        co_cols = np.arange(C) * (2 * w)
        for py in range(2):
            for a in range(2):
                ky = 3 - py - 2 * a
                for px in range(2):
                    for b in range(2):
                        kx = 3 - px - 2 * b
                        wmat = wf[ky, kx]                      # (ci, co)
                        for j in range(w):
                            c = j + px + b - 1
                            if 0 <= c < w:
                                m[py, a][np.ix_(ci_rows + c,
                                                co_cols + 2 * j + px)] += wmat
        consts.append(jnp.asarray(m))
        consts.append(jnp.asarray(np.repeat(shift, 2 * w)[None, :]))

        if s < n_stages - 1:
            rint = np.zeros((2, 2 * h + 2, h), np.float32)
            for py in range(2):
                rint[py, 2 * np.arange(h) + py + 1, np.arange(h)] = 1.0
            consts.append(jnp.asarray(rint))
        h, w = 2 * h, 2 * w
    return tuple(consts)


@functools.partial(jax.jit, static_argnames=("n_stages",))
def deconv_forward(x, consts, n_stages):
    """DeConv.forward: fused (ConvTranspose2d k4 s2 p1 -> BN -> ReLU) x n_stages."""
    N, C, H, W = x.shape
    hf = H * 2 ** (n_stages - 1)      # final-stage rows per parity
    wf = W * 2 ** (n_stages - 1)      # final-stage per-channel input width

    # Lane-pack the input: (N, C, H, W) -> (N, H, C*W); 8 KiB, pure plumbing.
    x_packed = x.transpose(0, 2, 1, 3).reshape(N, H, C * W)

    in_specs = [pl.BlockSpec((1, H, C * W), lambda n: (n, 0, 0))]
    for cst in consts:
        in_specs.append(
            pl.BlockSpec(cst.shape, lambda n, _nd=cst.ndim: (0,) * _nd))

    out = pl.pallas_call(
        _make_kernel(C, H, W, n_stages),
        out_shape=jax.ShapeDtypeStruct((N, 2, hf, 2 * C * wf), jnp.float32),
        grid=(N,),
        in_specs=in_specs,
        out_specs=pl.BlockSpec((1, 2, hf, 2 * C * wf), lambda n: (n, 0, 0, 0)),
        compiler_params=pltpu.CompilerParams(
            dimension_semantics=("parallel",)),
    )(x_packed, *consts)

    # out[n, py, i, co*2*wf + c] = y[n, co, 2i+py, c]
    # -> (N, C, 2*hf, 2*wf): tiny (~128 KiB) layout transpose in the wrapper.
    out = out.reshape(N, 2, hf, C, 2 * wf).transpose(0, 3, 2, 1, 4)
    return out.reshape(N, C, 2 * hf, 2 * wf)


def deconv_reference(x, stage_params):
    """Pure-JAX reference (XLA conv) for ConvTranspose2d(k4,s2,p1)+BN+ReLU chain."""
    for (w_pt, scale, shift) in stage_params:
        rhs = jnp.flip(w_pt, axis=(2, 3)).transpose(1, 0, 2, 3)  # OIHW
        y = jax.lax.conv_general_dilated(
            x, rhs,
            window_strides=(1, 1),
            padding=((2, 2), (2, 2)),
            lhs_dilation=(2, 2),
            dimension_numbers=("NCHW", "OIHW", "NCHW"),
            precision=jax.lax.Precision.HIGHEST,
        )
        y = y * scale.reshape(1, -1, 1, 1) + shift.reshape(1, -1, 1, 1)
        x = jnp.maximum(y, 0.0)
    return x


if __name__ == "__main__":
    N, C, H, W = 2, 4, 16, 16      # batch=2, planes=4, trans_size spatial 16
    LAYER_NUM = 2                  # log2(heatmap 64 / trans 16)
    NUM_DECONV_LAYERS = 1
    EPS = 1e-5

    key = jax.random.PRNGKey(0)
    n_blocks = LAYER_NUM * NUM_DECONV_LAYERS
    keys = jax.random.split(key, 1 + 5 * n_blocks)
    x = jax.random.normal(keys[0], (N, C, H, W), dtype=jnp.float32)

    stage_params = []
    idx = 1
    for _ in range(n_blocks):
        kw, kg, kb, km, kv = keys[idx:idx + 5]
        idx += 5
        # ConvTranspose2d weight: (in_channels, out_channels, kH, kW), bias=False
        w_pt = 0.1 * jax.random.normal(kw, (C, C, 4, 4), dtype=jnp.float32)
        gamma = 1.0 + 0.1 * jax.random.normal(kg, (C,), dtype=jnp.float32)
        beta = 0.1 * jax.random.normal(kb, (C,), dtype=jnp.float32)
        r_mean = 0.1 * jax.random.normal(km, (C,), dtype=jnp.float32)
        r_var = jax.random.uniform(kv, (C,), dtype=jnp.float32,
                                   minval=0.5, maxval=1.5)
        scale = gamma / jnp.sqrt(r_var + EPS)
        shift = beta - r_mean * scale
        stage_params.append((w_pt, scale, shift))

    consts = prepare_params(stage_params, H, W)

    out = deconv_forward(x, consts, n_stages=n_blocks)
    out = jax.block_until_ready(out)
    assert out.shape == (N, C, 4 * H, 4 * W), out.shape

    ref = jax.block_until_ready(deconv_reference(x, stage_params))
    if not jnp.allclose(out, ref, atol=1e-3, rtol=1e-3):
        max_err = float(jnp.max(jnp.abs(out - ref)))
        raise AssertionError(f"Pallas kernel mismatch vs reference, max abs err={max_err}")

    print("KERNEL_OK")
</pallas_src>

<mosaic_0001>
module attributes {stable_mosaic.version = 11 : i64} {
  func.func @kernel(%arg0: i32, %arg1: memref<1x16x64xf32, #tpu.memory_space<vmem>>, %arg2: memref<18x16xf32, #tpu.memory_space<vmem>>, %arg3: memref<2x2x64x128xf32, #tpu.memory_space<vmem>>, %arg4: memref<1x128xf32, #tpu.memory_space<vmem>>, %arg5: memref<2x34x16xf32, #tpu.memory_space<vmem>>, %arg6: memref<2x2x128x256xf32, #tpu.memory_space<vmem>>, %arg7: memref<1x256xf32, #tpu.memory_space<vmem>>, %arg8: memref<1x2x32x256xf32, #tpu.memory_space<vmem>>) attributes {dimension_semantics = [#tpu.dimension_semantics<parallel>], iteration_bounds = array<i64: 2>, scalar_prefetch = 0 : i64, scratch_operands = 0 : i64, tpu.core_type = #tpu.core_type<tc>, window_params = [{transform_indices = @transform_0, window_bounds = array<i64: 1, 16, 64>}, {pipeline_mode = #tpu.pipeline_mode<synchronous>, transform_indices = @transform_1, window_bounds = array<i64: 18, 16>}, {pipeline_mode = #tpu.pipeline_mode<synchronous>, transform_indices = @transform_2, window_bounds = array<i64: 2, 2, 64, 128>}, {pipeline_mode = #tpu.pipeline_mode<synchronous>, transform_indices = @transform_3, window_bounds = array<i64: 1, 128>}, {pipeline_mode = #tpu.pipeline_mode<synchronous>, transform_indices = @transform_4, window_bounds = array<i64: 2, 34, 16>}, {pipeline_mode = #tpu.pipeline_mode<synchronous>, transform_indices = @transform_5, window_bounds = array<i64: 2, 2, 128, 256>}, {pipeline_mode = #tpu.pipeline_mode<synchronous>, transform_indices = @transform_6, window_bounds = array<i64: 1, 256>}, {transform_indices = @transform_7, window_bounds = array<i64: 1, 2, 32, 256>}]} {
    %c0 = arith.constant 0 : index
    %c0_0 = arith.constant 0 : index
    %0 = vector.load %arg2[%c0, %c0_0] : memref<18x16xf32, #tpu.memory_space<vmem>>, vector<18x16xf32>
    %c0_1 = arith.constant 0 : index
    %c0_2 = arith.constant 0 : index
    %c0_3 = arith.constant 0 : index
    %1 = vector.load %arg1[%c0_1, %c0_2, %c0_3] : memref<1x16x64xf32, #tpu.memory_space<vmem>>, vector<1x16x64xf32>
    %2 = vector.shape_cast %1 : vector<1x16x64xf32> to vector<16x64xf32>
    %cst = arith.constant dense<0.000000e+00> : vector<18x64xf32>
    %3 = tpu.matmul %0, %2, %cst {dimension_numbers = #tpu.dot_dimension_numbers<[1], [0], [0], [1], [0, 0, 1, 1], [], []>, precision = #tpu.contract_precision<fp32>} : vector<18x16xf32>, vector<16x64xf32>, vector<18x64xf32> -> vector<18x64xf32>
    %c0_4 = arith.constant 0 : index
    %c0_5 = arith.constant 0 : index
    %4 = vector.load %arg4[%c0_4, %c0_5] : memref<1x128xf32, #tpu.memory_space<vmem>>, vector<1x128xf32>
    %5 = vector.extract_strided_slice %3 {offsets = [0, 0], sizes = [16, 64], strides = [1, 1]} : vector<18x64xf32> to vector<16x64xf32>
    %6 = vector.extract_strided_slice %3 {offsets = [1, 0], sizes = [16, 64], strides = [1, 1]} : vector<18x64xf32> to vector<16x64xf32>
    %7 = vector.extract_strided_slice %3 {offsets = [2, 0], sizes = [16, 64], strides = [1, 1]} : vector<18x64xf32> to vector<16x64xf32>
    %c0_6 = arith.constant 0 : index
    %c0_7 = arith.constant 0 : index
    %c0_8 = arith.constant 0 : index
    %c0_9 = arith.constant 0 : index
    %8 = vector.load %arg3[%c0_6, %c0_7, %c0_8, %c0_9] : memref<2x2x64x128xf32, #tpu.memory_space<vmem>>, vector<1x1x64x128xf32>
    %9 = vector.shape_cast %8 : vector<1x1x64x128xf32> to vector<64x128xf32>
    %cst_10 = arith.constant dense<0.000000e+00> : vector<16x128xf32>
    %10 = tpu.matmul %5, %9, %cst_10 {dimension_numbers = #tpu.dot_dimension_numbers<[1], [0], [0], [1], [0, 0, 1, 1], [], []>, precision = #tpu.contract_precision<fp32>} : vector<16x64xf32>, vector<64x128xf32>, vector<16x128xf32> -> vector<16x128xf32>
    %11 = vector.broadcast %4 : vector<1x128xf32> to vector<16x128xf32>
    %12 = arith.addf %11, %10 : vector<16x128xf32>
    %c0_11 = arith.constant 0 : index
    %c1 = arith.constant 1 : index
    %c0_12 = arith.constant 0 : index
    %c0_13 = arith.constant 0 : index
    %13 = vector.load %arg3[%c0_11, %c1, %c0_12, %c0_13] : memref<2x2x64x128xf32, #tpu.memory_space<vmem>>, vector<1x1x64x128xf32>
    %14 = vector.shape_cast %13 : vector<1x1x64x128xf32> to vector<64x128xf32>
    %cst_14 = arith.constant dense<0.000000e+00> : vector<16x128xf32>
    %15 = tpu.matmul %6, %14, %cst_14 {dimension_numbers = #tpu.dot_dimension_numbers<[1], [0], [0], [1], [0, 0, 1, 1], [], []>, precision = #tpu.contract_precision<fp32>} : vector<16x64xf32>, vector<64x128xf32>, vector<16x128xf32> -> vector<16x128xf32>
    %16 = arith.addf %12, %15 : vector<16x128xf32>
    %cst_15 = arith.constant 0.000000e+00 : f32
    %17 = vector.broadcast %cst_15 : f32 to vector<16x128xf32>
    %18 = arith.maximumf %16, %17 : vector<16x128xf32>
    %c1_16 = arith.constant 1 : index
    %c0_17 = arith.constant 0 : index
    %c0_18 = arith.constant 0 : index
    %c0_19 = arith.constant 0 : index
    %19 = vector.load %arg3[%c1_16, %c0_17, %c0_18, %c0_19] : memref<2x2x64x128xf32, #tpu.memory_space<vmem>>, vector<1x1x64x128xf32>
    %20 = vector.shape_cast %19 : vector<1x1x64x128xf32> to vector<64x128xf32>
    %cst_20 = arith.constant dense<0.000000e+00> : vector<16x128xf32>
    %21 = tpu.matmul %6, %20, %cst_20 {dimension_numbers = #tpu.dot_dimension_numbers<[1], [0], [0], [1], [0, 0, 1, 1], [], []>, precision = #tpu.contract_precision<fp32>} : vector<16x64xf32>, vector<64x128xf32>, vector<16x128xf32> -> vector<16x128xf32>
    %22 = vector.broadcast %4 : vector<1x128xf32> to vector<16x128xf32>
    %23 = arith.addf %22, %21 : vector<16x128xf32>
    %c1_21 = arith.constant 1 : index
    %c1_22 = arith.constant 1 : index
    %c0_23 = arith.constant 0 : index
    %c0_24 = arith.constant 0 : index
    %24 = vector.load %arg3[%c1_21, %c1_22, %c0_23, %c0_24] : memref<2x2x64x128xf32, #tpu.memory_space<vmem>>, vector<1x1x64x128xf32>
    %25 = vector.shape_cast %24 : vector<1x1x64x128xf32> to vector<64x128xf32>
    %cst_25 = arith.constant dense<0.000000e+00> : vector<16x128xf32>
    %26 = tpu.matmul %7, %25, %cst_25 {dimension_numbers = #tpu.dot_dimension_numbers<[1], [0], [0], [1], [0, 0, 1, 1], [], []>, precision = #tpu.contract_precision<fp32>} : vector<16x64xf32>, vector<64x128xf32>, vector<16x128xf32> -> vector<16x128xf32>
    %27 = arith.addf %23, %26 : vector<16x128xf32>
    %cst_26 = arith.constant 0.000000e+00 : f32
    %28 = vector.broadcast %cst_26 : f32 to vector<16x128xf32>
    %29 = arith.maximumf %27, %28 : vector<16x128xf32>
    %c0_27 = arith.constant 0 : index
    %c0_28 = arith.constant 0 : index
    %c0_29 = arith.constant 0 : index
    %30 = vector.load %arg5[%c0_27, %c0_28, %c0_29] : memref<2x34x16xf32, #tpu.memory_space<vmem>>, vector<1x34x16xf32>
    %31 = vector.shape_cast %30 : vector<1x34x16xf32> to vector<34x16xf32>
    %cst_30 = arith.constant dense<0.000000e+00> : vector<34x128xf32>
    %32 = tpu.matmul %31, %18, %cst_30 {dimension_numbers = #tpu.dot_dimension_numbers<[1], [0], [0], [1], [0, 0, 1, 1], [], []>, precision = #tpu.contract_precision<fp32>} : vector<34x16xf32>, vector<16x128xf32>, vector<34x128xf32> -> vector<34x128xf32>
    %c1_31 = arith.constant 1 : index
    %c0_32 = arith.constant 0 : index
    %c0_33 = arith.constant 0 : index
    %33 = vector.load %arg5[%c1_31, %c0_32, %c0_33] : memref<2x34x16xf32, #tpu.memory_space<vmem>>, vector<1x34x16xf32>
    %34 = vector.shape_cast %33 : vector<1x34x16xf32> to vector<34x16xf32>
    %cst_34 = arith.constant dense<0.000000e+00> : vector<34x128xf32>
    %35 = tpu.matmul %34, %29, %cst_34 {dimension_numbers = #tpu.dot_dimension_numbers<[1], [0], [0], [1], [0, 0, 1, 1], [], []>, precision = #tpu.contract_precision<fp32>} : vector<34x16xf32>, vector<16x128xf32>, vector<34x128xf32> -> vector<34x128xf32>
    %36 = arith.addf %32, %35 : vector<34x128xf32>
    %c0_35 = arith.constant 0 : index
    %c0_36 = arith.constant 0 : index
    %37 = vector.load %arg7[%c0_35, %c0_36] : memref<1x256xf32, #tpu.memory_space<vmem>>, vector<1x256xf32>
    %38 = vector.extract_strided_slice %36 {offsets = [0, 0], sizes = [32, 128], strides = [1, 1]} : vector<34x128xf32> to vector<32x128xf32>
    %39 = vector.extract_strided_slice %36 {offsets = [1, 0], sizes = [32, 128], strides = [1, 1]} : vector<34x128xf32> to vector<32x128xf32>
    %40 = vector.extract_strided_slice %36 {offsets = [2, 0], sizes = [32, 128], strides = [1, 1]} : vector<34x128xf32> to vector<32x128xf32>
    %c0_37 = arith.constant 0 : index
    %c0_38 = arith.constant 0 : index
    %c0_39 = arith.constant 0 : index
    %c0_40 = arith.constant 0 : index
    %41 = vector.load %arg6[%c0_37, %c0_38, %c0_39, %c0_40] : memref<2x2x128x256xf32, #tpu.memory_space<vmem>>, vector<1x1x128x256xf32>
    %42 = vector.shape_cast %41 : vector<1x1x128x256xf32> to vector<128x256xf32>
    %cst_41 = arith.constant dense<0.000000e+00> : vector<32x256xf32>
    %43 = tpu.matmul %38, %42, %cst_41 {dimension_numbers = #tpu.dot_dimension_numbers<[1], [0], [0], [1], [0, 0, 1, 1], [], []>, precision = #tpu.contract_precision<fp32>} : vector<32x128xf32>, vector<128x256xf32>, vector<32x256xf32> -> vector<32x256xf32>
    %44 = vector.broadcast %37 : vector<1x256xf32> to vector<32x256xf32>
    %45 = arith.addf %44, %43 : vector<32x256xf32>
    %c0_42 = arith.constant 0 : index
    %c1_43 = arith.constant 1 : index
    %c0_44 = arith.constant 0 : index
    %c0_45 = arith.constant 0 : index
    %46 = vector.load %arg6[%c0_42, %c1_43, %c0_44, %c0_45] : memref<2x2x128x256xf32, #tpu.memory_space<vmem>>, vector<1x1x128x256xf32>
    %47 = vector.shape_cast %46 : vector<1x1x128x256xf32> to vector<128x256xf32>
    %cst_46 = arith.constant dense<0.000000e+00> : vector<32x256xf32>
    %48 = tpu.matmul %39, %47, %cst_46 {dimension_numbers = #tpu.dot_dimension_numbers<[1], [0], [0], [1], [0, 0, 1, 1], [], []>, precision = #tpu.contract_precision<fp32>} : vector<32x128xf32>, vector<128x256xf32>, vector<32x256xf32> -> vector<32x256xf32>
    %49 = arith.addf %45, %48 : vector<32x256xf32>
    %cst_47 = arith.constant 0.000000e+00 : f32
    %50 = vector.broadcast %cst_47 : f32 to vector<32x256xf32>
    %51 = arith.maximumf %49, %50 : vector<32x256xf32>
    %c1_48 = arith.constant 1 : index
    %c0_49 = arith.constant 0 : index
    %c0_50 = arith.constant 0 : index
    %c0_51 = arith.constant 0 : index
    %52 = vector.load %arg6[%c1_48, %c0_49, %c0_50, %c0_51] : memref<2x2x128x256xf32, #tpu.memory_space<vmem>>, vector<1x1x128x256xf32>
    %53 = vector.shape_cast %52 : vector<1x1x128x256xf32> to vector<128x256xf32>
    %cst_52 = arith.constant dense<0.000000e+00> : vector<32x256xf32>
    %54 = tpu.matmul %39, %53, %cst_52 {dimension_numbers = #tpu.dot_dimension_numbers<[1], [0], [0], [1], [0, 0, 1, 1], [], []>, precision = #tpu.contract_precision<fp32>} : vector<32x128xf32>, vector<128x256xf32>, vector<32x256xf32> -> vector<32x256xf32>
    %55 = vector.broadcast %37 : vector<1x256xf32> to vector<32x256xf32>
    %56 = arith.addf %55, %54 : vector<32x256xf32>
    %c1_53 = arith.constant 1 : index
    %c1_54 = arith.constant 1 : index
    %c0_55 = arith.constant 0 : index
    %c0_56 = arith.constant 0 : index
    %57 = vector.load %arg6[%c1_53, %c1_54, %c0_55, %c0_56] : memref<2x2x128x256xf32, #tpu.memory_space<vmem>>, vector<1x1x128x256xf32>
    %58 = vector.shape_cast %57 : vector<1x1x128x256xf32> to vector<128x256xf32>
    %cst_57 = arith.constant dense<0.000000e+00> : vector<32x256xf32>
    %59 = tpu.matmul %40, %58, %cst_57 {dimension_numbers = #tpu.dot_dimension_numbers<[1], [0], [0], [1], [0, 0, 1, 1], [], []>, precision = #tpu.contract_precision<fp32>} : vector<32x128xf32>, vector<128x256xf32>, vector<32x256xf32> -> vector<32x256xf32>
    %60 = arith.addf %56, %59 : vector<32x256xf32>
    %cst_58 = arith.constant 0.000000e+00 : f32
    %61 = vector.broadcast %cst_58 : f32 to vector<32x256xf32>
    %62 = arith.maximumf %60, %61 : vector<32x256xf32>
    %c0_59 = arith.constant 0 : index
    %c0_60 = arith.constant 0 : index
    %c0_61 = arith.constant 0 : index
    %c0_62 = arith.constant 0 : index
    %63 = vector.load %arg8[%c0_59, %c0_60, %c0_61, %c0_62] : memref<1x2x32x256xf32, #tpu.memory_space<vmem>>, vector<1x1x32x256xf32>
    %64 = vector.shape_cast %63 : vector<1x1x32x256xf32> to vector<32x256xf32>
    %65 = vector.shape_cast %51 : vector<32x256xf32> to vector<1x1x32x256xf32>
    tpu.vector_store %arg8[%c0_59, %c0_60, %c0_61, %c0_62], %65 {strides = array<i32>} : memref<1x2x32x256xf32, #tpu.memory_space<vmem>>, vector<1x1x32x256xf32>,
    %c0_63 = arith.constant 0 : index
    %c1_64 = arith.constant 1 : index
    %c0_65 = arith.constant 0 : index
    %c0_66 = arith.constant 0 : index
    %66 = vector.load %arg8[%c0_63, %c1_64, %c0_65, %c0_66] : memref<1x2x32x256xf32, #tpu.memory_space<vmem>>, vector<1x1x32x256xf32>
    %67 = vector.shape_cast %66 : vector<1x1x32x256xf32> to vector<32x256xf32>
    %68 = vector.shape_cast %62 : vector<32x256xf32> to vector<1x1x32x256xf32>
    tpu.vector_store %arg8[%c0_63, %c1_64, %c0_65, %c0_66], %68 {strides = array<i32>} : memref<1x2x32x256xf32, #tpu.memory_space<vmem>>, vector<1x1x32x256xf32>,
    return
  }
  func.func @transform_0(%arg0: i32) -> (i32, i32, i32) {
    %c0_i32 = arith.constant 0 : i32
    %c0_i32_0 = arith.constant 0 : i32
    %c0_i32_1 = arith.constant 0 : i32
    return %arg0, %c0_i32, %c0_i32_0 : i32, i32, i32
  }
  func.func @transform_1(%arg0: i32) -> (i32, i32) {
    %c0_i32 = arith.constant 0 : i32
    %c0_i32_0 = arith.constant 0 : i32
    %c0_i32_1 = arith.constant 0 : i32
    return %c0_i32, %c0_i32_0 : i32, i32
  }
  func.func @transform_2(%arg0: i32) -> (i32, i32, i32, i32) {
    %c0_i32 = arith.constant 0 : i32
    %c0_i32_0 = arith.constant 0 : i32
    %c0_i32_1 = arith.constant 0 : i32
    %c0_i32_2 = arith.constant 0 : i32
    %c0_i32_3 = arith.constant 0 : i32
    return %c0_i32, %c0_i32_0, %c0_i32_1, %c0_i32_2 : i32, i32, i32, i32
  }
  func.func @transform_3(%arg0: i32) -> (i32, i32) {
    %c0_i32 = arith.constant 0 : i32
    %c0_i32_0 = arith.constant 0 : i32
    %c0_i32_1 = arith.constant 0 : i32
    return %c0_i32, %c0_i32_0 : i32, i32
  }
  func.func @transform_4(%arg0: i32) -> (i32, i32, i32) {
    %c0_i32 = arith.constant 0 : i32
    %c0_i32_0 = arith.constant 0 : i32
    %c0_i32_1 = arith.constant 0 : i32
    %c0_i32_2 = arith.constant 0 : i32
    return %c0_i32, %c0_i32_0, %c0_i32_1 : i32, i32, i32
  }
  func.func @transform_5(%arg0: i32) -> (i32, i32, i32, i32) {
    %c0_i32 = arith.constant 0 : i32
    %c0_i32_0 = arith.constant 0 : i32
    %c0_i32_1 = arith.constant 0 : i32
    %c0_i32_2 = arith.constant 0 : i32
    %c0_i32_3 = arith.constant 0 : i32
    return %c0_i32, %c0_i32_0, %c0_i32_1, %c0_i32_2 : i32, i32, i32, i32
  }
  func.func @transform_6(%arg0: i32) -> (i32, i32) {
    %c0_i32 = arith.constant 0 : i32
    %c0_i32_0 = arith.constant 0 : i32
    %c0_i32_1 = arith.constant 0 : i32
    return %c0_i32, %c0_i32_0 : i32, i32
  }
  func.func @transform_7(%arg0: i32) -> (i32, i32, i32, i32) {
    %c0_i32 = arith.constant 0 : i32
    %c0_i32_0 = arith.constant 0 : i32
    %c0_i32_1 = arith.constant 0 : i32
    %c0_i32_2 = arith.constant 0 : i32
    return %arg0, %c0_i32, %c0_i32_0, %c0_i32_1 : i32, i32, i32, i32
  }
}

</mosaic_0001>

<bundles_post_ra>
// kernel: deconv_forward.1
= control target key start
LH: loop header
LB: loop body
LE: loop exit
PB: predicated region body
PF: predicated region fallthrough
CT: control target
= control target key end

     0   :  { %12 = vsyncpa [#allocation3], 0  ;;  %s11733_s24 = smov 0   ;;  %s15197_s0 = inlined_call_operand.vmem [shape: f32[2,16,64], index: 0, kind: input, shape index: {}]   ;;  %s15198_s1 = inlined_call_operand.vmem [shape: f32[18,16], index: 1, kind: input, shape index: {}]   ;;  %s15199_s2 = inlined_call_operand.vmem [shape: f32[2,2,64,128], index: 2, kind: input, shape index: {}]   ;;  %s15200_s3 = inlined_call_operand.vmem [shape: f32[1,128], index: 3, kind: input, shape index: {}]   ;;  %s15201_s4 = inlined_call_operand.vmem [shape: f32[2,34,16], index: 4, kind: input, shape index: {}]   ;;  %s15202_s5 = inlined_call_operand.hbm [shape: f32[2,2,128,256], index: 5, kind: input, shape index: {}]   ;;  %s15203_s6 = inlined_call_operand.vmem [shape: f32[1,256], index: 6, kind: input, shape index: {}]   ;;  %s15204_s7 = inlined_call_operand.vmem [shape: f32[2,2,32,256], index: 7, kind: output, shape index: {}]  }
   0x1 LB: > { %s11739_s25 = sadd.s32 4294967295, %s11685_s24   ;;  %p8875_p0 = scmp.ge.s32.totalorder %s11685_s24, 1  ;;  %s11685_s24 = sphi %s11733_s24, %s18_s24  }
   0x2   : > { %p201_p1 = scmp.lt.s32.totalorder %s11685_s24, 3  ;;  %s11687_s26 = smov [#allocation2]  }
   0x3   : > { %s225_s27 = sshll.u32 %s11687_s26, 4  ;;  %p15205_p3 = scmp.eq.s32.totalorder %s11739_s25, 0  ;;  %s226_s27 = int_to_ptr.vmem [resolvable:$true] %s225_s27 }
   0x4   : > { %p11743_p2 = pnand %p8875_p0, %p201_p1  ;;  %s11647_s9 = scalar_lea.hbm %s15202_s5, 16384 }
   0x5   : > { %p11648_p6 = scmp.ne.s32.totalorder %s15202_s5, %s11647_s9  ;;  %p11654_p10 = scmp.lt.u32.totalorder %s11647_s9, %s15202_s5 }
   0x6   : > { %s15659_s28 = scalar_select %p11743_p2, 1, 0 }
   0x7   : > { %p11627_p4 = pneg %p11743_p2 }
   0x9   : > { %p11752_p5 = pnand %p15205_p3, %p11627_p4 }
   0xb   : > { %p11649_p7 = pneg %p11752_p5 }
   0xd   : > { %p11650_p8 = pnand %p11649_p7, %p11648_p6 }
   0xf   : > { %p11651_p9 = pneg %p11650_p8 }
  0x11   : > { %p11656_p11 = pnand %p11654_p10, %p11651_p9 }
  0x13   : > { %11659 = shalt.err (!%p11656_p11)
}
  0x14   : > { %s11660_s14 = scalar_lea.vmem %s226_s27, 16384  ;;  %p11668_p1 = scmp.lt.s32.totalorder %s226_s27, %s226_s27 }
  0x15   : > { %p11661_p12 = scmp.ne.s32.totalorder %s226_s27, %s11660_s14  ;;  %p11669_p4 = scmp.lt.s32.totalorder %s11660_s14, %s11660_s14 }
  0x17   : > { %p11663_p13 = pnand %p11661_p12, %p11649_p7  ;;  %p11670_p3 = por %p11669_p4, %p11668_p1 }
  0x19   : > { %p11664_p0 = pneg %p11663_p13 }
  0x1b   : > { %p11671_p2 = pnand %p11670_p3, %p11664_p0 }
  0x1d   : > { %11674 = shalt.err (!%p11671_p2)
}
  0x1e   : > { %s11688_s15 = smov 256   ;;  %s11689_s16 = smov 16  }
  0x1f   : > { %11630 = dma.hbm_to_vmem [thread:$0]  (!%p11752_p5), %s15202_s5, 16384, %s226_s27, [#allocation3], %s11688_s15, %s11688_s15, %s11689_s16  }
  0x20   : > { %p15661_p6 = scmp.ne.s32.totalorder %s15659_s28, 0 }
  0x22   : > { %252 = sbr.rel (%p15661_p6) target bundleno = 1839 (0x72f), region = 48 }
  0x29   : > { %p15662_p8 = scmp.eq.s32.totalorder %s11739_s25, 0 }
  0x2b   : > { %11680 = dma.done.wait (%p15662_p8), [#allocation3], 16384   ;;  %p15663_p7 = pmov %p15662_p8 }
  0x2c   : > { %p284_p2 = scmp.lt.s32.totalorder %s11739_s25, 1  ;;  %v15209_v0 = vmov 0.0|0.0   ;;  %vm11691_vm0 = vmmov 0   ;;  %v15207_v1 = vmov 0.0   ;;  %vm299_vm1 = vcmask 130048   ;;  %v294_v4 = vld [vmem:[%s15198_s1] sm:$0xff] }
  0x2d   : > { %11682 = vsyncadd (%p15663_p7), [#allocation3], 4294950912  ;;  %10042 = vmatprep.subr.bf16.mxu0 %v15209_v0  ;;  %9284 = vmatprep.mubr.msk.f32.mxu0 %vm11691_vm0, %v15207_v1  ;;  %v301_v7 = vsel %vm299_vm1, %v294_v4, 0  ;;  %v295_v8 = vld [vmem:[%s15198_s1 + $0x8] sm:$0xff]  ;;  %v296_v9 = vld [vmem:[%s15198_s1 + $0x10] sm:$0x3] }
  0x2e   : > { %s16456_s25 = smov (!%p284_p2, %s11739_s25), 1  ;;  %v11799_v10 = vand.u32 4294901760, %v301_v7  ;;  %v304_v11 = vsel %vm299_vm1, %v295_v8, 0  ;;  %v307_v12 = vsel %vm299_vm1, %v296_v9, 0  ;;  %v11806_v13 = vld [vmem:[%s15199_s2] sm:$0xff]  ;;  %v11811_v14 = vld [vmem:[%s15199_s2 + $0x8] sm:$0xff] }
  0x2f   : > { %s8924_s19 = sshll.u32 %s16456_s25, 4  ;;  %v11815_v18 = vand.u32 4294901760, %v304_v11  ;;  %v11818_v20 = vand.u32 4294901760, %v307_v12  ;;  %v871_v21 = vand.u32 4294901760, %v11806_v13  ;;  %v874_v22 = vand.u32 4294901760, %v11811_v14  ;;  %v857_v44 = vld [vmem:[%s15199_s2 + $0x10] sm:$0xff] }
  0x30   : > { %s288_s22 = scalar_lea.vmem %s15197_s0, %s8924_s19  ;;  %v377_v19 = vsub.f32 %v301_v7, %v11799_v10  ;;  %v858_v45 = vld [vmem:[%s15199_s2 + $0x18] sm:$0xff]  ;;  %v877_v46 = vand.u32 4294901760, %v857_v44  ;;  %v8893_v49 = vld [vmem:[%s15199_s2 + $0x80] sm:$0xff]  ;;  %v8894_v50 = vld [vmem:[%s15199_s2 + $0x88] sm:$0xff]  ;;  %vm863_vm2 = vcmask 523264   ;;  %vm1468_vm3 = vcmask 1046528  }
  0x31   : > { %v297_v2 = vld [vmem:[%s288_s22] sm:$0xff]  ;;  %v298_v3 = vld [vmem:[%s288_s22 + $0x8] sm:$0xff]  ;;  %v387_v25 = vsub.f32 %v304_v11, %v11815_v18  ;;  %v397_v27 = vsub.f32 %v307_v12, %v11818_v20  ;;  %v11830_v28 = vpack.c.bf16 %v874_v22, %v871_v21  ;;  %v880_v47 = vand.u32 4294901760, %v858_v45  ;;  %v8895_v59 = vld [vmem:[%s15199_s2 + $0x90] sm:$0xff]  ;;  %s8925_s12 = sshll.u32 %s16456_s25, 7 }
  0x32   : > { %v310_v5 = vand.u32 4294901760, %v297_v2  ;;  %v313_v6 = vand.u32 4294901760, %v298_v3  ;;  %v378_v26 = vand.u32 4294901760, %v377_v19  ;;  %v2072_v51 = vand.u32 4294901760, %v8893_v49  ;;  %v859_v53 = vld [vmem:[%s15199_s2 + $0x20] sm:$0xff]  ;;  %v860_v54 = vld [vmem:[%s15199_s2 + $0x28] sm:$0xff]  ;;  %s15157_s15 = scalar_lea.vmem %s15204_s7, %s8925_s12 }
  0x33   : > { %v388_v31 = vand.u32 4294901760, %v387_v25  ;;  %v398_v33 = vand.u32 4294901760, %v397_v27  ;;  %10061 = vmatprep.subr.bf16.mxu1 %v11830_v28  ;;  %v11889_v48 = vpack.c.bf16 %v880_v47, %v877_v46  ;;  %v2075_v52 = vand.u32 4294901760, %v8894_v50  ;;  %v8896_v60 = vld [vmem:[%s15199_s2 + $0x98] sm:$0xff]  ;;  %v8897_v11 = vld [vmem:[%s15199_s2 + $0xa0] sm:$0xff]  ;;  %v8898_v12 = vld [vmem:[%s15199_s2 + $0xa8] sm:$0xff] }
  0x34   : > { %v11813_v15 = vpack.c.bf16 %v313_v6, %v310_v5  ;;  %v408_v16 = vsub.f32 %v297_v2, %v310_v5  ;;  %v415_v17 = vsub.f32 %v298_v3, %v313_v6  ;;  %v379_v32 = vsub.f32 %v377_v19, %v378_v26  ;;  %10063 = vmatpush3.bf16.msra.mxu1 %v11830_v28  ;;  %v861_v3 = vld [vmem:[%s15199_s2 + $0x30] sm:$0xff]  ;;  %v11932_v4 = vld [vmem:[%s15199_s2 + $0x38] sm:$0xff] }
  0x35   : > { %v389_v36 = vsub.f32 %v387_v25, %v388_v31  ;;  %v399_v40 = vsub.f32 %v397_v27, %v398_v33  ;;  %10065 = vmatprep.subr.bf16.mxu1 %v11889_v48  ;;  %v883_v55 = vand.u32 4294901760, %v859_v53  ;;  %v886_v56 = vand.u32 4294901760, %v860_v54 }
  0x36   : > { %10044 = vmatpush3.bf16.msra.mxu0 %v11813_v15  ;;  %v409_v23 = vand.u32 4294901760, %v408_v16  ;;  %v416_v24 = vand.u32 4294901760, %v415_v17  ;;  %v380_v37 = vand.u32 4294901760, %v379_v32  ;;  %v10049_v42 = vpack.c.bf16 %v415_v17, %v408_v16 }
  0x37   : > { %10045 = vmatprep.subr.bf16.mxu0 %v15209_v0  ;;  %v390_v39 = vand.u32 4294901760, %v389_v36  ;;  %v400_v41 = vand.u32 4294901760, %v399_v40  ;;  %v11905_v57 = vpack.c.bf16 %v2075_v52, %v2072_v51  ;;  %v11907_v58 = vpack.c.bf16 %v886_v56, %v883_v55 }
  0x38   : > { %v410_v29 = vsub.f32 %v408_v16, %v409_v23  ;;  %v417_v30 = vsub.f32 %v415_v17, %v416_v24  ;;  %v10055_v43 = vpack.c.bf16 %v416_v24, %v409_v23  ;;  %10067 = vmatpush3.bf16.msra.mxu1 %v11889_v48  ;;  %v11918_v61 = vsub.f32 %v11806_v13, %v871_v21 }
  0x39   : > { %9285 = vmatmul.mubr.f32.vlgmr.msra.gmra.mrb[0].mxu0 %v380_v37  ;;  %v11923_v62 = vsub.f32 %v11811_v14, %v874_v22  ;;  %v2078_v63 = vand.u32 4294901760, %v8895_v59  ;;  %v2081_v2 = vand.u32 4294901760, %v8896_v60  ;;  %10069 = vmatprep.subr.bf16.mxu1 %v11907_v58  ;;  %v889_v5 = vand.u32 4294901760, %v861_v3 }
  0x3a   : > { %v411_v34 = vand.u32 4294901760, %v410_v29  ;;  %v418_v35 = vand.u32 4294901760, %v417_v30  ;;  %9287 = vmatprep.mubr.msk.f32.mxu0 %vm11691_vm0, %v15207_v1  ;;  %v892_v6 = vand.u32 4294901760, %v11932_v4  ;;  %v966_v7 = vand.u32 4294901760, %v11918_v61  ;;  %v8900_v29 = vld [vmem:[%s15199_s2 + $0xb8] sm:$0xff] }
  0x3b   : > { %v973_v8 = vand.u32 4294901760, %v11923_v62  ;;  %v11940_v9 = vpack.c.bf16 %v2081_v2, %v2078_v63  ;;  %v2087_v16 = vand.u32 4294901760, %v8898_v12  ;;  %v11957_v17 = vsub.f32 %v857_v44, %v877_v46 }
  0x3c   : > { %v10046_v38 = vpack.c.bf16 %v418_v35, %v411_v34  ;;  %10071 = vmatpush3.bf16.msra.mxu1 %v11907_v58  ;;  %v967_v13 = vsub.f32 %v11918_v61, %v966_v7  ;;  %v11987_v32 = vsub.f32 %v859_v53, %v883_v55  ;;  %v2093_v35 = vand.u32 4294901760, %v8900_v29 }
  0x3d   : > { %9288 = vmatmul.mubr.f32.gmra.mrb[2].mxu0 %v390_v39  ;;  %v974_v14 = vsub.f32 %v11923_v62, %v973_v8  ;;  %v980_v22 = vand.u32 4294901760, %v11957_v17  ;;  %vm2662_vm4 = vcmask 1045504  }
  0x3e   : > { %10047 = vmatpush3.bf16.msra.mxu0 %v10046_v38  ;;  %9290 = vmatprep.mubr.msk.f32.mxu0 %vm11691_vm0, %v15207_v1  ;;  %v994_v40 = vand.u32 4294901760, %v11987_v32 }
  0x3f   : > { %10048 = vmatprep.subr.bf16.mxu0 %v15209_v0  ;;  %v981_v30 = vsub.f32 %v11957_v17, %v980_v22 }
  0x41   : > { %9291 = vmatmul.mubr.f32.gmra.mrb[4].mxu0 %v400_v41  ;;  %v982_v38 = vand.u32 4294901760, %v981_v30 }
  0x42   : > { %9297 = vmatprep.mubr.msk.f32.mxu0 %vm11691_vm0, %v15207_v1 }
  0x45   : > { %9298 = vmatmul.mubr.f32.vlgmr.msra.gmra.mrb[0].mxu0 %v11799_v10 }
  0x46   : > { %10050 = vmatpush3.bf16.msra.mxu0 %v10049_v42  ;;  %9300 = vmatprep.mubr.msk.f32.mxu0 %vm11691_vm0, %v15207_v1 }
  0x47   : > { %10051 = vmatprep.subr.bf16.mxu0 %v15209_v0 }
  0x49   : > { %9301 = vmatmul.mubr.f32.gmra.mrb[2].mxu0 %v11815_v18 }
  0x4a   : > { %9303 = vmatprep.mubr.msk.f32.mxu0 %vm11691_vm0, %v15207_v1 }
  0x4d   : > { %9304 = vmatmul.mubr.f32.gmra.mrb[4].mxu0 %v11818_v20 }
  0x4e   : > { %9310 = vmatprep.mubr.msk.f32.mxu0 %vm11691_vm0, %v15207_v1 }
  0x51   : > { %9311 = vmatmul.mubr.f32.vlgmr.msra.gmra.mrb[0].mxu0 %v377_v19  ;;  %v968_v19 = vand.u32 4294901760, %v967_v13 }
  0x52   : > { %10053 = vmatpush3.bf16.msra.mxu0 %v11813_v15  ;;  %9313 = vmatprep.mubr.msk.f32.mxu0 %vm11691_vm0, %v15207_v1 }
  0x53   : > { %10054 = vmatprep.subr.bf16.mxu0 %v15209_v0 }
  0x55   : > { %9314 = vmatmul.mubr.f32.gmra.mrb[2].mxu0 %v387_v25  ;;  %v11970_v25 = vsub.f32 %v8893_v49, %v2072_v51 }
  0x56   : > { %9316 = vmatprep.mubr.msk.f32.mxu0 %vm11691_vm0, %v15207_v1 }
  0x57   : > { %v2167_v36 = vand.u32 4294901760, %v11970_v25 }
  0x59   : > { %9317 = vmatmul.mubr.f32.gmra.mrb[4].mxu0 %v397_v27  ;;  %v8899_v27 = vld [vmem:[%s15199_s2 + $0xb0] sm:$0xff] }
  0x5a   : > { %9323 = vmatprep.mubr.msk.f32.mxu0 %vm11691_vm0, %v15207_v1  ;;  %v2090_v34 = vand.u32 4294901760, %v8899_v27 }
  0x5c   : > { %v11997_v42 = vpack.c.bf16 %v2093_v35, %v2090_v34 }
  0x5d   : > { %9324 = vmatmul.mubr.f32.vlgmr.msra.gmra.mrb[0].mxu0 %v378_v26  ;;  %v11972_v26 = vsub.f32 %v8894_v50, %v2075_v52  ;;  %v2187_v50 = vsub.f32 %v8896_v60, %v2081_v2 }
  0x5e   : > { %10056 = vmatpush3.bf16.msra.mxu0 %v10055_v43  ;;  %9326 = vmatprep.mubr.msk.f32.mxu0 %vm11691_vm0, %v15207_v1  ;;  %v2168_v43 = vsub.f32 %v11970_v25, %v2167_v36 }
  0x5f   : > { %10057 = vmatprep.subr.bf16.mxu0 %v15209_v0  ;;  %v2174_v37 = vand.u32 4294901760, %v11972_v26 }
  0x60   : > { %v2169_v51 = vand.u32 4294901760, %v2168_v43 }
  0x61   : > { %9327 = vmatmul.mubr.f32.gmra.mrb[2].mxu0 %v388_v31  ;;  %v2175_v44 = vsub.f32 %v11972_v26, %v2174_v37 }
  0x62   : > { %9329 = vmatprep.mubr.msk.f32.mxu0 %vm11691_vm0, %v15207_v1 }
  0x63   : > { %v2176_v52 = vand.u32 4294901760, %v2175_v44 }
  0x65   : > { %9330 = vmatmul.mubr.f32.gmra.mrb[4].mxu0 %v398_v33  ;;  %v11989_v33 = vsub.f32 %v860_v54, %v886_v56  ;;  %v1007_v54 = vsub.f32 %v861_v3, %v889_v5  ;;  %v12016_v13 = vpack.c.bf16 %v2176_v52, %v2169_v51 }
  0x66   : > { %9336 = vmatprep.mubr.msk.f32.mxu0 %vm11691_vm0, %v15207_v1 }
  0x67   : > { %v1001_v41 = vand.u32 4294901760, %v11989_v33 }
  0x69   : > { %9337 = vmatmul.mubr.f32.vlgmr.msra.gmra.mrb[0].mxu0 %v11799_v10  ;;  %v1002_v49 = vsub.f32 %v11989_v33, %v1001_v41 }
  0x6a   : > { %10059 = vmatpush3.bf16.msra.mxu0 %v11813_v15  ;;  %9339 = vmatprep.mubr.msk.f32.mxu0 %vm11691_vm0, %v15207_v1  ;;  %v2084_v15 = vand.u32 4294901760, %v8897_v11 }
  0x6b   : > { %10253 = vmatprep.subr.bf16.mxu0 %v11905_v57  ;;  %v1003_v56 = vand.u32 4294901760, %v1002_v49  ;;  %v2215_v49 = vsub.f32 %v8900_v29, %v2093_v35 }
  0x6c   : > { %v11964_v21 = vpack.c.bf16 %v2087_v16, %v2084_v15 }
  0x6d   : > { %9340 = vmatmul.mubr.f32.gmra.mrb[2].mxu0 %v11815_v18 }
  0x6e   : > { %9342 = vmatprep.mubr.msk.f32.mxu0 %vm11691_vm0, %v15207_v1 }
  0x71   : > { %9343 = vmatmul.mubr.f32.gmra.mrb[4].mxu0 %v11818_v20 }
  0x72   : > { %9349 = vmatprep.mubr.msk.f32.mxu0 %vm11691_vm0, %v15207_v1 }
  0x75   : > { %9350 = vmatmul.mubr.f32.vlgmr.msra.gmra.mrb[0].mxu0 %v11799_v10  ;;  %v11942_v10 = vpack.c.bf16 %v892_v6, %v889_v5 }
  0x76   : > { %9352 = vmatprep.mubr.msk.f32.mxu0 %vm11691_vm0, %v15207_v1  ;;  %10255 = vmatpush3.bf16.msra.mxu0 %v11905_v57 }
  0x77   : > { %10257 = vmatprep.subr.bf16.mxu0 %v11940_v9  ;;  %10073 = vmatprep.subr.bf16.mxu1 %v11942_v10 }
  0x78   : > { %10075 = vmatpush3.bf16.msra.mxu1 %v11942_v10 }
  0x79   : > { %9353 = vmatmul.mubr.f32.gmra.mrb[2].mxu0 %v11815_v18  ;;  %v11959_v18 = vsub.f32 %v858_v45, %v880_v47  ;;  %v2180_v45 = vsub.f32 %v8895_v59, %v2078_v63  ;;  %v995_v47 = vsub.f32 %v11987_v32, %v994_v40  ;;  %v2188_v59 = vand.u32 4294901760, %v2187_v50 }
  0x7a   : > { %9355 = vmatprep.mubr.msk.f32.mxu0 %vm11691_vm0, %v15207_v1  ;;  %10259 = vmatpush3.bf16.msra.mxu0 %v11940_v9  ;;  %v1014_v63 = vsub.f32 %v11932_v4, %v892_v6  ;;  %v2208_v6 = vsub.f32 %v8899_v27, %v2090_v34 }
  0x7b   : > { %v987_v23 = vand.u32 4294901760, %v11959_v18  ;;  %10261 = vmatprep.subr.bf16.mxu0 %v11964_v21  ;;  %v2181_v53 = vand.u32 4294901760, %v2180_v45  ;;  %v996_v55 = vand.u32 4294901760, %v995_v47  ;;  %v2189_v60 = vsub.f32 %v2187_v50, %v2188_v59 }
  0x7c   : > { %v1015_v2 = vand.u32 4294901760, %v1014_v63  ;;  %v12035_v35 = vpack.c.bf16 %v11959_v18, %v11957_v17 }
  0x7d   : > { %9356 = vmatmul.mubr.f32.gmra.mrb[4].mxu0 %v11818_v20  ;;  %v975_v20 = vand.u32 4294901760, %v974_v14  ;;  %v988_v31 = vsub.f32 %v11959_v18, %v987_v23  ;;  %v2182_v14 = vsub.f32 %v2180_v45, %v2181_v53  ;;  %v12018_v30 = vpack.c.bf16 %v1003_v56, %v996_v55 }
  0x7e   : > { %10263 = vmatpush3.bf16.msra.mxu0 %v11964_v21  ;;  %v1016_v43 = vsub.f32 %v1014_v63, %v1015_v2  ;;  %v2209_v55 = vand.u32 4294901760, %v2208_v6  ;;  %v2216_v56 = vand.u32 4294901760, %v2215_v49 }
  0x7f   : > { %v11968_v24 = vpack.c.bf16 %v975_v20, %v968_v19  ;;  %v989_v39 = vand.u32 4294901760, %v988_v31  ;;  %10265 = vmatprep.subr.bf16.mxu0 %v11997_v42  ;;  %v1008_v19 = vand.u32 4294901760, %v1007_v54  ;;  %v2194_v20 = vsub.f32 %v8897_v11, %v2084_v15 }
  0x80   : > { %v2201_v31 = vsub.f32 %v8898_v12, %v2087_v16  ;;  %v2183_v3 = vand.u32 4294901760, %v2182_v14  ;;  %v1017_v11 = vand.u32 4294901760, %v1016_v43  ;;  %v2210_v14 = vsub.f32 %v2208_v6, %v2209_v55 }
  0x81   : > { %10077 = vmatprep.subr.bf16.mxu1 %v11968_v24  ;;  %v12005_v46 = vpack.c.bf16 %v989_v39, %v982_v38  ;;  %v1009_v5 = vsub.f32 %v1007_v54, %v1008_v19  ;;  %v2195_v38 = vand.u32 4294901760, %v2194_v20  ;;  %v2190_v39 = vand.u32 4294901760, %v2189_v60 }
  0x82   : > { %10267 = vmatpush3.bf16.msra.mxu0 %v11997_v42  ;;  %v2202_v44 = vand.u32 4294901760, %v2201_v31  ;;  %v2217_v1 = vsub.f32 %v2215_v49, %v2216_v56  ;;  %v12029_v60 = vpack.c.bf16 %v11923_v62, %v11918_v61  ;;  %v2211_v27 = vand.u32 4294901760, %v2210_v14 }
  0x83   : > { %10269 = vmatprep.subr.bf16.mxu0 %v12016_v13  ;;  %v1010_v47 = vand.u32 4294901760, %v1009_v5  ;;  %v2196_v4 = vsub.f32 %v2194_v20, %v2195_v38  ;;  %v12021_v51 = vpack.c.bf16 %v2190_v39, %v2183_v3  ;;  %v12039_v3 = vpack.c.bf16 %v11972_v26, %v11970_v25 }
  0x84   : > { %v2203_v15 = vsub.f32 %v2201_v31, %v2202_v44  ;;  %v2218_v29 = vand.u32 4294901760, %v2217_v1  ;;  %v12043_v5 = vpack.c.bf16 %v11989_v33, %v11987_v32  ;;  %v12045_v39 = vpack.c.bf16 %v2187_v50, %v2180_v45 }
  0x85   : > { %v2197_v52 = vand.u32 4294901760, %v2196_v4  ;;  %v12023_v12 = vpack.c.bf16 %v1017_v11, %v1010_v47  ;;  %v12047_v43 = vpack.c.bf16 %v1014_v63, %v1007_v54  ;;  %v12049_v47 = vpack.c.bf16 %v2201_v31, %v2194_v20 }
  0x86   : > { %v2204_v16 = vand.u32 4294901760, %v2203_v15  ;;  %v12031_v34 = vpack.c.bf16 %v2218_v29, %v2211_v27  ;;  %v12051_v1 = vpack.c.bf16 %v2215_v49, %v2208_v6  ;;  %v12057_v4 = vpack.c.bf16 %v973_v8, %v966_v7 }
  0x87   : > { %v12063_v11 = vpack.c.bf16 %v987_v23, %v980_v22  ;;  %v12069_v45 = vpack.c.bf16 %v2174_v37, %v2167_v36  ;;  %v12075_v61 = vpack.c.bf16 %v1001_v41, %v994_v40  ;;  %v12077_v62 = vpack.c.bf16 %v2188_v59, %v2181_v53 }
  0x88   : > { %v12025_v0 = vpack.c.bf16 %v2204_v16, %v2197_v52  ;;  %v12079_v7 = vpack.c.bf16 %v1015_v2, %v1008_v19  ;;  %v12081_v8 = vpack.c.bf16 %v2202_v44, %v2195_v38  ;;  %v12083_v17 = vpack.c.bf16 %v2216_v56, %v2209_v55 }
 0x148   : > { %v838_v18 = vpop.f32.mrb[0].mxu0 }
 0x149   : > { %v865_v22 = vsel %vm863_vm2, %v838_v18, 0  ;;  %v9351_v23 = vpop.f32.mrb[1].mxu0  ;;  %v1469_v32 = vrot.slane %v838_v18, 1  ;;  %v2663_v36 = vrot.slane %v838_v18, 2 }
 0x14a   : > { %v12086_v25 = vand.u32 4294901760, %v865_v22 }
 0x14c   : > { %v12089_v26 = vsub.f32 %v865_v22, %v12086_v25  ;;  %v844_v33 = vpop.f32.mrb[2].mxu0 }
 0x14d   : > { %v868_v37 = vsel %vm863_vm2, %v844_v33, 0  ;;  %v1470_v40 = vrot.slane %v844_v33, 1  ;;  %v2664_v41 = vrot.slane %v844_v33, 2  ;;  %v9354_v50 = vpop.f32.mrb[3].mxu0 }
 0x14e   : > { %v12092_v53 = vand.u32 4294901760, %v868_v37  ;;  %v945_v54 = vand.u32 4294901760, %v12089_v26 }
 0x14f   : > { %v1471_v59 = vsel %vm1468_vm3, %v1469_v32, %v1470_v40  ;;  %v2665_v63 = vsel %vm2662_vm4, %v2663_v36, %v2664_v41 }
 0x150   : > { %v12098_v19 = vsub.f32 %v868_v37, %v12092_v53  ;;  %v1474_v20 = vsel %vm863_vm2, %v1471_v59, 0  ;;  %v12102_v2 = vsel %vm863_vm2, %v2665_v63, 0  ;;  %v850_v31 = vpop.f32.mrb[4].mxu0  ;;  %v946_v38 = vsub.f32 %v12089_v26, %v945_v54 }
 0x151   : > { %v12107_v44 = vand.u32 4294901760, %v1474_v20  ;;  %v1472_v6 = vrot.slane %v850_v31, 1  ;;  %v2666_v49 = vrot.slane %v850_v31, 2  ;;  %v9357_v15 = vpop.f32.mrb[5].mxu0 }
 0x152   : > { %v947_v52 = vand.u32 4294901760, %v946_v38  ;;  %v955_v55 = vand.u32 4294901760, %v12098_v19 }
 0x153   : > { %v12111_v56 = vsub.f32 %v1474_v20, %v12107_v44  ;;  %v1473_v16 = vsel %vm1468_vm3, %v1470_v40, %v1472_v6  ;;  %v2667_v14 = vsel %vm2662_vm4, %v2664_v41, %v2666_v49 }
 0x154   : > { %v1476_v27 = vsel %vm863_vm2, %v1473_v16, 0  ;;  %v12117_v29 = vsel %vm863_vm2, %v2667_v14, 0  ;;  %9374 = vmatprep.mubr.f32.mxu1 %v947_v52  ;;  %v956_v18 = vsub.f32 %v12098_v19, %v955_v55 }
 0x155   : > { %v12122_v22 = vand.u32 4294901760, %v1476_v27  ;;  %v12125_v23 = vand.u32 4294901760, %v12111_v56 }
 0x156   : > { %v957_v32 = vand.u32 4294901760, %v956_v18 }
 0x157   : > { %v12128_v33 = vsub.f32 %v1476_v27, %v12122_v22  ;;  %v1554_v36 = vsub.f32 %v12111_v56, %v12125_v23 }
 0x158   : > { %9375 = vmatmul.mubr.f32.vlgmr.msra.gmra.mrb[0].mxu1 %v957_v32 }
 0x159   : > { %v12133_v37 = vand.u32 4294901760, %v12128_v33  ;;  %10079 = vmatpush3.bf16.msra.mxu1 %v11968_v24  ;;  %9393 = vmatprep.mubr.f32.mxu1 %v12086_v25  ;;  %v12137_v40 = vand.u32 4294901760, %v1554_v36  ;;  %v8886_v24 = vld [vmem:[%s15199_s2 + $0x48] sm:$0xff] }
 0x15a   : > { %10081 = vmatprep.subr.bf16.mxu1 %v12005_v46 }
 0x15b   : > { %9602 = vmatprep.mubr.f32.mxu0 %v12137_v40  ;;  %v1564_v41 = vsub.f32 %v12128_v33, %v12133_v37 }
 0x15d   : > { %10083 = vmatpush3.bf16.msra.mxu1 %v12005_v46  ;;  %v12144_v50 = vand.u32 4294901760, %v1564_v41  ;;  %v8887_v46 = vld [vmem:[%s15199_s2 + $0x50] sm:$0xff] }
 0x15e   : > { %10085 = vmatprep.subr.bf16.mxu1 %v12018_v30 }
 0x15f   : > { %9603 = vmatmul.mubr.f32.vlgmr.msra.gmra.mrb[6].mxu0 %v12144_v50 }
 0x160   : > { %10271 = vmatpush3.bf16.msra.mxu0 %v12016_v13  ;;  %9621 = vmatprep.mubr.f32.mxu0 %v12107_v44  ;;  %v8888_v13 = vld [vmem:[%s15199_s2 + $0x58] sm:$0xff] }
 0x161   : > { %10087 = vmatpush3.bf16.msra.mxu1 %v12018_v30  ;;  %10273 = vmatprep.subr.bf16.mxu0 %v12021_v51  ;;  %v12241_v30 = vand.u32 4294901760, %v12102_v2 }
 0x162   : > { %10089 = vmatprep.subr.bf16.mxu1 %v12023_v12 }
 0x164   : > { %10275 = vmatpush3.bf16.msra.mxu0 %v12021_v51  ;;  %v1482_v51 = vand.u32 4294901760, %v8886_v24 }
 0x165   : > { %10091 = vmatpush3.bf16.msra.mxu1 %v12023_v12  ;;  %10277 = vmatprep.subr.bf16.mxu0 %v12025_v0  ;;  %v8902_v12 = vld [vmem:[%s15199_s2 + $0xc8] sm:$0xff] }
 0x166   : > { %10093 = vmatprep.subr.bf16.mxu1 %v12029_v60 }
 0x168   : > { %9394 = vmatmul.mubr.f32.vlgmr.msra.gmra.mrb[0].mxu1 %v12092_v53  ;;  %10279 = vmatpush3.bf16.msra.mxu0 %v12025_v0  ;;  %v8885_v0 = vld [vmem:[%s15199_s2 + $0x40] sm:$0xff] }
 0x169   : > { %10095 = vmatpush3.bf16.msra.mxu1 %v12029_v60  ;;  %9412 = vmatprep.mubr.f32.mxu1 %v12089_v26 }
 0x16a   : > { %10281 = vmatprep.subr.bf16.mxu0 %v12031_v34  ;;  %10097 = vmatprep.subr.bf16.mxu1 %v12035_v35 }
 0x16c   : > { %10283 = vmatpush3.bf16.msra.mxu0 %v12031_v34  ;;  %v1485_v34 = vand.u32 4294901760, %v8887_v46 }
 0x16d   : > { %10099 = vmatpush3.bf16.msra.mxu1 %v12035_v35  ;;  %10285 = vmatprep.subr.bf16.mxu0 %v12039_v3  ;;  %v1488_v35 = vand.u32 4294901760, %v8888_v13 }
 0x16e   : > { %10101 = vmatprep.subr.bf16.mxu1 %v12043_v5 }
 0x16f   : > { %9622 = vmatmul.mubr.f32.vlgmr.msra.gmra.mrb[6].mxu0 %v12122_v22 }
 0x170   : > { %10287 = vmatpush3.bf16.msra.mxu0 %v12039_v3  ;;  %9640 = vmatprep.mubr.f32.mxu0 %v12111_v56 }
 0x171   : > { %10103 = vmatpush3.bf16.msra.mxu1 %v12043_v5  ;;  %10289 = vmatprep.subr.bf16.mxu0 %v12045_v39  ;;  %v2676_v5 = vand.u32 4294901760, %v8902_v12 }
 0x172   : > { %10105 = vmatprep.subr.bf16.mxu1 %v12047_v43 }
 0x173   : > { %v12314_v15 = vsub.f32 %v8902_v12, %v2676_v5  ;;  %v12356_v12 = vand.u32 4294901760, %v12117_v29 }
 0x174   : > { %10291 = vmatpush3.bf16.msra.mxu0 %v12045_v39  ;;  %v8889_v39 = vld [vmem:[%s15199_s2 + $0x60] sm:$0xff] }
 0x175   : > { %10107 = vmatpush3.bf16.msra.mxu1 %v12047_v43  ;;  %10293 = vmatprep.subr.bf16.mxu0 %v12049_v47  ;;  %v12260_v43 = vsub.f32 %v8886_v24, %v1482_v51 }
 0x176   : > { %10109 = vmatprep.subr.bf16.mxu1 %v11830_v28 }
 0x177   : > { %v1581_v59 = vand.u32 4294901760, %v12260_v43 }
 0x178   : > { %9413 = vmatmul.mubr.f32.vlgmr.msra.gmra.mrb[0].mxu1 %v12098_v19  ;;  %10295 = vmatpush3.bf16.msra.mxu0 %v12049_v47 }
 0x179   : > { %10111 = vmatpush3.bf16.msra.mxu1 %v11830_v28  ;;  %9431 = vmatprep.mubr.f32.mxu1 %v945_v54 }
 0x17a   : > { %10297 = vmatprep.subr.bf16.mxu0 %v12051_v1  ;;  %10113 = vmatprep.subr.bf16.mxu1 %v11889_v48 }
 0x17c   : > { %10299 = vmatpush3.bf16.msra.mxu0 %v12051_v1  ;;  %v8903_v1 = vld [vmem:[%s15199_s2 + $0xd0] sm:$0xff] }
 0x17d   : > { %10115 = vmatpush3.bf16.msra.mxu1 %v11889_v48  ;;  %10301 = vmatprep.subr.bf16.mxu0 %v11905_v57  ;;  %v2679_v54 = vand.u32 4294901760, %v8903_v1 }
 0x17e   : > { %10117 = vmatprep.subr.bf16.mxu1 %v11907_v58 }
 0x17f   : > { %9641 = vmatmul.mubr.f32.vlgmr.msra.gmra.mrb[6].mxu0 %v12128_v33 }
 0x180   : > { %10303 = vmatpush3.bf16.msra.mxu0 %v11905_v57  ;;  %9659 = vmatprep.mubr.f32.mxu0 %v12125_v23 }
 0x181   : > { %10119 = vmatpush3.bf16.msra.mxu1 %v11907_v58  ;;  %10305 = vmatprep.subr.bf16.mxu0 %v11940_v9 }
 0x182   : > { %10121 = vmatprep.subr.bf16.mxu1 %v11942_v10 }
 0x184   : > { %10307 = vmatpush3.bf16.msra.mxu0 %v11940_v9 }
 0x185   : > { %10123 = vmatpush3.bf16.msra.mxu1 %v11942_v10  ;;  %10309 = vmatprep.subr.bf16.mxu0 %v11964_v21 }
 0x186   : > { %10125 = vmatprep.subr.bf16.mxu1 %v12057_v4 }
 0x188   : > { %9432 = vmatmul.mubr.f32.vlgmr.msra.gmra.mrb[0].mxu1 %v955_v55  ;;  %10311 = vmatpush3.bf16.msra.mxu0 %v11964_v21 }
 0x189   : > { %10127 = vmatpush3.bf16.msra.mxu1 %v12057_v4  ;;  %9450 = vmatprep.mubr.f32.mxu1 %v12086_v25  ;;  %v8904_v4 = vld [vmem:[%s15199_s2 + $0xd8] sm:$0xff] }
 0x18a   : > { %10313 = vmatprep.subr.bf16.mxu0 %v11997_v42  ;;  %10129 = vmatprep.subr.bf16.mxu1 %v12063_v11  ;;  %v2682_v19 = vand.u32 4294901760, %v8904_v4 }
 0x18c   : > { %10315 = vmatpush3.bf16.msra.mxu0 %v11997_v42  ;;  %v12332_v18 = vpack.c.bf16 %v2682_v19, %v2679_v54 }
 0x18d   : > { %10131 = vmatpush3.bf16.msra.mxu1 %v12063_v11  ;;  %10317 = vmatprep.subr.bf16.mxu0 %v12069_v45  ;;  %v8891_v11 = vld [vmem:[%s15199_s2 + $0x70] sm:$0xff] }
 0x18e   : > { %10133 = vmatprep.subr.bf16.mxu1 %v12075_v61  ;;  %v1497_v20 = vand.u32 4294901760, %v8891_v11 }
 0x18f   : > { %9660 = vmatmul.mubr.f32.vlgmr.msra.gmra.mrb[6].mxu0 %v12133_v37 }
 0x190   : > { %10319 = vmatpush3.bf16.msra.mxu0 %v12069_v45  ;;  %9678 = vmatprep.mubr.f32.mxu0 %v12107_v44  ;;  %v8892_v45 = vld [vmem:[%s15199_s2 + $0x78] sm:$0xff] }
 0x191   : > { %10135 = vmatpush3.bf16.msra.mxu1 %v12075_v61  ;;  %10321 = vmatprep.subr.bf16.mxu0 %v12077_v62 }
 0x192   : > { %10137 = vmatprep.subr.bf16.mxu1 %v12079_v7 }
 0x194   : > { %10323 = vmatpush3.bf16.msra.mxu0 %v12077_v62  ;;  %v12285_v62 = vsub.f32 %v8887_v46, %v1485_v34  ;;  %v15213_v46 = vand.u32 4294901760, %v12314_v15 }
 0x195   : > { %10139 = vmatpush3.bf16.msra.mxu1 %v12079_v7  ;;  %10325 = vmatprep.subr.bf16.mxu0 %v12081_v8  ;;  %v12287_v7 = vsub.f32 %v8888_v13, %v1488_v35 }
 0x196   : > { %10141 = vmatprep.subr.bf16.mxu1 %v11830_v28  ;;  %v1588_v38 = vand.u32 4294901760, %v12285_v62 }
 0x197   : > { %v1595_v6 = vand.u32 4294901760, %v12287_v7 }
 0x198   : > { %9451 = vmatmul.mubr.f32.vlgmr.msra.gmra.mrb[0].mxu1 %v12092_v53  ;;  %10327 = vmatpush3.bf16.msra.mxu0 %v12081_v8  ;;  %v12290_v8 = vpack.c.bf16 %v1488_v35, %v1485_v34  ;;  %v1589_v41 = vsub.f32 %v12285_v62, %v1588_v38  ;;  %v12362_v35 = vsub.f32 %v8904_v4, %v2682_v19 }
 0x199   : > { %10143 = vmatpush3.bf16.msra.mxu1 %v11830_v28  ;;  %9469 = vmatprep.mubr.f32.mxu1 %v12086_v25  ;;  %v1479_v28 = vand.u32 4294901760, %v8885_v0  ;;  %v2776_v4 = vsub.f32 %v12314_v15, %v15213_v46 }
 0x19a   : > { %10329 = vmatprep.subr.bf16.mxu0 %v12083_v17  ;;  %10145 = vmatprep.subr.bf16.mxu1 %v11889_v48 }
 0x19b   : > { %v12251_v60 = vsub.f32 %v8885_v0, %v1479_v28  ;;  %v12263_v47 = vpack.c.bf16 %v1482_v51, %v1479_v28  ;;  %v1596_v0 = vsub.f32 %v12287_v7, %v1595_v6  ;;  %v8908_v28 = vld [vmem:[%s15199_s2 + $0xf8] sm:$0xff] }
 0x19c   : > { %10331 = vmatpush3.bf16.msra.mxu0 %v12083_v17  ;;  %v1491_v17 = vand.u32 4294901760, %v8889_v39 }
 0x19d   : > { %10147 = vmatpush3.bf16.msra.mxu1 %v11889_v48  ;;  %10333 = vmatprep.subr.bf16.mxu0 %v11905_v57  ;;  %v8901_v48 = vld [vmem:[%s15199_s2 + $0xc0] sm:$0xff]  ;;  %v1574_v61 = vand.u32 4294901760, %v12251_v60 }
 0x19e   : > { %10149 = vmatprep.subr.bf16.mxu1 %v11907_v58  ;;  %v2673_v3 = vand.u32 4294901760, %v8901_v48  ;;  %v12316_v52 = vsub.f32 %v8889_v39, %v1491_v17  ;;  %v12365_v39 = vsub.f32 %v8891_v11, %v1497_v20 }
 0x19f   : > { %9679 = vmatmul.mubr.f32.vlgmr.msra.gmra.mrb[6].mxu0 %v12122_v22  ;;  %v1575_v31 = vsub.f32 %v12251_v60, %v1574_v61 }
 0x1a0   : > { %10335 = vmatpush3.bf16.msra.mxu0 %v11905_v57  ;;  %9697 = vmatprep.mubr.f32.mxu0 %v12107_v44  ;;  %v8890_v57 = vld [vmem:[%s15199_s2 + $0x68] sm:$0xff]  ;;  %v12294_v25 = vpack.c.bf16 %v2676_v5, %v2673_v3  ;;  %v12310_v49 = vsub.f32 %v8901_v48, %v2673_v3  ;;  %v15212_v13 = vand.u32 4294901760, %v12316_v52  ;;  %v12353_v48 = vsub.f32 %v8903_v1, %v2679_v54 }
 0x1a1   : > { %10151 = vmatpush3.bf16.msra.mxu1 %v11907_v58  ;;  %10337 = vmatprep.subr.bf16.mxu0 %v11940_v9  ;;  %v12270_v58 = vsub.f32 %v12102_v2, %v12241_v30  ;;  %v1494_v26 = vand.u32 4294901760, %v8890_v57  ;;  %v8905_v2 = vld [vmem:[%s15199_s2 + $0xe0] sm:$0xff]  ;;  %v1576_v36 = vand.u32 4294901760, %v1575_v31  ;;  %v2694_v1 = vand.u32 4294901760, %v8908_v28 }
 0x1a2   : > { %10153 = vmatprep.subr.bf16.mxu1 %v11942_v10  ;;  %v2685_v14 = vand.u32 4294901760, %v8905_v2  ;;  %v15214_v24 = vand.u32 4294901760, %v12310_v49  ;;  %v1603_v11 = vsub.f32 %v12316_v52, %v15212_v13  ;;  %v2782_v19 = vand.u32 4294901760, %v12353_v48 }
 0x1a3   : > { %v2747_v63 = vand.u32 4294901760, %v12270_v58  ;;  %v12318_v55 = vsub.f32 %v8890_v57, %v1494_v26  ;;  %v12322_v16 = vpack.c.bf16 %v1494_v26, %v1491_v17  ;;  %v1590_v17 = vand.u32 4294901760, %v1589_v41 }
 0x1a4   : > { %10339 = vmatpush3.bf16.msra.mxu0 %v11940_v9  ;;  %v1500_v9 = vand.u32 4294901760, %v8892_v45  ;;  %v1597_v26 = vand.u32 4294901760, %v1596_v0  ;;  %v2769_v54 = vsub.f32 %v12310_v49, %v15214_v24  ;;  %v12391_v31 = vsub.f32 %v8905_v2, %v2685_v14 }
 0x1a5   : > { %10155 = vmatpush3.bf16.msra.mxu1 %v11942_v10  ;;  %10341 = vmatprep.subr.bf16.mxu0 %v11964_v21  ;;  %v8906_v10 = vld [vmem:[%s15199_s2 + $0xe8] sm:$0xff]  ;;  %v15211_v51 = vand.u32 4294901760, %v12318_v55  ;;  %v15215_v41 = vand.u32 4294901760, %v12365_v39  ;;  %v2777_v13 = vand.u32 4294901760, %v2776_v4  ;;  %v1604_v46 = vand.u32 4294901760, %v1603_v11 }
 0x1a6   : > { %10157 = vmatprep.subr.bf16.mxu1 %v12263_v47  ;;  %v2688_v27 = vand.u32 4294901760, %v8906_v10  ;;  %v12334_v32 = vpack.c.bf16 %v1500_v9, %v1497_v20  ;;  %v12367_v57 = vsub.f32 %v8892_v45, %v1500_v9  ;;  %v12386_v20 = vsub.f32 %v12117_v29, %v12356_v12 }
 0x1a7   : > { %v1610_v45 = vsub.f32 %v12318_v55, %v15211_v51  ;;  %v15216_v9 = vand.u32 4294901760, %v12362_v35  ;;  %v10176_v29 = vpack.c.bf16 %v1597_v26, %v1590_v17  ;;  %v2770_v51 = vand.u32 4294901760, %v2769_v54 }
 0x1a8   : > { %9470 = vmatmul.mubr.f32.vlgmr.msra.gmra.mrb[0].mxu1 %v12092_v53  ;;  %10343 = vmatpush3.bf16.msra.mxu0 %v11964_v21  ;;  %v1582_v53 = vsub.f32 %v12260_v43, %v1581_v59  ;;  %v2748_v21 = vsub.f32 %v12270_v58, %v2747_v63  ;;  %v1623_v0 = vand.u32 4294901760, %v12367_v57  ;;  %v2783_v2 = vsub.f32 %v12353_v48, %v2782_v19 }
 0x1a9   : > { %10159 = vmatpush3.bf16.msra.mxu1 %v12263_v47  ;;  %9488 = vmatprep.mubr.f32.mxu1 %v12137_v40  ;;  %v8907_v40 = vld [vmem:[%s15199_s2 + $0xf0] sm:$0xff]  ;;  %v1611_v24 = vand.u32 4294901760, %v1610_v45  ;;  %v12420_v54 = vsub.f32 %v8908_v28, %v2694_v1  ;;  %v10364_v4 = vpack.c.bf16 %v2777_v13, %v2770_v51 }
 0x1aa   : > { %10345 = vmatprep.subr.bf16.mxu0 %v11997_v42  ;;  %10161 = vmatprep.subr.bf16.mxu1 %v12290_v8  ;;  %v1583_v34 = vand.u32 4294901760, %v1582_v53  ;;  %v2749_v3 = vand.u32 4294901760, %v2748_v21  ;;  %v2691_v5 = vand.u32 4294901760, %v8907_v40  ;;  %v12393_v53 = vsub.f32 %v8906_v10, %v2688_v27 }
 0x1ab   : > { %v2757_v10 = vand.u32 4294901760, %v12386_v20  ;;  %v1624_v17 = vsub.f32 %v12367_v57, %v1623_v0  ;;  %v10180_v11 = vpack.c.bf16 %v1611_v24, %v1604_v46  ;;  %v2784_v45 = vand.u32 4294901760, %v2783_v2 }
 0x1ac   : > { %10347 = vmatpush3.bf16.msra.mxu0 %v11997_v42  ;;  %v12360_v42 = vpack.c.bf16 %v2688_v27, %v2685_v14  ;;  %v10172_v21 = vpack.c.bf16 %v1583_v34, %v1576_v36  ;;  %v2790_v14 = vsub.f32 %v12362_v35, %v15216_v9  ;;  %v2796_v27 = vand.u32 4294901760, %v12391_v31 }
 0x1ad   : > { %10163 = vmatpush3.bf16.msra.mxu1 %v12290_v8  ;;  %10349 = vmatprep.subr.bf16.mxu0 %v12294_v25  ;;  %v2803_v36 = vand.u32 4294901760, %v12393_v53  ;;  %v1617_v34 = vsub.f32 %v12365_v39, %v15215_v41  ;;  %v12418_v26 = vsub.f32 %v8907_v40, %v2691_v5  ;;  %v2758_v41 = vsub.f32 %v12386_v20, %v2757_v10 }
 0x1ae   : > { %10165 = vmatprep.subr.bf16.mxu1 %v12322_v16  ;;  %v2791_v9 = vand.u32 4294901760, %v2790_v14  ;;  %v2797_v40 = vsub.f32 %v12391_v31, %v2796_v27  ;;  %v1625_v28 = vand.u32 4294901760, %v1624_v17  ;;  %v2817_v13 = vand.u32 4294901760, %v12420_v54 }
 0x1af   : > { %9698 = vmatmul.mubr.f32.vlgmr.msra.gmra.mrb[6].mxu0 %v12122_v22  ;;  %v1618_v24 = vand.u32 4294901760, %v1617_v34  ;;  %v2810_v46 = vand.u32 4294901760, %v12418_v26  ;;  %v2759_v51 = vand.u32 4294901760, %v2758_v41 }
 0x1b0   : > { %10351 = vmatpush3.bf16.msra.mxu0 %v12294_v25  ;;  %9716 = vmatprep.mubr.f32.mxu0 %v2749_v3  ;;  %v12398_v3 = vpack.c.bf16 %v2694_v1, %v2691_v5  ;;  %v10368_v5 = vpack.c.bf16 %v2791_v9, %v2784_v45  ;;  %v2798_v1 = vand.u32 4294901760, %v2797_v40  ;;  %v2818_v34 = vsub.f32 %v12420_v54, %v2817_v13 }
 0x1b1   : > { %10167 = vmatpush3.bf16.msra.mxu1 %v12322_v16  ;;  %10353 = vmatprep.subr.bf16.mxu0 %v12332_v18  ;;  %v10184_v2 = vpack.c.bf16 %v1625_v28, %v1618_v24  ;;  %v2811_v14 = vsub.f32 %v12418_v26, %v2810_v46  ;;  %v10188_v9 = vpack.c.bf16 %v12260_v43, %v12251_v60  ;;  %v15664_v60 = vand.u32 4294901760, %v12310_v49 }
 0x1b2   : > { %10169 = vmatprep.subr.bf16.mxu1 %v12334_v32  ;;  %v2819_v17 = vand.u32 4294901760, %v2818_v34  ;;  %v10192_v40 = vpack.c.bf16 %v12287_v7, %v12285_v62  ;;  %v10200_v24 = vpack.c.bf16 %v12367_v57, %v12365_v39  ;;  %v10392_v28 = vpack.c.bf16 %v12420_v54, %v12418_v26 }
 0x1b3   : > { %v15665_v43 = vand.u32 4294901760, %v12314_v15  ;;  %v15667_v62 = vand.u32 4294901760, %v12318_v55 }
 0x1b4   : > { %10355 = vmatpush3.bf16.msra.mxu0 %v12332_v18 }
 0x1b5   : > { %10171 = vmatpush3.bf16.msra.mxu1 %v12334_v32  ;;  %10357 = vmatprep.subr.bf16.mxu0 %v12360_v42 }
 0x1b6   : > { %10173 = vmatprep.subr.bf16.mxu1 %v10172_v21 }
 0x1b8   : > { %9489 = vmatmul.mubr.f32.vlgmr.msra.gmra.mrb[0].mxu1 %v12144_v50  ;;  %10359 = vmatpush3.bf16.msra.mxu0 %v12360_v42  ;;  %v2804_v50 = vsub.f32 %v12393_v53, %v2803_v36 }
 0x1b9   : > { %10175 = vmatpush3.bf16.msra.mxu1 %v10172_v21  ;;  %9507 = vmatprep.mubr.f32.mxu1 %v12107_v44 }
 0x1ba   : > { %10361 = vmatprep.subr.bf16.mxu0 %v12398_v3  ;;  %10177 = vmatprep.subr.bf16.mxu1 %v10176_v29  ;;  %v2805_v21 = vand.u32 4294901760, %v2804_v50  ;;  %v10384_v50 = vpack.c.bf16 %v12362_v35, %v12353_v48 }
 0x1bc   : > { %10363 = vmatpush3.bf16.msra.mxu0 %v12398_v3  ;;  %v10372_v41 = vpack.c.bf16 %v2805_v21, %v2798_v1 }
 0x1bd   : > { %10179 = vmatpush3.bf16.msra.mxu1 %v10176_v29  ;;  %10365 = vmatprep.subr.bf16.mxu0 %v10364_v4  ;;  %v2812_v29 = vand.u32 4294901760, %v2811_v14 }
 0x1be   : > { %10181 = vmatprep.subr.bf16.mxu1 %v10180_v11 }
 0x1bf   : > { %9717 = vmatmul.mubr.f32.vlgmr.msra.gmra.mrb[6].mxu0 %v2759_v51  ;;  %v10376_v45 = vpack.c.bf16 %v2819_v17, %v2812_v29 }
 0x1c0   : > { %10367 = vmatpush3.bf16.msra.mxu0 %v10364_v4  ;;  %9735 = vmatprep.mubr.f32.mxu0 %v12241_v30  ;;  %v10380_v4 = vpack.c.bf16 %v12314_v15, %v12310_v49  ;;  %v10424_v49 = vpack.c.bf16 %v2817_v13, %v2810_v46 }
 0x1c1   : > { %10183 = vmatpush3.bf16.msra.mxu1 %v10180_v11  ;;  %10369 = vmatprep.subr.bf16.mxu0 %v10368_v5  ;;  %v10196_v11 = vpack.c.bf16 %v12318_v55, %v12316_v52 }
 0x1c2   : > { %10185 = vmatprep.subr.bf16.mxu1 %v10184_v2 }
 0x1c4   : > { %10371 = vmatpush3.bf16.msra.mxu0 %v10368_v5 }
 0x1c5   : > { %10187 = vmatpush3.bf16.msra.mxu1 %v10184_v2  ;;  %10373 = vmatprep.subr.bf16.mxu0 %v10372_v41 }
 0x1c6   : > { %10189 = vmatprep.subr.bf16.mxu1 %v10188_v9 }
 0x1c8   : > { %9508 = vmatmul.mubr.f32.vlgmr.msra.gmra.mrb[0].mxu1 %v12122_v22  ;;  %10375 = vmatpush3.bf16.msra.mxu0 %v10372_v41  ;;  %v8909_v41 = vld [vmem:[%s15201_s4 + $0x28] sm:$0xff] }
 0x1c9   : > { %10191 = vmatpush3.bf16.msra.mxu1 %v10188_v9  ;;  %9526 = vmatprep.mubr.f32.mxu1 %v12111_v56  ;;  %v10388_v56 = vpack.c.bf16 %v12393_v53, %v12391_v31 }
 0x1ca   : > { %10377 = vmatprep.subr.bf16.mxu0 %v10376_v45  ;;  %10193 = vmatprep.subr.bf16.mxu1 %v10192_v40 }
 0x1cc   : > { %10379 = vmatpush3.bf16.msra.mxu0 %v10376_v45 }
 0x1cd   : > { %10195 = vmatpush3.bf16.msra.mxu1 %v10192_v40  ;;  %10381 = vmatprep.subr.bf16.mxu0 %v10380_v4  ;;  %v3268_v40 = vsel %vm299_vm1, %v8909_v41, 0  ;;  %v4560_v41 = vld [vmem:[#allocation2] sm:$0xff] }
 0x1ce   : > { %10197 = vmatprep.subr.bf16.mxu1 %v10196_v11 }
 0x1cf   : > { %9736 = vmatmul.mubr.f32.vlgmr.msra.gmra.mrb[6].mxu0 %v12356_v12 }
 0x1d0   : > { %10383 = vmatpush3.bf16.msra.mxu0 %v10380_v4  ;;  %9754 = vmatprep.mubr.f32.mxu0 %v12270_v58  ;;  %v10412_v58 = vpack.c.bf16 %v15665_v43, %v15664_v60  ;;  %v8910_v4 = vld [vmem:[%s15201_s4 + $0x30] sm:$0xff] }
 0x1d1   : > { %10199 = vmatpush3.bf16.msra.mxu1 %v10196_v11  ;;  %10385 = vmatprep.subr.bf16.mxu0 %v10384_v50 }
 0x1d2   : > { %10201 = vmatprep.subr.bf16.mxu1 %v10200_v24 }
 0x1d4   : > { %10387 = vmatpush3.bf16.msra.mxu0 %v10384_v50  ;;  %v12580_v50 = vand.u32 4294901760, %v3268_v40 }
 0x1d5   : > { %10203 = vmatpush3.bf16.msra.mxu1 %v10200_v24  ;;  %10389 = vmatprep.subr.bf16.mxu0 %v10388_v56  ;;  %v3271_v24 = vsel %vm299_vm1, %v8910_v4, 0  ;;  %v4594_v4 = vand.u32 4294901760, %v4560_v41 }
 0x1d6   : > { %10205 = vmatprep.subr.bf16.mxu1 %v12263_v47 }
 0x1d8   : > { %9527 = vmatmul.mubr.f32.vlgmr.msra.gmra.mrb[0].mxu1 %v12128_v33  ;;  %10391 = vmatpush3.bf16.msra.mxu0 %v10388_v56  ;;  %v10224_v33 = vpack.c.bf16 %v1595_v6, %v1588_v38  ;;  %v10420_v6 = vpack.c.bf16 %v2803_v36, %v2796_v27  ;;  %v8911_v56 = vld [vmem:[%s15201_s4 + $0x38] sm:$0xff] }
 0x1d9   : > { %10207 = vmatpush3.bf16.msra.mxu1 %v12263_v47  ;;  %9545 = vmatprep.mubr.f32.mxu1 %v12125_v23  ;;  %v10220_v23 = vpack.c.bf16 %v1581_v59, %v1574_v61  ;;  %v15666_v61 = vand.u32 4294901760, %v12316_v52 }
 0x1da   : > { %10393 = vmatprep.subr.bf16.mxu0 %v10392_v28  ;;  %10209 = vmatprep.subr.bf16.mxu1 %v12290_v8 }
 0x1db   : > { %v10228_v7 = vpack.c.bf16 %v15667_v62, %v15666_v61 }
 0x1dc   : > { %10395 = vmatpush3.bf16.msra.mxu0 %v10392_v28  ;;  %v12588_v28 = vand.u32 4294901760, %v3271_v24 }
 0x1dd   : > { %10211 = vmatpush3.bf16.msra.mxu1 %v12290_v8  ;;  %10397 = vmatprep.subr.bf16.mxu0 %v12294_v25 }
 0x1de   : > { %10213 = vmatprep.subr.bf16.mxu1 %v12322_v16 }
 0x1df   : > { %9755 = vmatmul.mubr.f32.vlgmr.msra.gmra.mrb[6].mxu0 %v12386_v20 }
 0x1e0   : > { %10399 = vmatpush3.bf16.msra.mxu0 %v12294_v25  ;;  %9773 = vmatprep.mubr.f32.mxu0 %v2747_v63  ;;  %v15669_v63 = vand.u32 4294901760, %v12365_v39 }
 0x1e1   : > { %10215 = vmatpush3.bf16.msra.mxu1 %v12322_v16  ;;  %10401 = vmatprep.subr.bf16.mxu0 %v12332_v18 }
 0x1e2   : > { %10217 = vmatprep.subr.bf16.mxu1 %v12334_v32  ;;  %v10232_v38 = vpack.c.bf16 %v1623_v0, %v15669_v63 }
 0x1e4   : > { %10403 = vmatpush3.bf16.msra.mxu0 %v12332_v18 }
 0x1e5   : > { %10219 = vmatpush3.bf16.msra.mxu1 %v12334_v32  ;;  %10405 = vmatprep.subr.bf16.mxu0 %v12360_v42 }
 0x1e6   : > { %10221 = vmatprep.subr.bf16.mxu1 %v10220_v23 }
 0x1e8   : > { %9546 = vmatmul.mubr.f32.vlgmr.msra.gmra.mrb[0].mxu1 %v12133_v37  ;;  %10407 = vmatpush3.bf16.msra.mxu0 %v12360_v42  ;;  %v15668_v37 = vand.u32 4294901760, %v12362_v35 }
 0x1e9   : > { %10223 = vmatpush3.bf16.msra.mxu1 %v10220_v23  ;;  %9564 = vmatprep.mubr.f32.mxu1 %v12107_v44  ;;  %v3274_v23 = vsel %vm299_vm1, %v8911_v56, 0 }
 0x1ea   : > { %10409 = vmatprep.subr.bf16.mxu0 %v12398_v3  ;;  %10225 = vmatprep.subr.bf16.mxu1 %v10224_v33  ;;  %v10416_v59 = vpack.c.bf16 %v15668_v37, %v2782_v19  ;;  %v12598_v60 = vand.u32 4294901760, %v3274_v23  ;;  %v3350_v37 = vsub.f32 %v3268_v40, %v12580_v50  ;;  %v4562_v40 = vld [vmem:[#allocation2 + $0x10] sm:$0xff] }
 0x1eb   : > { %v4598_v56 = vand.u32 4294901760, %v4562_v40 }
 0x1ec   : > { %10411 = vmatpush3.bf16.msra.mxu0 %v12398_v3  ;;  %v3370_v63 = vsub.f32 %v3274_v23, %v12598_v60 }
 0x1ed   : > { %10227 = vmatpush3.bf16.msra.mxu1 %v10224_v33  ;;  %10413 = vmatprep.subr.bf16.mxu0 %v10412_v58  ;;  %v8912_v33 = vld [vmem:[%s15201_s4 + $0x40] sm:$0xff] }
 0x1ee   : > { %10229 = vmatprep.subr.bf16.mxu1 %v10228_v7  ;;  %v3277_v43 = vsel %vm299_vm1, %v8912_v33, 0 }
 0x1ef   : > { %9774 = vmatmul.mubr.f32.vlgmr.msra.gmra.mrb[6].mxu0 %v2757_v10  ;;  %v12607_v61 = vand.u32 4294901760, %v3277_v43 }
 0x1f0   : > { %10415 = vmatpush3.bf16.msra.mxu0 %v10412_v58  ;;  %9792 = vmatprep.mubr.f32.mxu0 %v12241_v30  ;;  %v8913_v58 = vld [vmem:[%s15201_s4 + $0x48] sm:$0x3] }
 0x1f1   : > { %10231 = vmatpush3.bf16.msra.mxu1 %v10228_v7  ;;  %10417 = vmatprep.subr.bf16.mxu0 %v10416_v59  ;;  %v3280_v62 = vsel %vm299_vm1, %v8913_v58, 0  ;;  %v4567_v58 = vld [vmem:[#allocation2 + $0x38] sm:$0xff] }
 0x1f2   : > { %10233 = vmatprep.subr.bf16.mxu1 %v10232_v38  ;;  %v12613_v7 = vand.u32 4294901760, %v3280_v62 }
 0x1f4   : > { %10419 = vmatpush3.bf16.msra.mxu0 %v10416_v59  ;;  %v3360_v59 = vsub.f32 %v3271_v24, %v12588_v28 }
 0x1f5   : > { %10235 = vmatpush3.bf16.msra.mxu1 %v10232_v38  ;;  %10421 = vmatprep.subr.bf16.mxu0 %v10420_v6  ;;  %v3380_v38 = vsub.f32 %v3277_v43, %v12607_v61  ;;  %v12736_v43 = vsub.f32 %v4560_v41, %v4594_v4 }
 0x1f6   : > { %10237 = vmatprep.subr.bf16.mxu1 %v12263_v47 }
 0x1f8   : > { %9565 = vmatmul.mubr.f32.vlgmr.msra.gmra.mrb[0].mxu1 %v12122_v22  ;;  %10423 = vmatpush3.bf16.msra.mxu0 %v10420_v6  ;;  %v12633_v6 = vsub.f32 %v3280_v62, %v12613_v7  ;;  %v4564_v62 = vld [vmem:[#allocation2 + $0x20] sm:$0xff] }
 0x1f9   : > { %10239 = vmatpush3.bf16.msra.mxu1 %v12263_v47  ;;  %9583 = vmatprep.mubr.f32.mxu1 %v12107_v44  ;;  %v15670_v44 = vmov 0.0|0.0  }
 0x1fa   : > { %10425 = vmatprep.subr.bf16.mxu0 %v10424_v49  ;;  %10241 = vmatprep.subr.bf16.mxu1 %v12290_v8 }
 0x1fc   : > { %10427 = vmatpush3.bf16.msra.mxu0 %v10424_v49  ;;  %v3351_v49 = vand.u32 4294901760, %v3350_v37 }
 0x1fd   : > { %10243 = vmatpush3.bf16.msra.mxu1 %v12290_v8  ;;  %10429 = vmatprep.subr.bf16.mxu0 %v12294_v25 }
 0x1fe   : > { %10245 = vmatprep.subr.bf16.mxu1 %v12322_v16 }
 0x1ff   : > { %9793 = vmatmul.mubr.f32.vlgmr.msra.gmra.mrb[6].mxu0 %v12356_v12 }
 0x200   : > { %10431 = vmatpush3.bf16.msra.mxu0 %v12294_v25  ;;  %9811 = vmatprep.mubr.f32.mxu0 %v12241_v30  ;;  %v15671_v30 = vmov 0.0  }
 0x201   : > { %10247 = vmatpush3.bf16.msra.mxu1 %v12322_v16  ;;  %10433 = vmatprep.subr.bf16.mxu0 %v12332_v18 }
 0x202   : > { %10249 = vmatprep.subr.bf16.mxu1 %v12334_v32 }
 0x204   : > { %10435 = vmatpush3.bf16.msra.mxu0 %v12332_v18 }
 0x205   : > { %10251 = vmatpush3.bf16.msra.mxu1 %v12334_v32  ;;  %10437 = vmatprep.subr.bf16.mxu0 %v12360_v42 }
 0x206   : > { %10447 = vmatprep.subr.bf16.mxu1 %v15670_v44 }
 0x208   : > { %9584 = vmatmul.mubr.f32.vlgmr.msra.gmra.mrb[0].mxu1 %v12122_v22  ;;  %10439 = vmatpush3.bf16.msra.mxu0 %v12360_v42  ;;  %v8884_v22 = vld [vmem:[%s15200_s3] ss:$0 sm:$0xff] }
 0x209   : > { %10441 = vmatprep.subr.bf16.mxu0 %v12398_v3  ;;  %9837 = vmatprep.mubr.msk.f32.mxu1 %vm11691_vm0, %v15671_v30 }
 0x20c   : > { %10443 = vmatpush3.bf16.msra.mxu0 %v12398_v3 }
 0x20d   : > { %10444 = vmatprep.subr.bf16.mxu0 %v15670_v44 }
 0x20f   : > { %9812 = vmatmul.mubr.f32.vlgmr.msra.gmra.mrb[6].mxu0 %v12356_v12 }
 0x210   : > { %9818 = vmatprep.mubr.msk.f32.mxu0 %vm11691_vm0, %v15671_v30 }
 0x2db   : > { %v9585_v47 = vpop.f32.mrb[0].mxu1 }
 0x2dc   : > { %v11248_v8 = vadd.f32 %v9585_v47, %v8884_v22  ;;  %v2048_v25 = vpop.f32.mrb[1].mxu1  ;;  %v3371_v47 = vand.u32 4294901760, %v3370_v63 }
 0x2dd   : > { %v11249_v15 = vadd.f32 %v8884_v22, %v2048_v25  ;;  %v3391_v25 = vand.u32 4294901760, %v12633_v6 }
 0x2de   : > { %v2061_v52 = vmax.f32 %v11248_v8, 0.0  ;;  %v3381_v8 = vand.u32 4294901760, %v3380_v38 }
 0x2df   : > { %v2060_v55 = vmax.f32 %v11249_v15, 0.0  ;;  %v3352_v15 = vsub.f32 %v3350_v37, %v3351_v49 }
 0x2e0   : > { %v3932_v16 = vand.u32 4294901760, %v2061_v52 }
 0x2e1   : > { %v3929_v18 = vand.u32 4294901760, %v2060_v55 }
 0x2e2   : > { %v12554_v32 = vsub.f32 %v2061_v52, %v3932_v16  ;;  %v9813_v48 = vpop.f32.mrb[6].mxu0  ;;  %v3353_v52 = vand.u32 4294901760, %v3352_v15 }
 0x2e3   : > { %v12556_v42 = vpack.c.bf16 %v3932_v16, %v3929_v18  ;;  %v12558_v12 = vsub.f32 %v2060_v55, %v3929_v18  ;;  %v11250_v35 = vadd.f32 %v9813_v48, %v8884_v22  ;;  %v3242_v39 = vpop.f32.mrb[7].mxu0  ;;  %v3256_v55 = vld [vmem:[%s15201_s4] sm:$0xff] }
 0x2e4   : > { %v4055_v57 = vand.u32 4294901760, %v12554_v32  ;;  %v11251_v19 = vadd.f32 %v8884_v22, %v3242_v39  ;;  %v3361_v22 = vand.u32 4294901760, %v3360_v59  ;;  %v3914_v18 = vsel %vm299_vm1, %v3256_v55, 0 }
 0x2e5   : > { %v4048_v20 = vand.u32 4294901760, %v12558_v12  ;;  %v3255_v31 = vmax.f32 %v11250_v35, 0.0  ;;  %v10469_v53 = vpack.c.bf16 %v12554_v32, %v12558_v12  ;;  %v3257_v35 = vld [vmem:[%s15201_s4 + $0x8] sm:$0xff]  ;;  %v12678_v39 = vand.u32 4294901760, %v3914_v18 }
 0x2e6   : > { %v4056_v0 = vsub.f32 %v12554_v32, %v4055_v57  ;;  %v3254_v3 = vmax.f32 %v11251_v19, 0.0  ;;  %v3362_v16 = vsub.f32 %v3360_v59, %v3361_v22  ;;  %v3917_v19 = vsel %vm299_vm1, %v3257_v35, 0  ;;  %v4568_v35 = vld [vmem:[#allocation2 + $0x40] sm:$0xff]  ;;  %v12889_v32 = vld [vmem:[#allocation2 + $0x208] sm:$0xff] }
 0x2e7   : > { %v4049_v10 = vsub.f32 %v12558_v12, %v4048_v20  ;;  %v3286_v27 = vand.u32 4294901760, %v3255_v31  ;;  %v12566_v36 = vpack.c.bf16 %v4055_v57, %v4048_v20  ;;  %v3372_v57 = vsub.f32 %v3370_v63, %v3371_v47  ;;  %v12891_v12 = vld [vmem:[#allocation2 + $0x218] sm:$0xff] }
 0x2e8   : > { %v4057_v26 = vand.u32 4294901760, %v4056_v0  ;;  %v3283_v54 = vand.u32 4294901760, %v3254_v3  ;;  %v3363_v48 = vand.u32 4294901760, %v3362_v16  ;;  %v12691_v0 = vsub.f32 %v3914_v18, %v12678_v39  ;;  %v4569_v18 = vld [vmem:[#allocation2 + $0x48] sm:$0xff] }
 0x2e9   : > { %v4050_v46 = vand.u32 4294901760, %v4049_v10  ;;  %v3408_v13 = vsub.f32 %v3255_v31, %v3286_v27  ;;  %v3373_v20 = vand.u32 4294901760, %v3372_v57  ;;  %v3258_v31 = vld [vmem:[%s15201_s4 + $0x10] sm:$0xff]  ;;  %v12694_v10 = vand.u32 4294901760, %v3917_v19 }
 0x2ea   : > { %v12568_v51 = vpack.c.bf16 %v3286_v27, %v3283_v54  ;;  %v3401_v5 = vsub.f32 %v3254_v3, %v3283_v54  ;;  %v3382_v3 = vsub.f32 %v3380_v38, %v3381_v8  ;;  %v3920_v27 = vsel %vm299_vm1, %v3258_v31, 0  ;;  %v3259_v54 = vld [vmem:[%s15201_s4 + $0x18] sm:$0xff] }
 0x2eb   : > { %v3409_v1 = vand.u32 4294901760, %v3408_v13  ;;  %v12570_v21 = vpack.c.bf16 %v4057_v26, %v4050_v46  ;;  %v3997_v46 = vand.u32 4294901760, %v12691_v0 }
 0x2ec   : > { %v3402_v2 = vand.u32 4294901760, %v3401_v5  ;;  %10446 = vmatpush3.bf16.msra.mxu0 %v12568_v51  ;;  %v10451_v14 = vpack.c.bf16 %v3408_v13, %v3401_v5  ;;  %v3383_v26 = vand.u32 4294901760, %v3382_v3  ;;  %v4570_v3 = vld [vmem:[#allocation2 + $0x50] sm:$0xff] }
 0x2ed   : > { %v3410_v34 = vsub.f32 %v3408_v13, %v3409_v1  ;;  %v3392_v13 = vsub.f32 %v12633_v6, %v3391_v25 }
 0x2ee   : > { %v3403_v9 = vsub.f32 %v3401_v5, %v3402_v2  ;;  %v10457_v29 = vpack.c.bf16 %v3409_v1, %v3402_v2  ;;  %v12710_v5 = vand.u32 4294901760, %v3920_v27  ;;  %v3923_v1 = vsel %vm299_vm1, %v3259_v54, 0 }
 0x2ef   : > { %v3411_v17 = vand.u32 4294901760, %v3410_v34  ;;  %9819 = vmatmul.mubr.f32.vlgmr.msra.gmra.mrb[8].mxu0 %v3353_v52  ;;  %v3393_v2 = vand.u32 4294901760, %v3392_v13  ;;  %v4563_v34 = vld [vmem:[#allocation2 + $0x18] sm:$0xff]  ;;  %v12728_v24 = vand.u32 4294901760, %v3923_v1  ;;  %v4610_v54 = vand.u32 4294901760, %v4568_v35 }
 0x2f0   : > { %v3404_v45 = vand.u32 4294901760, %v3403_v9  ;;  %9821 = vmatprep.mubr.msk.f32.mxu0 %vm11691_vm0, %v15671_v30  ;;  %v3998_v9 = vsub.f32 %v12691_v0, %v3997_v46 }
 0x2f1   : > { %v12754_v15 = vsub.f32 %v3923_v1, %v12728_v24 }
 0x2f2   : > { %v10448_v11 = vpack.c.bf16 %v3411_v17, %v3404_v45  ;;  %v4596_v45 = vand.u32 4294901760, %v4563_v34 }
 0x2f3   : > { %9822 = vmatmul.mubr.f32.gmra.mrb[10].mxu0 %v3363_v48  ;;  %v4571_v48 = vld [vmem:[#allocation2 + $0x58] sm:$0xff]  ;;  %v4027_v1 = vand.u32 4294901760, %v12754_v15 }
 0x2f4   : > { %10449 = vmatpush3.bf16.msra.mxu1 %v10448_v11  ;;  %9824 = vmatprep.mubr.msk.f32.mxu0 %vm11691_vm0, %v15671_v30 }
 0x2f5   : > { %10450 = vmatprep.subr.bf16.mxu1 %v15670_v44 }
 0x2f7   : > { %9838 = vmatmul.mubr.f32.vlgmr.msra.gmra.mrb[2].mxu1 %v12580_v50  ;;  %9825 = vmatmul.mubr.f32.gmra.mrb[12].mxu0 %v3373_v20 }
 0x2f8   : > { %10452 = vmatpush3.bf16.msra.mxu1 %v10451_v14  ;;  %9840 = vmatprep.mubr.msk.f32.mxu1 %vm11691_vm0, %v15671_v30  ;;  %v4561_v14 = vld [vmem:[#allocation2 + $0x8] sm:$0xff] }
 0x2f9   : > { %10453 = vmatprep.subr.bf16.mxu1 %v15670_v44  ;;  %9827 = vmatprep.mubr.msk.f32.mxu0 %vm11691_vm0, %v15671_v30  ;;  %v4592_v17 = vand.u32 4294901760, %v4561_v14 }
 0x2fb   : > { %9841 = vmatmul.mubr.f32.gmra.mrb[4].mxu1 %v12588_v28  ;;  %9828 = vmatmul.mubr.f32.gmra.mrb[14].mxu0 %v3383_v26  ;;  %v12730_v23 = vpack.c.bf16 %v4596_v45, %v4592_v17  ;;  %v12732_v33 = vsub.f32 %v4561_v14, %v4592_v17  ;;  %v4612_v26 = vand.u32 4294901760, %v4571_v48  ;;  %v4575_v17 = vld [vmem:[#allocation2 + $0x78] sm:$0xff] }
 0x2fc   : > { %9843 = vmatprep.mubr.msk.f32.mxu1 %vm11691_vm0, %v15671_v30  ;;  %9830 = vmatprep.mubr.msk.f32.mxu0 %vm11691_vm0, %v15671_v30 }
 0x2fd   : > { %15672 = vst [vmem:[#allocation5_spill] sm:$0xff] %v12730_v23  ;;  %10481 = vmatprep.subr.bf16.mxu0 %v12730_v23 }
 0x2ff   : > { %9844 = vmatmul.mubr.f32.gmra.mrb[6].mxu1 %v12598_v60  ;;  %9831 = vmatmul.mubr.f32.gmra.mrb[16].mxu0 %v3393_v2  ;;  %v4614_v2 = vand.u32 4294901760, %v4570_v3 }
 0x300   : > { %9846 = vmatprep.mubr.msk.f32.mxu1 %vm11691_vm0, %v15671_v30  ;;  %4688 = vmatprep.mubr.f32.mxu0 %v15671_v30 }
 0x303   : > { %9847 = vmatmul.mubr.f32.gmra.mrb[8].mxu1 %v12607_v61 }
 0x304   : > { %9849 = vmatprep.mubr.msk.f32.mxu1 %vm11691_vm0, %v15671_v30 }
 0x307   : > { %9850 = vmatmul.mubr.f32.gmra.mrb[10].mxu1 %v12613_v7 }
 0x308   : > { %9856 = vmatprep.mubr.msk.f32.mxu1 %vm11691_vm0, %v15671_v30 }
 0x30b   : > { %9857 = vmatmul.mubr.f32.vlgmr.msra.gmra.mrb[2].mxu1 %v3350_v37  ;;  %v4566_v37 = vld [vmem:[#allocation2 + $0x30] sm:$0xff] }
 0x30c   : > { %10455 = vmatpush3.bf16.msra.mxu1 %v12568_v51  ;;  %9859 = vmatprep.mubr.msk.f32.mxu1 %vm11691_vm0, %v15671_v30 }
 0x30d   : > { %10456 = vmatprep.subr.bf16.mxu1 %v15670_v44 }
 0x30f   : > { %9860 = vmatmul.mubr.f32.gmra.mrb[4].mxu1 %v3360_v59 }
 0x310   : > { %9862 = vmatprep.mubr.msk.f32.mxu1 %vm11691_vm0, %v15671_v30 }
 0x313   : > { %9863 = vmatmul.mubr.f32.gmra.mrb[6].mxu1 %v3370_v63  ;;  %v12741_v63 = vpack.c.bf16 %v4598_v56, %v4594_v4  ;;  %v4572_v4 = vld [vmem:[#allocation2 + $0x60] sm:$0xff] }
 0x314   : > { %9865 = vmatprep.mubr.msk.f32.mxu1 %vm11691_vm0, %v15671_v30 }
 0x315   : > { %15673 = vst [vmem:[#allocation6_spill] sm:$0xff] %v12741_v63  ;;  %10483 = vmatpush1.bf16.msra.mxu0 %v12741_v63 }
 0x317   : > { %9866 = vmatmul.mubr.f32.gmra.mrb[8].mxu1 %v3380_v38  ;;  %v12743_v38 = vsub.f32 %v4562_v40, %v4598_v56  ;;  %v12793_v40 = vsub.f32 %v4568_v35, %v4610_v54  ;;  %v4574_v56 = vld [vmem:[#allocation2 + $0x70] sm:$0xff] }
 0x318   : > { %9868 = vmatprep.mubr.msk.f32.mxu1 %vm11691_vm0, %v15671_v30 }
 0x31b   : > { %9869 = vmatmul.mubr.f32.gmra.mrb[10].mxu1 %v12633_v6  ;;  %v3999_v6 = vand.u32 4294901760, %v3998_v9  ;;  %v12786_v9 = vsub.f32 %v4571_v48, %v4612_v26 }
 0x31c   : > { %9875 = vmatprep.mubr.msk.f32.mxu1 %vm11691_vm0, %v15671_v30 }
 0x31f   : > { %9876 = vmatmul.mubr.f32.vlgmr.msra.gmra.mrb[2].mxu1 %v3351_v49 }
 0x320   : > { %10458 = vmatpush3.bf16.msra.mxu1 %v10457_v29  ;;  %9878 = vmatprep.mubr.msk.f32.mxu1 %vm11691_vm0, %v15671_v30  ;;  %v3260_v29 = vld [vmem:[%s15201_s4 + $0x20] sm:$0x3] }
 0x321   : > { %10459 = vmatprep.subr.bf16.mxu1 %v15670_v44  ;;  %v3926_v59 = vsel %vm299_vm1, %v3260_v29, 0  ;;  %v4573_v29 = vld [vmem:[#allocation2 + $0x68] sm:$0xff] }
 0x322   : > { %v12756_v52 = vand.u32 4294901760, %v3926_v59 }
 0x323   : > { %9879 = vmatmul.mubr.f32.gmra.mrb[4].mxu1 %v3361_v22  ;;  %v4604_v22 = vand.u32 4294901760, %v4567_v58 }
 0x324   : > { %9881 = vmatprep.mubr.msk.f32.mxu1 %vm11691_vm0, %v15671_v30  ;;  %v12780_v14 = vsub.f32 %v3926_v59, %v12756_v52 }
 0x325   : > { %v12763_v57 = vsub.f32 %v4567_v58, %v4604_v22  ;;  %v4028_v58 = vsub.f32 %v12754_v15, %v4027_v1 }
 0x326   : > { %v4037_v59 = vand.u32 4294901760, %v12780_v14 }
 0x327   : > { %9882 = vmatmul.mubr.f32.gmra.mrb[6].mxu1 %v3371_v47 }
 0x328   : > { %9884 = vmatprep.mubr.msk.f32.mxu1 %vm11691_vm0, %v15671_v30 }
 0x32b   : > { %9885 = vmatmul.mubr.f32.gmra.mrb[8].mxu1 %v3381_v8  ;;  %v4602_v8 = vand.u32 4294901760, %v4564_v62 }
 0x32c   : > { %9887 = vmatprep.mubr.msk.f32.mxu1 %vm11691_vm0, %v15671_v30 }
 0x32d   : > { %v12767_v20 = vsub.f32 %v4564_v62, %v4602_v8  ;;  %v4620_v62 = vand.u32 4294901760, %v4575_v17 }
 0x32f   : > { %9888 = vmatmul.mubr.f32.gmra.mrb[10].mxu1 %v3391_v25  ;;  %v4606_v25 = vand.u32 4294901760, %v4566_v37  ;;  %v12810_v48 = vsub.f32 %v4575_v17, %v4620_v62 }
 0x330   : > { %9894 = vmatprep.mubr.msk.f32.mxu1 %vm11691_vm0, %v15671_v30 }
 0x331   : > { %v12769_v31 = vsub.f32 %v4566_v37, %v4606_v25 }
 0x333   : > { %9895 = vmatmul.mubr.f32.vlgmr.msra.gmra.mrb[2].mxu1 %v12580_v50 }
 0x334   : > { %10461 = vmatpush3.bf16.msra.mxu1 %v12568_v51  ;;  %9897 = vmatprep.mubr.msk.f32.mxu1 %vm11691_vm0, %v15671_v30  ;;  %v12708_v51 = vsub.f32 %v3917_v19, %v12694_v10  ;;  %v12765_v19 = vpack.c.bf16 %v4606_v25, %v4602_v8  ;;  %v4577_v8 = vld [vmem:[#allocation2 + $0x88] sm:$0xff]  ;;  %v4579_v25 = vld [vmem:[#allocation2 + $0x98] sm:$0xff] }
 0x335   : > { %10462 = vmatprep.subr.bf16.mxu1 %v15670_v44 }
 0x336   : > { %v4007_v11 = vand.u32 4294901760, %v12708_v51  ;;  %15675 = vst [vmem:[#allocation8_spill] sm:$0xff] %v12765_v19 }
 0x337   : > { %9898 = vmatmul.mubr.f32.gmra.mrb[4].mxu1 %v12588_v28 }
 0x338   : > { %9900 = vmatprep.mubr.msk.f32.mxu1 %vm11691_vm0, %v15671_v30  ;;  %v4008_v47 = vsub.f32 %v12708_v51, %v4007_v11 }
 0x33b   : > { %9901 = vmatmul.mubr.f32.gmra.mrb[6].mxu1 %v12598_v60 }
 0x33c   : > { %9903 = vmatprep.mubr.msk.f32.mxu1 %vm11691_vm0, %v15671_v30 }
 0x33f   : > { %9904 = vmatmul.mubr.f32.gmra.mrb[8].mxu1 %v12607_v61 }
 0x340   : > { %9906 = vmatprep.mubr.msk.f32.mxu1 %vm11691_vm0, %v15671_v30 }
 0x343   : > { %9907 = vmatmul.mubr.f32.gmra.mrb[10].mxu1 %v12613_v7 }
 0x344   : > { %9913 = vmatprep.mubr.msk.f32.mxu1 %vm11691_vm0, %v15671_v30 }
 0x347   : > { %9914 = vmatmul.mubr.f32.vlgmr.msra.gmra.mrb[2].mxu1 %v12580_v50  ;;  %v12726_v50 = vsub.f32 %v3920_v27, %v12710_v5  ;;  %v4608_v27 = vand.u32 4294901760, %v4569_v18 }
 0x348   : > { %10464 = vmatpush3.bf16.msra.mxu1 %v12556_v42  ;;  %9916 = vmatprep.mubr.msk.f32.mxu1 %vm11691_vm0, %v15671_v30 }
 0x349   : > { %10465 = vmatprep.subr.bf16.mxu1 %v15670_v44  ;;  %v12784_v41 = vsub.f32 %v4569_v18, %v4608_v27  ;;  %v4576_v18 = vld [vmem:[#allocation2 + $0x80] sm:$0xff] }
 0x34b   : > { %9917 = vmatmul.mubr.f32.gmra.mrb[4].mxu1 %v12588_v28  ;;  %v4565_v28 = vld [vmem:[#allocation2 + $0x28] sm:$0xff] }
 0x34c   : > { %9919 = vmatprep.mubr.msk.f32.mxu1 %vm11691_vm0, %v15671_v30  ;;  %v4600_v49 = vand.u32 4294901760, %v4565_v28 }
 0x34e   : > { %v12758_v55 = vpack.c.bf16 %v4604_v22, %v4600_v49  ;;  %v12760_v16 = vsub.f32 %v4565_v28, %v4600_v49  ;;  %v12797_v28 = vsub.f32 %v4570_v3, %v4614_v2  ;;  %v4622_v49 = vand.u32 4294901760, %v4574_v56 }
 0x34f   : > { %9920 = vmatmul.mubr.f32.gmra.mrb[6].mxu1 %v12598_v60  ;;  %v12734_v60 = vsub.f32 %v4563_v34, %v4596_v45  ;;  %v12782_v34 = vpack.c.bf16 %v4612_v26, %v4608_v27  ;;  %v12791_v45 = vpack.c.bf16 %v4614_v2, %v4610_v54  ;;  %v4578_v26 = vld [vmem:[#allocation2 + $0x90] sm:$0xff]  ;;  %v4029_v54 = vand.u32 4294901760, %v4028_v58 }
 0x350   : > { %9922 = vmatprep.mubr.msk.f32.mxu1 %vm11691_vm0, %v15671_v30  ;;  %15674 = vst [vmem:[#allocation7_spill] sm:$0xff] %v12758_v55  ;;  %10485 = vmatprep.subr.bf16.mxu0 %v12758_v55  ;;  %v12816_v27 = vsub.f32 %v4574_v56, %v4622_v49  ;;  %v4628_v2 = vand.u32 4294901760, %v4579_v25  ;;  %v4630_v17 = vand.u32 4294901760, %v4578_v26  ;;  %v13056_v55 = vld [vmem:[#allocation2 + $0x290] sm:$0xff] }
 0x351   : > { %10487 = vmatpush1.bf16.msra.mxu0 %v12765_v19  ;;  %15676 = vst [vmem:[#allocation9_spill] sm:$0xff] %v12782_v34  ;;  %15677 = vst [vmem:[#allocation10_spill] sm:$0xff] %v12791_v45 }
 0x352   : > { %10489 = vmatprep.subr.bf16.mxu0 %v12782_v34  ;;  %v12829_v58 = vsub.f32 %v4579_v25, %v4628_v2  ;;  %v12947_v25 = vld [vmem:[#allocation2 + $0x258] sm:$0xff]  ;;  %15718 = vst [vmem:[#allocation46_spill] sm:$0xff] %v13056_v55 }
 0x353   : > { %9923 = vmatmul.mubr.f32.gmra.mrb[8].mxu1 %v12607_v61  ;;  %v4017_v61 = vand.u32 4294901760, %v12726_v50  ;;  %15691 = vst [vmem:[#allocation24_spill] sm:$0xff] %v12947_v25 }
 0x354   : > { %9925 = vmatprep.mubr.msk.f32.mxu1 %vm11691_vm0, %v15671_v30 }
 0x355   : > { %v4018_v13 = vsub.f32 %v12726_v50, %v4017_v61  ;;  %10491 = vmatpush1.bf16.msra.mxu0 %v12791_v45  ;;  %v13019_v45 = vld [vmem:[#allocation2 + $0x288] sm:$0xff] }
 0x356   : > { %15707 = vst [vmem:[#allocation39_spill] sm:$0xff] %v13019_v45 }
 0x357   : > { %9926 = vmatmul.mubr.f32.gmra.mrb[10].mxu1 %v12613_v7  ;;  %v4009_v7 = vand.u32 4294901760, %v4008_v47  ;;  %v4019_v37 = vand.u32 4294901760, %v4018_v13  ;;  %v4624_v13 = vand.u32 4294901760, %v4577_v8 }
 0x358   : > { %9932 = vmatprep.mubr.msk.f32.mxu1 %vm11691_vm0, %v15671_v30 }
 0x359   : > { %v12827_v56 = vsub.f32 %v4577_v8, %v4624_v13  ;;  %v12945_v8 = vld [vmem:[#allocation2 + $0x248] sm:$0xff] }
 0x35a   : > { %15690 = vst [vmem:[#allocation23_spill] sm:$0xff] %v12945_v8 }
 0x35b   : > { %9933 = vmatmul.mubr.f32.vlgmr.msra.gmra.mrb[2].mxu1 %v3999_v6  ;;  %v4618_v6 = vand.u32 4294901760, %v4572_v4 }
 0x35c   : > { %10467 = vmatpush3.bf16.msra.mxu1 %v12570_v21  ;;  %9935 = vmatprep.mubr.msk.f32.mxu1 %vm11691_vm0, %v15671_v30  ;;  %v4616_v21 = vand.u32 4294901760, %v4573_v29 }
 0x35d   : > { %10468 = vmatprep.subr.bf16.mxu1 %v15670_v44  ;;  %v12812_v35 = vpack.c.bf16 %v4622_v49, %v4618_v6  ;;  %v12814_v3 = vsub.f32 %v4572_v4, %v4618_v6  ;;  %v12825_v4 = vpack.c.bf16 %v4628_v2, %v4624_v13  ;;  %v12943_v49 = vld [vmem:[#allocation2 + $0x230] sm:$0xff]  ;;  %v15235_v13 = vand.u32 4294901760, %v12945_v8 }
 0x35e   : > { %v12806_v22 = vpack.c.bf16 %v4620_v62, %v4616_v21  ;;  %v12808_v47 = vsub.f32 %v4573_v29, %v4616_v21  ;;  %v4626_v29 = vand.u32 4294901760, %v4576_v18  ;;  %15689 = vst [vmem:[#allocation22_spill] sm:$0xff] %v12943_v49  ;;  %v15703_v2 = vand.u32 4294901760, %v12947_v25 }
 0x35f   : > { %9936 = vmatmul.mubr.f32.gmra.mrb[4].mxu1 %v4009_v7  ;;  %15679 = vst [vmem:[#allocation12_spill] sm:$0xff] %v12812_v35  ;;  %v4038_v7 = vsub.f32 %v12780_v14, %v4037_v59  ;;  %15680 = vst [vmem:[#allocation13_spill] sm:$0xff] %v12825_v4 }
 0x360   : > { %9938 = vmatprep.mubr.msk.f32.mxu1 %vm11691_vm0, %v15671_v30  ;;  %15678 = vst [vmem:[#allocation11_spill] sm:$0xff] %v12806_v22  ;;  %10493 = vmatprep.subr.bf16.mxu0 %v12806_v22  ;;  %v12831_v21 = vpack.c.bf16 %v4630_v17, %v4626_v29  ;;  %v12833_v62 = vsub.f32 %v4576_v18, %v4626_v29  ;;  %v12966_v29 = vld [vmem:[#allocation2 + $0x240] sm:$0xff] }
 0x361   : > { %10495 = vmatpush1.bf16.msra.mxu0 %v12812_v35  ;;  %v4039_v6 = vand.u32 4294901760, %v4038_v7  ;;  %v15232_v7 = vand.u32 4294901760, %v12943_v49  ;;  %15694 = vst [vmem:[#allocation27_spill] sm:$0xff] %v12966_v29  ;;  %v13015_v22 = vld [vmem:[#allocation2 + $0x260] sm:$0xff] }
 0x362   : > { %15681 = vst [vmem:[#allocation14_spill] sm:$0xff] %v12831_v21  ;;  %10497 = vmatprep.subr.bf16.mxu0 %v12825_v4  ;;  %15705 = vst [vmem:[#allocation37_spill] sm:$0xff] %v13015_v22 }
 0x363   : > { %9939 = vmatmul.mubr.f32.gmra.mrb[6].mxu1 %v4019_v37  ;;  %v12835_v37 = vsub.f32 %v4578_v26, %v4630_v17  ;;  %v12968_v17 = vld [vmem:[#allocation2 + $0x250] sm:$0xff] }
 0x364   : > { %9941 = vmatprep.mubr.msk.f32.mxu1 %vm11691_vm0, %v15671_v30  ;;  %15695 = vst [vmem:[#allocation28_spill] sm:$0xff] %v12968_v17  ;;  %v15711_v19 = vand.u32 4294901760, %v12968_v17 }
 0x365   : > { %10499 = vmatpush1.bf16.msra.mxu0 %v12831_v21  ;;  %v13004_v21 = vsub.f32 %v12945_v8, %v15235_v13  ;;  %v13021_v13 = vld [vmem:[#allocation2 + $0x298] sm:$0xff] }
 0x366   : > { %15708 = vst [vmem:[#allocation40_spill] sm:$0xff] %v13021_v13 }
 0x367   : > { %9942 = vmatmul.mubr.f32.gmra.mrb[8].mxu1 %v4029_v54  ;;  %15702 = vst [vmem:[#allocation35_spill] sm:$0xff] %v13004_v21 }
 0x368   : > { %9944 = vmatprep.mubr.msk.f32.mxu1 %vm11691_vm0, %v15671_v30 }
 0x36b   : > { %9945 = vmatmul.mubr.f32.gmra.mrb[10].mxu1 %v4039_v6 }
 0x36c   : > { %9951 = vmatprep.mubr.msk.f32.mxu1 %vm11691_vm0, %v15671_v30 }
 0x36f   : > { %9952 = vmatmul.mubr.f32.vlgmr.msra.gmra.mrb[2].mxu1 %v12678_v39 }
 0x370   : > { %10470 = vmatpush3.bf16.msra.mxu1 %v10469_v53  ;;  %9954 = vmatprep.mubr.msk.f32.mxu1 %vm11691_vm0, %v15671_v30  ;;  %v15220_v53 = vand.u32 4294901760, %v12889_v32 }
 0x371   : > { %10471 = vmatprep.subr.bf16.mxu1 %v15670_v44 }
 0x373   : > { %9955 = vmatmul.mubr.f32.gmra.mrb[4].mxu1 %v12694_v10 }
 0x374   : > { %9957 = vmatprep.mubr.msk.f32.mxu1 %vm11691_vm0, %v15671_v30 }
 0x377   : > { %9958 = vmatmul.mubr.f32.gmra.mrb[6].mxu1 %v12710_v5 }
 0x378   : > { %9960 = vmatprep.mubr.msk.f32.mxu1 %vm11691_vm0, %v15671_v30 }
 0x37b   : > { %9961 = vmatmul.mubr.f32.gmra.mrb[8].mxu1 %v12728_v24 }
 0x37c   : > { %9963 = vmatprep.mubr.msk.f32.mxu1 %vm11691_vm0, %v15671_v30 }
 0x37f   : > { %9964 = vmatmul.mubr.f32.gmra.mrb[10].mxu1 %v12756_v52 }
 0x380   : > { %9970 = vmatprep.mubr.msk.f32.mxu1 %vm11691_vm0, %v15671_v30 }
 0x383   : > { %9971 = vmatmul.mubr.f32.vlgmr.msra.gmra.mrb[2].mxu1 %v12691_v0 }
 0x384   : > { %10473 = vmatpush3.bf16.msra.mxu1 %v12556_v42  ;;  %9973 = vmatprep.mubr.msk.f32.mxu1 %vm11691_vm0, %v15671_v30 }
 0x385   : > { %10474 = vmatprep.subr.bf16.mxu1 %v15670_v44 }
 0x387   : > { %9974 = vmatmul.mubr.f32.gmra.mrb[4].mxu1 %v12708_v51  ;;  %v12926_v51 = vld [vmem:[#allocation2 + $0x200] sm:$0xff] }
 0x388   : > { %9976 = vmatprep.mubr.msk.f32.mxu1 %vm11691_vm0, %v15671_v30  ;;  %15684 = vst [vmem:[#allocation17_spill] sm:$0xff] %v12926_v51 }
 0x38b   : > { %9977 = vmatmul.mubr.f32.gmra.mrb[6].mxu1 %v12726_v50  ;;  %v12930_v50 = vld [vmem:[#allocation2 + $0x228] sm:$0xff] }
 0x38c   : > { %9979 = vmatprep.mubr.msk.f32.mxu1 %vm11691_vm0, %v15671_v30  ;;  %15686 = vst [vmem:[#allocation19_spill] sm:$0xff] %v12930_v50 }
 0x38f   : > { %9980 = vmatmul.mubr.f32.gmra.mrb[8].mxu1 %v12754_v15 }
 0x390   : > { %9982 = vmatprep.mubr.msk.f32.mxu1 %vm11691_vm0, %v15671_v30 }
 0x393   : > { %9983 = vmatmul.mubr.f32.gmra.mrb[10].mxu1 %v12780_v14  ;;  %v15222_v14 = vand.u32 4294901760, %v12930_v50 }
 0x394   : > { %9989 = vmatprep.mubr.msk.f32.mxu1 %vm11691_vm0, %v15671_v30 }
 0x395   : > { %v12973_v6 = vsub.f32 %v12930_v50, %v15222_v14  ;;  %v12999_v14 = vsub.f32 %v12943_v49, %v15232_v7  ;;  %v13017_v7 = vld [vmem:[#allocation2 + $0x270] sm:$0xff] }
 0x396   : > { %15706 = vst [vmem:[#allocation38_spill] sm:$0xff] %v13017_v7 }
 0x397   : > { %9990 = vmatmul.mubr.f32.vlgmr.msra.gmra.mrb[2].mxu1 %v3997_v46  ;;  %15696 = vst [vmem:[#allocation29_spill] sm:$0xff] %v12973_v6  ;;  %15701 = vst [vmem:[#allocation34_spill] sm:$0xff] %v12999_v14 }
 0x398   : > { %10476 = vmatpush3.bf16.msra.mxu1 %v12566_v36  ;;  %9992 = vmatprep.mubr.msk.f32.mxu1 %vm11691_vm0, %v15671_v30  ;;  %v12906_v36 = vsub.f32 %v12889_v32, %v15220_v53  ;;  %v13009_v53 = vsub.f32 %v12947_v25, %v15703_v2  ;;  %v15709_v2 = vand.u32 4294901760, %v12966_v29  ;;  %v4588_v25 = vld [vmem:[#allocation2 + $0xe0] sm:$0xff] }
 0x399   : > { %10477 = vmatprep.subr.bf16.mxu1 %v15670_v44  ;;  %v15219_v44 = vand.u32 4294901760, %v12891_v12 }
 0x39a   : > { %15682 = vst [vmem:[#allocation15_spill] sm:$0xff] %v12906_v36  ;;  %15704 = vst [vmem:[#allocation36_spill] sm:$0xff] %v13009_v53  ;;  %v13027_v34 = vsub.f32 %v12966_v29, %v15709_v2  ;;  %v15258_v2 = vand.u32 4294901760, %v13017_v7 }
 0x39b   : > { %9993 = vmatmul.mubr.f32.gmra.mrb[4].mxu1 %v4007_v11  ;;  %v12911_v0 = vsub.f32 %v12891_v12, %v15219_v44  ;;  %v12928_v11 = vld [vmem:[#allocation2 + $0x210] sm:$0xff] }
 0x39c   : > { %9995 = vmatprep.mubr.msk.f32.mxu1 %vm11691_vm0, %v15671_v30  ;;  %15685 = vst [vmem:[#allocation18_spill] sm:$0xff] %v12928_v11  ;;  %v15217_v15 = vand.u32 4294901760, %v12928_v11  ;;  %15710 = vst [vmem:[#allocation41_spill] sm:$0xff] %v13027_v34 }
 0x39d   : > { %15683 = vst [vmem:[#allocation16_spill] sm:$0xff] %v12911_v0  ;;  %v10928_v46 = vpack.c.bf16 %v12911_v0, %v12906_v36 }
 0x39e   : > { %v12958_v26 = vsub.f32 %v12928_v11, %v15217_v15  ;;  %v12980_v15 = vld [vmem:[#allocation2 + $0x268] sm:$0xff]  ;;  %v13251_v11 = vld [vmem:[#allocation2 + $0x2f0] sm:$0xff] }
 0x39f   : > { %9996 = vmatmul.mubr.f32.gmra.mrb[6].mxu1 %v4017_v61  ;;  %v12932_v61 = vld [vmem:[#allocation2 + $0x238] sm:$0xff]  ;;  %15698 = vst [vmem:[#allocation31_spill] sm:$0xff] %v12980_v15  ;;  %v15713_v63 = vand.u32 4294901760, %v12980_v15 }
 0x3a0   : > { %9998 = vmatprep.mubr.msk.f32.mxu1 %vm11691_vm0, %v15671_v30  ;;  %15687 = vst [vmem:[#allocation20_spill] sm:$0xff] %v12932_v61  ;;  %15693 = vst [vmem:[#allocation26_spill] sm:$0xff] %v12958_v26 }
 0x3a3   : > { %9999 = vmatmul.mubr.f32.gmra.mrb[8].mxu1 %v4027_v1  ;;  %v12939_v1 = vld [vmem:[#allocation2 + $0x220] sm:$0xff] }
 0x3a4   : > { %10001 = vmatprep.mubr.msk.f32.mxu1 %vm11691_vm0, %v15671_v30  ;;  %15688 = vst [vmem:[#allocation21_spill] sm:$0xff] %v12939_v1  ;;  %v15227_v54 = vand.u32 4294901760, %v12939_v1 }
 0x3a7   : > { %10002 = vmatmul.mubr.f32.gmra.mrb[10].mxu1 %v4037_v59  ;;  %v15221_v59 = vand.u32 4294901760, %v12932_v61 }
 0x3a8   : > { %10008 = vmatprep.mubr.msk.f32.mxu1 %vm11691_vm0, %v15671_v30 }
 0x3ab   : > { %10009 = vmatmul.mubr.f32.vlgmr.msra.gmra.mrb[2].mxu1 %v12678_v39 }
 0x3ac   : > { %10479 = vmatpush3.bf16.msra.mxu1 %v12556_v42  ;;  %10011 = vmatprep.mubr.msk.f32.mxu1 %vm11691_vm0, %v15671_v30  ;;  %v15218_v42 = vand.u32 4294901760, %v12926_v51 }
 0x3ad   : > { %10929 = vmatprep.subr.bf16.mxu1 %v10928_v46  ;;  %v12978_v46 = vsub.f32 %v12932_v61, %v15221_v59  ;;  %v12994_v59 = vsub.f32 %v12939_v1, %v15227_v54  ;;  %v13032_v54 = vsub.f32 %v12968_v17, %v15711_v19  ;;  %v13045_v19 = vsub.f32 %v12980_v15, %v15713_v63  ;;  %v13217_v17 = vld [vmem:[#allocation2 + $0x2f8] sm:$0xff]  ;;  %v4590_v1 = vld [vmem:[#allocation2 + $0xf0] sm:$0xff] }
 0x3ae   : > { %v12953_v18 = vsub.f32 %v12926_v51, %v15218_v42  ;;  %v12982_v42 = vld [vmem:[#allocation2 + $0x278] sm:$0xff]  ;;  %15750 = vst [vmem:[#allocation64_spill] sm:$0xff] %v13217_v17  ;;  %v15758_v50 = vand.u32 4294901760, %v13217_v17 }
 0x3af   : > { %10012 = vmatmul.mubr.f32.gmra.mrb[4].mxu1 %v12694_v10  ;;  %15697 = vst [vmem:[#allocation30_spill] sm:$0xff] %v12978_v46  ;;  %15699 = vst [vmem:[#allocation32_spill] sm:$0xff] %v12982_v42  ;;  %v10932_v4 = vpack.c.bf16 %v12978_v46, %v12973_v6  ;;  %v10934_v35 = vpack.c.bf16 %v12999_v14, %v12994_v59  ;;  %v15715_v23 = vand.u32 4294901760, %v12982_v42  ;;  %v13158_v6 = vld [vmem:[#allocation2 + $0x2d8] sm:$0xff] }
 0x3b0   : > { %10014 = vmatprep.mubr.msk.f32.mxu1 %vm11691_vm0, %v15671_v30  ;;  %15692 = vst [vmem:[#allocation25_spill] sm:$0xff] %v12953_v18  ;;  %v10930_v44 = vpack.c.bf16 %v12958_v26, %v12953_v18  ;;  %15700 = vst [vmem:[#allocation33_spill] sm:$0xff] %v12994_v59  ;;  %v13071_v59 = vsub.f32 %v13017_v7, %v15258_v2 }
 0x3b1   : > { %15712 = vst [vmem:[#allocation42_spill] sm:$0xff] %v13032_v54  ;;  %15714 = vst [vmem:[#allocation43_spill] sm:$0xff] %v13045_v19 }
 0x3b2   : > { %15721 = vst [vmem:[#allocation48_spill] sm:$0xff] %v13071_v59 }
 0x3b3   : > { %10015 = vmatmul.mubr.f32.gmra.mrb[6].mxu1 %v12710_v5 }
 0x3b4   : > { %10017 = vmatprep.mubr.msk.f32.mxu1 %vm11691_vm0, %v15671_v30 }
 0x3b7   : > { %10018 = vmatmul.mubr.f32.gmra.mrb[8].mxu1 %v12728_v24 }
 0x3b8   : > { %10020 = vmatprep.mubr.msk.f32.mxu1 %vm11691_vm0, %v15671_v30 }
 0x3bb   : > { %10021 = vmatmul.mubr.f32.gmra.mrb[10].mxu1 %v12756_v52 }
 0x3bc   : > { %10027 = vmatprep.mubr.msk.f32.mxu1 %vm11691_vm0, %v15671_v30 }
 0x3bf   : > { %10028 = vmatmul.mubr.f32.vlgmr.msra.gmra.mrb[2].mxu1 %v12678_v39  ;;  %v10936_v39 = vpack.c.bf16 %v13009_v53, %v13004_v21  ;;  %v13054_v53 = vld [vmem:[#allocation2 + $0x280] sm:$0xff] }
 0x3c0   : > { %10030 = vmatprep.mubr.msk.f32.mxu1 %vm11691_vm0, %v15671_v30  ;;  %10931 = vmatpush1.bf16.msra.mxu1 %v10930_v44  ;;  %v13050_v44 = vsub.f32 %v12982_v42, %v15715_v23  ;;  %15717 = vst [vmem:[#allocation45_spill] sm:$0xff] %v13054_v53  ;;  %v15719_v23 = vand.u32 4294901760, %v13015_v22  ;;  %v15260_v14 = vand.u32 4294901760, %v13054_v53 }
 0x3c1   : > { %10933 = vmatprep.subr.bf16.mxu1 %v10932_v4  ;;  %v10938_v4 = vpack.c.bf16 %v13032_v54, %v13027_v34 }
 0x3c2   : > { %15716 = vst [vmem:[#allocation44_spill] sm:$0xff] %v13050_v44  ;;  %v13066_v63 = vsub.f32 %v13015_v22, %v15719_v23  ;;  %v10940_v54 = vpack.c.bf16 %v13050_v44, %v13045_v19  ;;  %v15724_v23 = vand.u32 4294901760, %v13021_v13  ;;  %v13095_v2 = vsub.f32 %v13054_v53, %v15260_v14  ;;  %v13160_v26 = vpop.f32.mrb[8].mxu0 }
 0x3c3   : > { %10031 = vmatmul.mubr.f32.gmra.mrb[4].mxu1 %v12694_v10  ;;  %v15259_v10 = vand.u32 4294901760, %v13056_v55  ;;  %15736 = vst [vmem:[#allocation57_spill] sm:$0xff] %v13160_v26  ;;  %v9820_v53 = vpop.f32.mrb[9].mxu0 }
 0x3c4   : > { %10033 = vmatprep.mubr.msk.f32.mxu1 %vm11691_vm0, %v15671_v30  ;;  %10935 = vmatpush1.bf16.msra.mxu1 %v10934_v35  ;;  %15720 = vst [vmem:[#allocation47_spill] sm:$0xff] %v13066_v63  ;;  %v15722_v35 = vand.u32 4294901760, %v13019_v45  ;;  %v13085_v21 = vsub.f32 %v13021_v13, %v15724_v23  ;;  %15726 = vst [vmem:[#allocation51_spill] sm:$0xff] %v13095_v2  ;;  %v13111_v23 = vld [vmem:[#allocation2 + $0x2a8] sm:$0xff] }
 0x3c5   : > { %10937 = vmatprep.subr.bf16.mxu1 %v10936_v39  ;;  %v10942_v39 = vpack.c.bf16 %v13071_v59, %v13066_v63  ;;  %v13172_v59 = vld [vmem:[#allocation2 + $0xd8] sm:$0xff] }
 0x3c6   : > { %v13080_v34 = vsub.f32 %v13019_v45, %v15722_v35  ;;  %15725 = vst [vmem:[#allocation50_spill] sm:$0xff] %v13085_v21  ;;  %v13100_v35 = vsub.f32 %v13056_v55, %v15259_v10  ;;  %v13115_v10 = vld [vmem:[#allocation2 + $0xa8] sm:$0xff]  ;;  %v13176_v55 = vld [vmem:[#allocation2 + $0x2c0] sm:$0xff]  ;;  %v13188_v45 = vld [vmem:[#allocation2 + $0xd0] sm:$0xff] }
 0x3c7   : > { %10034 = vmatmul.mubr.f32.gmra.mrb[6].mxu1 %v12710_v5  ;;  %v15732_v44 = vand.u32 4294901760, %v13115_v10  ;;  %v4646_v36 = vand.u32 4294901760, %v13188_v45  ;;  %v15323_v42 = vand.u32 4294901760, %v13176_v55 }
 0x3c8   : > { %15723 = vst [vmem:[#allocation49_spill] sm:$0xff] %v13080_v34  ;;  %10036 = vmatprep.mubr.msk.f32.mxu1 %vm11691_vm0, %v15671_v30  ;;  %10939 = vmatpush1.bf16.msra.mxu1 %v10938_v4  ;;  %15727 = vst [vmem:[#allocation52_spill] sm:$0xff] %v13100_v35  ;;  %v10944_v5 = vpack.c.bf16 %v13085_v21, %v13080_v34  ;;  %v10946_v4 = vpack.c.bf16 %v13100_v35, %v13095_v2  ;;  %v13121_v21 = vld [vmem:[#allocation2 + $0x2a0] sm:$0xff]  ;;  %v13127_v35 = vld [vmem:[#allocation2 + $0xb0] sm:$0xff] }
 0x3c9   : > { %10941 = vmatprep.subr.bf16.mxu1 %v10940_v54  ;;  %v13113_v54 = vld [vmem:[#allocation2 + $0x2b8] sm:$0xff]  ;;  %v13129_v2 = vld [vmem:[#allocation2 + $0x2b0] sm:$0xff]  ;;  %v15287_v34 = vand.u32 4294901760, %v13121_v21  ;;  %v15738_v18 = vand.u32 4294901760, %v13127_v35  ;;  %v13231_v15 = vsub.f32 %v13176_v55, %v15323_v42 }
 0x3ca   : > { %v15740_v13 = vand.u32 4294901760, %v13129_v2 }
 0x3cb   : > { %10037 = vmatmul.mubr.f32.gmra.mrb[8].mxu1 %v12728_v24  ;;  %v13117_v24 = vld [vmem:[#allocation2 + $0xb8] sm:$0xff]  ;;  %v13154_v14 = vsub.f32 %v13121_v21, %v15287_v34  ;;  %v13190_v34 = vld [vmem:[#allocation2 + $0x2d0] sm:$0xff]  ;;  %15753 = vst [vmem:[#allocation67_spill] sm:$0xff] %v13231_v15 }
 0x3cc   : > { %10039 = vmatprep.mubr.msk.f32.mxu1 %vm11691_vm0, %v15671_v30  ;;  %10943 = vmatpush1.bf16.msra.mxu1 %v10942_v39  ;;  %v15728_v39 = vand.u32 4294901760, %v13111_v23  ;;  %v15733_v19 = vand.u32 4294901760, %v13117_v24  ;;  %v15754_v8 = vand.u32 4294901760, %v13190_v34 }
 0x3cd   : > { %10945 = vmatprep.subr.bf16.mxu1 %v10944_v5  ;;  %v15730_v5 = vand.u32 4294901760, %v13113_v54  ;;  %15735 = vst [vmem:[#allocation56_spill] sm:$0xff] %v13154_v14 }
 0x3ce   : > { %v13137_v63 = vsub.f32 %v13111_v23, %v15728_v39  ;;  %v13148_v46 = vpack.c.bf16 %v15733_v19, %v15732_v44  ;;  %v13156_v39 = vld [vmem:[#allocation2 + $0x2c8] sm:$0xff] }
 0x3cf   : > { %10040 = vmatmul.mubr.f32.gmra.mrb[10].mxu1 %v12756_v52  ;;  %v13142_v52 = vsub.f32 %v13113_v54, %v15730_v5  ;;  %v13170_v44 = vld [vmem:[#allocation2 + $0xc8] sm:$0xff] }
 0x3d0   : > { %10947 = vmatpush1.bf16.msra.mxu1 %v10946_v4  ;;  %7237 = vmatprep.mubr.f32.mxu1 %v15671_v30  ;;  %v13125_v4 = vld [vmem:[#allocation2 + $0xa0] sm:$0xff]  ;;  %15729 = vst [vmem:[#allocation53_spill] sm:$0xff] %v13137_v63  ;;  %15734 = vst [vmem:[#allocation55_spill] sm:$0xff] %v13148_v46 }
 0x3d1   : > { %15731 = vst [vmem:[#allocation54_spill] sm:$0xff] %v13142_v52  ;;  %v15737_v5 = vand.u32 4294901760, %v13125_v4  ;;  %v10948_v19 = vpack.c.bf16 %v13142_v52, %v13137_v63  ;;  %10501 = vmatprep.subr.bf16.mxu0 %v13148_v46  ;;  %v13186_v63 = vld [vmem:[#allocation2 + $0xc0] sm:$0xff]  ;;  %v15744_v52 = vand.u32 4294901760, %v13158_v6 }
 0x3d2   : > { %v4642_v53 = vand.u32 4294901760, %v13186_v63  ;;  %v13249_v30 = vld [vmem:[#allocation2 + $0x2e0] sm:$0xff] }
 0x3d3   : > { %v13166_v0 = vpack.c.bf16 %v15738_v18, %v15737_v5  ;;  %v13182_v18 = vsub.f32 %v13129_v2, %v15740_v13  ;;  %10949 = vmatprep.subr.bf16.mxu1 %v10948_v19  ;;  %v15742_v13 = vand.u32 4294901760, %v13156_v39  ;;  %v13203_v5 = vsub.f32 %v13158_v6, %v15744_v52 }
 0x3d4   : > { %v15747_v19 = vand.u32 4294901760, %v13172_v59  ;;  %v13219_v29 = vpack.c.bf16 %v4646_v36, %v4642_v53 }
 0x3d5   : > { %15739 = vst [vmem:[#allocation58_spill] sm:$0xff] %v13166_v0  ;;  %15741 = vst [vmem:[#allocation59_spill] sm:$0xff] %v13182_v18  ;;  %10503 = vmatpush1.bf16.msra.mxu0 %v13166_v0  ;;  %v13198_v46 = vsub.f32 %v13156_v39, %v15742_v13  ;;  %v10950_v7 = vpack.c.bf16 %v13182_v18, %v13154_v14  ;;  %v15746_v0 = vand.u32 4294901760, %v13170_v44  ;;  %v13215_v13 = vld [vmem:[#allocation2 + $0x2e8] sm:$0xff]  ;;  %v4591_v14 = vld [vmem:[#allocation2 + $0xf8] sm:$0xff] }
 0x3d6   : > { %15745 = vst [vmem:[#allocation61_spill] sm:$0xff] %v13203_v5  ;;  %15749 = vst [vmem:[#allocation63_spill] sm:$0xff] %v13215_v13  ;;  %v4589_v18 = vld [vmem:[#allocation2 + $0xe8] sm:$0xff]  ;;  %v4652_v49 = vand.u32 4294901760, %v4591_v14  ;;  %v15756_v61 = vand.u32 4294901760, %v13215_v13 }
 0x3d7   : > { %15743 = vst [vmem:[#allocation60_spill] sm:$0xff] %v13198_v46  ;;  %v13211_v22 = vpack.c.bf16 %v15747_v19, %v15746_v0  ;;  %15751 = vst [vmem:[#allocation65_spill] sm:$0xff] %v13219_v29  ;;  %v10952_v52 = vpack.c.bf16 %v13203_v5, %v13198_v46  ;;  %10951 = vmatpush1.bf16.msra.mxu1 %v10950_v7  ;;  %v13225_v19 = vpop.f32.mrb[10].mxu0  ;;  %v13236_v5 = vsub.f32 %v13190_v34, %v15754_v8 }
 0x3d8   : > { %15752 = vst [vmem:[#allocation66_spill] sm:$0xff] %v13225_v19  ;;  %v4648_v46 = vand.u32 4294901760, %v4589_v18  ;;  %v9823_v7 = vpop.f32.mrb[11].mxu0  ;;  %v4650_v0 = vand.u32 4294901760, %v4588_v25  ;;  %v13242_v42 = vsub.f32 %v13215_v13, %v15756_v61  ;;  %v13247_v8 = vsub.f32 %v13217_v17, %v15758_v50 }
 0x3d9   : > { %15748 = vst [vmem:[#allocation62_spill] sm:$0xff] %v13211_v22  ;;  %10505 = vmatprep.subr.bf16.mxu0 %v13211_v22  ;;  %15755 = vst [vmem:[#allocation68_spill] sm:$0xff] %v13236_v5  ;;  %10953 = vmatprep.subr.bf16.mxu1 %v10952_v52  ;;  %v4654_v22 = vand.u32 4294901760, %v4590_v1  ;;  %v15761_v7 = vand.u32 4294901760, %v13117_v24  ;;  %v15762_v61 = vand.u32 4294901760, %v13125_v4  ;;  %v15764_v50 = vand.u32 4294901760, %v13127_v35 }
 0x3da   : > { %10507 = vmatpush1.bf16.msra.mxu0 %v13219_v29  ;;  %15757 = vst [vmem:[#allocation69_spill] sm:$0xff] %v13242_v42  ;;  %15759 = vst [vmem:[#allocation70_spill] sm:$0xff] %v13247_v8  ;;  %v15760_v29 = vand.u32 4294901760, %v13115_v10  ;;  %v10954_v17 = vpack.c.bf16 %v13236_v5, %v13231_v15  ;;  %v13284_v13 = vpop.f32.mrb[12].mxu0  ;;  %v13325_v5 = vsub.f32 %v4588_v25, %v4650_v0 }
 0x3db   : > { %v13261_v51 = vsub.f32 %v13117_v24, %v15761_v7  ;;  %v13266_v19 = vsub.f32 %v13125_v4, %v15762_v61  ;;  %v13271_v26 = vsub.f32 %v13127_v35, %v15764_v50  ;;  %v10956_v24 = vpack.c.bf16 %v13247_v8, %v13242_v42 }
 0x3dc   : > { %v13256_v52 = vsub.f32 %v13115_v10, %v15760_v29  ;;  %v13275_v29 = vpack.c.bf16 %v4652_v49, %v4648_v46  ;;  %v13277_v10 = vpack.c.bf16 %v4654_v22, %v4650_v0  ;;  %v15338_v7 = vand.u32 4294901760, %v13249_v30  ;;  %10955 = vmatpush1.bf16.msra.mxu1 %v10954_v17  ;;  %15779 = vst [vmem:[#allocation82_spill] sm:$0xff] %v13325_v5 }
 0x3dd   : > { %15763 = vst [vmem:[#allocation71_spill] sm:$0xff] %v13266_v19  ;;  %10957 = vmatprep.subr.bf16.mxu1 %v10956_v24  ;;  %v15768_v17 = vand.u32 4294901760, %v13251_v11  ;;  %v15770_v35 = vand.u32 4294901760, %v12732_v33  ;;  %v13321_v42 = vsub.f32 %v4589_v18, %v4648_v46  ;;  %v13327_v15 = vsub.f32 %v4590_v1, %v4654_v22 }
 0x3de   : > { %15765 = vst [vmem:[#allocation72_spill] sm:$0xff] %v13275_v29  ;;  %15766 = vst [vmem:[#allocation73_spill] sm:$0xff] %v13277_v10  ;;  %10509 = vmatprep.subr.bf16.mxu0 %v13275_v29  ;;  %v13294_v4 = vsub.f32 %v13249_v30, %v15338_v7  ;;  %v9826_v29 = vpop.f32.mrb[13].mxu0  ;;  %v15773_v7 = vand.u32 4294901760, %v13172_v59  ;;  %v15784_v22 = vand.u32 4294901760, %v12889_v32  ;;  %v15785_v1 = vand.u32 4294901760, %v12891_v12 }
 0x3df   : > { %10511 = vmatpush1.bf16.msra.mxu0 %v13277_v10  ;;  %v13299_v61 = vsub.f32 %v13251_v11, %v15768_v17  ;;  %v4736_v50 = vsub.f32 %v12732_v33, %v15770_v35  ;;  %v15771_v10 = vand.u32 4294901760, %v13170_v44  ;;  %v13316_v17 = vsub.f32 %v13186_v63, %v4642_v53  ;;  %15777 = vst [vmem:[#allocation80_spill] sm:$0xff] %v13321_v42 }
 0x3e0   : > { %15767 = vst [vmem:[#allocation74_spill] sm:$0xff] %v13294_v4  ;;  %v13313_v8 = vsub.f32 %v13172_v59, %v15773_v7  ;;  %v13319_v29 = vsub.f32 %v13188_v45, %v4646_v36  ;;  %v13323_v35 = vsub.f32 %v4591_v14, %v4652_v49  ;;  %15780 = vst [vmem:[#allocation83_spill] sm:$0xff] %v13327_v15  ;;  %v15781_v63 = vand.u32 4294901760, %v12734_v60 }
 0x3e1   : > { %15769 = vst [vmem:[#allocation75_spill] sm:$0xff] %v13299_v61  ;;  %v13308_v24 = vsub.f32 %v13170_v44, %v15771_v10  ;;  %15775 = vst [vmem:[#allocation78_spill] sm:$0xff] %v13316_v17  ;;  %v10958_v44 = vpack.c.bf16 %v13299_v61, %v13294_v4  ;;  %v13331_v10 = vpop.f32.mrb[14].mxu0  ;;  %v4737_v59 = vand.u32 4294901760, %v4736_v50  ;;  %v15782_v45 = vand.u32 4294901760, %v12736_v43 }
 0x3e2   : > { %15774 = vst [vmem:[#allocation77_spill] sm:$0xff] %v13313_v8  ;;  %15776 = vst [vmem:[#allocation79_spill] sm:$0xff] %v13319_v29  ;;  %v4748_v53 = vsub.f32 %v12734_v60, %v15781_v63  ;;  %v15783_v14 = vand.u32 4294901760, %v12743_v38  ;;  %v13346_v25 = vpack.c.bf16 %v15785_v1, %v15784_v22  ;;  %v9829_v46 = vpop.f32.mrb[15].mxu0  ;;  %v15787_v18 = vand.u32 4294901760, %v12760_v16 }
 0x3e3   : > { %15772 = vst [vmem:[#allocation76_spill] sm:$0xff] %v13308_v24  ;;  %15778 = vst [vmem:[#allocation81_spill] sm:$0xff] %v13323_v35  ;;  %v4742_v36 = vsub.f32 %v12736_v43, %v15782_v45  ;;  %10959 = vmatpush1.bf16.msra.mxu1 %v10958_v44  ;;  %v15347_v63 = vand.u32 4294901760, %v12763_v57  ;;  %v15350_v45 = vand.u32 4294901760, %v12767_v20  ;;  %v15351_v32 = vand.u32 4294901760, %v12769_v31  ;;  %v13356_v22 = vpop.f32.mrb[16].mxu0 }
 0x3e4   : > { %v4754_v49 = vsub.f32 %v12743_v38, %v15783_v14  ;;  %15786 = vst [vmem:[#allocation84_spill] sm:$0xff] %v13346_v25  ;;  %v4760_v0 = vsub.f32 %v12760_v16, %v15787_v18  ;;  %v4749_v7 = vand.u32 4294901760, %v4748_v53  ;;  %10961 = vmatprep.subr.bf16.mxu1 %v13346_v25  ;;  %v15352_v12 = vand.u32 4294901760, %v12784_v41  ;;  %v9832_v46 = vpop.f32.mrb[17].mxu0 }
 0x3e5   : > { %v4743_v50 = vand.u32 4294901760, %v4742_v36  ;;  %v4772_v44 = vsub.f32 %v12763_v57, %v15347_v63  ;;  %v4766_v53 = vsub.f32 %v12767_v20, %v15350_v45  ;;  %v15356_v63 = vand.u32 4294901760, %v12793_v40 }
 0x3e6   : > { %v4755_v61 = vand.u32 4294901760, %v4754_v49  ;;  %v10512_v14 = vpack.c.bf16 %v4749_v7, %v4737_v59  ;;  %v4761_v1 = vand.u32 4294901760, %v4760_v0  ;;  %v4778_v49 = vsub.f32 %v12769_v31, %v15351_v32 }
 0x3e7   : > { %v4784_v59 = vsub.f32 %v12784_v41, %v15352_v12  ;;  %v4773_v18 = vand.u32 4294901760, %v4772_v44  ;;  %v4767_v0 = vand.u32 4294901760, %v4766_v53  ;;  %v15353_v7 = vand.u32 4294901760, %v12786_v9 }
 0x3e8   : > { %v13364_v36 = vpack.c.bf16 %v4755_v61, %v4743_v50  ;;  %10513 = vmatprep.subr.bf16.mxu0 %v10512_v14  ;;  %v4779_v25 = vand.u32 4294901760, %v4778_v49  ;;  %v15357_v61 = vand.u32 4294901760, %v12797_v28  ;;  %v15358_v50 = vand.u32 4294901760, %v12808_v47 }
 0x3e9   : > { %v13376_v45 = vpack.c.bf16 %v4773_v18, %v4761_v1  ;;  %v4785_v32 = vand.u32 4294901760, %v4784_v59  ;;  %v4796_v12 = vsub.f32 %v12786_v9, %v15353_v7  ;;  %v4790_v14 = vsub.f32 %v12793_v40, %v15356_v63 }
 0x3ea   : > { %v13384_v44 = vpack.c.bf16 %v4779_v25, %v4767_v0  ;;  %v4802_v53 = vsub.f32 %v12797_v28, %v15357_v61  ;;  %v4808_v1 = vsub.f32 %v12808_v47, %v15358_v50  ;;  %v15359_v46 = vand.u32 4294901760, %v12810_v48 }
 0x3eb   : > { %v4797_v49 = vand.u32 4294901760, %v4796_v12  ;;  %v4791_v59 = vand.u32 4294901760, %v4790_v14  ;;  %v15360_v18 = vand.u32 4294901760, %v12814_v3  ;;  %v15361_v4 = vand.u32 4294901760, %v12816_v27 }
 0x3ec   : > { %15788 = vst [vmem:[#allocation85_spill] sm:$0xff] %v13384_v44  ;;  %v4803_v7 = vand.u32 4294901760, %v4802_v53  ;;  %v15362_v25 = vand.u32 4294901760, %v12827_v56  ;;  %v4809_v63 = vand.u32 4294901760, %v4808_v1  ;;  %v4820_v61 = vsub.f32 %v12810_v48, %v15359_v46 }
 0x3ed   : > { %v13396_v0 = vpack.c.bf16 %v4797_v49, %v4785_v32  ;;  %v4814_v12 = vsub.f32 %v12814_v3, %v15360_v18  ;;  %v4826_v53 = vsub.f32 %v12816_v27, %v15361_v4  ;;  %v15363_v50 = vand.u32 4294901760, %v12829_v58 }
 0x3ee   : > { %v13404_v14 = vpack.c.bf16 %v4803_v7, %v4791_v59  ;;  %v4832_v32 = vsub.f32 %v12827_v56, %v15362_v25  ;;  %v4821_v49 = vand.u32 4294901760, %v4820_v61  ;;  %v15364_v46 = vand.u32 4294901760, %v12833_v62 }
 0x3ef   : > { %15789 = vst [vmem:[#allocation86_spill] sm:$0xff] %v13396_v0  ;;  %v4815_v1 = vand.u32 4294901760, %v4814_v12  ;;  %v4827_v0 = vand.u32 4294901760, %v4826_v53  ;;  %v15365_v44 = vand.u32 4294901760, %v12835_v37  ;;  %v15366_v7 = vand.u32 4294901760, %v13256_v52 }
 0x3f0   : > { %15790 = vst [vmem:[#allocation87_spill] sm:$0xff] %v13404_v14  ;;  %v13416_v59 = vpack.c.bf16 %v4821_v49, %v4809_v63  ;;  %v4833_v18 = vand.u32 4294901760, %v4832_v32  ;;  %v4844_v4 = vsub.f32 %v12829_v58, %v15363_v50  ;;  %v4838_v61 = vsub.f32 %v12833_v62, %v15364_v46 }
 0x3f1   : > { %v13424_v12 = vpack.c.bf16 %v4827_v0, %v4815_v1  ;;  %v4850_v53 = vsub.f32 %v12835_v37, %v15365_v44  ;;  %v4856_v63 = vsub.f32 %v13256_v52, %v15366_v7  ;;  %v15367_v25 = vand.u32 4294901760, %v13261_v51 }
 0x3f2   : > { %15791 = vst [vmem:[#allocation88_spill] sm:$0xff] %v13416_v59  ;;  %v4845_v49 = vand.u32 4294901760, %v4844_v4  ;;  %v4839_v32 = vand.u32 4294901760, %v4838_v61  ;;  %v15368_v50 = vand.u32 4294901760, %v13266_v19  ;;  %v15369_v46 = vand.u32 4294901760, %v13271_v26 }
 0x3f3   : > { %v4851_v59 = vand.u32 4294901760, %v4850_v53  ;;  %v4857_v14 = vand.u32 4294901760, %v4856_v63  ;;  %v4868_v44 = vsub.f32 %v13261_v51, %v15367_v25  ;;  %v15793_v61 = vand.u32 4294901760, %v13111_v23 }
 0x3f4   : > { %v13436_v1 = vpack.c.bf16 %v4845_v49, %v4833_v18  ;;  %v4862_v4 = vsub.f32 %v13266_v19, %v15368_v50  ;;  %v15794_v7 = vand.u32 4294901760, %v13113_v54  ;;  %v4874_v18 = vsub.f32 %v13271_v26, %v15369_v46 }
 0x3f5   : > { %v13450_v63 = vpack.c.bf16 %v4851_v59, %v4839_v32  ;;  %v15796_v49 = vand.u32 4294901760, %v13121_v21  ;;  %v15797_v25 = vand.u32 4294901760, %v13129_v2  ;;  %v15799_v50 = vand.u32 4294901760, %v13308_v24 }
 0x3f6   : > { %15792 = vst [vmem:[#allocation89_spill] sm:$0xff] %v13436_v1  ;;  %v13448_v53 = vpack.c.bf16 %v15794_v7, %v15793_v61  ;;  %v4869_v1 = vand.u32 4294901760, %v4868_v44  ;;  %v4863_v54 = vand.u32 4294901760, %v4862_v4  ;;  %v15373_v7 = vand.u32 4294901760, %v13313_v8 }
 0x3f7   : > { %v13459_v0 = vpack.c.bf16 %v15797_v25, %v15796_v49  ;;  %v4880_v23 = vsub.f32 %v13308_v24, %v15799_v50  ;;  %v15371_v59 = vand.u32 4294901760, %v13316_v17  ;;  %v4875_v32 = vand.u32 4294901760, %v4874_v18 }
 0x3f8   : > { %15795 = vst [vmem:[#allocation90_spill] sm:$0xff] %v13448_v53  ;;  %v15372_v46 = vand.u32 4294901760, %v13319_v29  ;;  %v15374_v21 = vand.u32 4294901760, %v13321_v42  ;;  %v13468_v53 = vpack.c.bf16 %v4869_v1, %v4857_v14  ;;  %v4892_v2 = vsub.f32 %v13313_v8, %v15373_v7 }
 0x3f9   : > { %15798 = vst [vmem:[#allocation91_spill] sm:$0xff] %v13459_v0  ;;  %v4881_v61 = vand.u32 4294901760, %v4880_v23  ;;  %v4886_v50 = vsub.f32 %v13316_v17, %v15371_v59  ;;  %v15800_v44 = vand.u32 4294901760, %v13156_v39  ;;  %v15801_v25 = vand.u32 4294901760, %v13158_v6 }
 0x3fa   : > { %v13482_v18 = vpack.c.bf16 %v4875_v32, %v4863_v54  ;;  %v4898_v14 = vsub.f32 %v13319_v29, %v15372_v46  ;;  %v15803_v1 = vand.u32 4294901760, %v13176_v55  ;;  %v15804_v49 = vand.u32 4294901760, %v13190_v34 }
 0x3fb   : > { %v13480_v4 = vpack.c.bf16 %v15801_v25, %v15800_v44  ;;  %v4904_v39 = vsub.f32 %v13321_v42, %v15374_v21  ;;  %v4893_v59 = vand.u32 4294901760, %v4892_v2  ;;  %v4887_v6 = vand.u32 4294901760, %v4886_v50  ;;  %v15806_v2 = vld [vmem:[#allocation63_spill] sm:$0xff] }
 0x3fc   : > { %v13491_v23 = vpack.c.bf16 %v15804_v49, %v15803_v1  ;;  %v15375_v44 = vand.u32 4294901760, %v13323_v35  ;;  %v15377_v54 = vand.u32 4294901760, %v13325_v5  ;;  %v4899_v32 = vand.u32 4294901760, %v4898_v14  ;;  %v15808_v1 = vld [vmem:[#allocation64_spill] sm:$0xff] }
 0x3fd   : > { %15802 = vst [vmem:[#allocation92_spill] sm:$0xff] %v13480_v4  ;;  %v4905_v25 = vand.u32 4294901760, %v4904_v39  ;;  %v15379_v46 = vand.u32 4294901760, %v13327_v15  ;;  %v13499_v7 = vpack.c.bf16 %v4893_v59, %v4881_v61  ;;  %v15807_v50 = vand.u32 4294901760, %v15806_v2 }
 0x3fe   : > { %15805 = vst [vmem:[#allocation93_spill] sm:$0xff] %v13491_v23  ;;  %v4916_v55 = vsub.f32 %v13323_v35, %v15375_v44  ;;  %v4910_v34 = vsub.f32 %v13325_v5, %v15377_v54  ;;  %v15809_v49 = vand.u32 4294901760, %v15808_v1  ;;  %v13513_v14 = vpack.c.bf16 %v4899_v32, %v4887_v6 }
 0x3ff   : > { %v4922_v59 = vsub.f32 %v13327_v15, %v15379_v46  ;;  %v15811_v61 = vand.u32 4294901760, %v13249_v30  ;;  %v15812_v39 = vand.u32 4294901760, %v13251_v11  ;;  %v15830_v29 = vmov 0.0  }
 0x400   : > { %v13511_v21 = vpack.c.bf16 %v15809_v49, %v15807_v50  ;;  %v4917_v23 = vand.u32 4294901760, %v4916_v55  ;;  %v4911_v54 = vand.u32 4294901760, %v4910_v34 }
 0x401   : > { %v13522_v44 = vpack.c.bf16 %v15812_v39, %v15811_v61  ;;  %v4923_v4 = vand.u32 4294901760, %v4922_v59  ;;  %v15817_v59 = vld [vmem:[#allocation66_spill] sm:$0xff] }
 0x402   : > { %15810 = vst [vmem:[#allocation63_spill] sm:$0xff] %v13511_v21  ;;  %v13526_v50 = vpack.c.bf16 %v4917_v23, %v4905_v25 }
 0x403   : > { %15813 = vst [vmem:[#allocation64_spill] sm:$0xff] %v13522_v44  ;;  %v13530_v32 = vpack.c.bf16 %v4923_v4, %v4911_v54  ;;  %v15814_v54 = vld [vmem:[#allocation57_spill] sm:$0xff] }
 0x492   : > { %v4531_v4 = vpop.f32.mrb[2].mxu1 }
 0x493   : > { %v11252_v25 = vadd.f32 %v4531_v4, %v15814_v54  ;;  %v10029_v23 = vpop.f32.mrb[3].mxu1 }
 0x495   : > { %v13561_v1 = vand.u32 4294901760, %v11252_v25  ;;  %v7758_v11 = vrot.slane %v11252_v25, 2  ;;  %v5651_v4 = vrot.slane %v11252_v25, 1 }
 0x496   : > { %v4537_v34 = vpop.f32.mrb[4].mxu1 }
 0x497   : > { %15815 = vst [vmem:[#allocation57_spill] sm:$0xff] %v13561_v1  ;;  %v13564_v49 = vsub.f32 %v11252_v25, %v13561_v1  ;;  %v13567_v55 = vadd.f32 %v4537_v34, %v15817_v59  ;;  %v10032_v61 = vpop.f32.mrb[5].mxu1 }
 0x499   : > { %15816 = vst [vmem:[#allocation94_spill] sm:$0xff] %v13564_v49  ;;  %v15390_v39 = vand.u32 4294901760, %v13564_v49  ;;  %v13571_v30 = vand.u32 4294901760, %v13567_v55  ;;  %v5652_v46 = vrot.slane %v13567_v55, 1  ;;  %v15391_v23 = vrot.slane %v13567_v55, 2 }
 0x49a   : > { %v4543_v54 = vpop.f32.mrb[6].mxu1 }
 0x49b   : > { %15818 = vst [vmem:[#allocation66_spill] sm:$0xff] %v13571_v30  ;;  %v13577_v6 = vsub.f32 %v13567_v55, %v13571_v30  ;;  %v13582_v34 = vsel %vm2662_vm4, %v7758_v11, %v15391_v23  ;;  %v13585_v59 = vadd.f32 %v4543_v54, %v13284_v13  ;;  %v10035_v61 = vpop.f32.mrb[7].mxu1  ;;  %v4692_v2 = vsub.f32 %v13564_v49, %v15390_v39  ;;  %v15826_v23 = vld [vmem:[#allocation18_spill] sm:$0xff] }
 0x49c   : > { %15820 = vst [vmem:[#allocation96_spill] sm:$0xff] %v13582_v34  ;;  %v5653_v25 = vsel %vm1468_vm3, %v5651_v4, %v5652_v46  ;;  %v15824_v4 = vld [vmem:[#allocation17_spill] sm:$0xff]  ;;  %v15827_v34 = vand.u32 4294901760, %v15826_v23 }
 0x49d   : > { %15819 = vst [vmem:[#allocation95_spill] sm:$0xff] %v13577_v6  ;;  %v13592_v5 = vand.u32 4294901760, %v13585_v59  ;;  %v5654_v15 = vrot.slane %v13585_v59, 1  ;;  %v4693_v42 = vand.u32 4294901760, %v4692_v2  ;;  %v13595_v17 = vand.u32 4294901760, %v5653_v25 }
 0x49e   : > { %v4549_v35 = vpop.f32.mrb[8].mxu1  ;;  %v15825_v39 = vand.u32 4294901760, %v15824_v4  ;;  %v15834_v4 = vld [vmem:[#allocation20_spill] sm:$0xff] }
 0x49f   : > { %15821 = vst [vmem:[#allocation97_spill] sm:$0xff] %v13592_v5  ;;  %15822 = vst [vmem:[#allocation98_spill] sm:$0xff] %v13595_v17  ;;  %v13600_v13 = vsub.f32 %v13585_v59, %v13592_v5  ;;  %v13603_v54 = vadd.f32 %v4549_v35, %v13331_v10  ;;  %v10038_v61 = vpop.f32.mrb[9].mxu1  ;;  %4694 = vmatmul.mubr.f32.vlgmr.msra.gmra.mrb[18].mxu0 %v4693_v42  ;;  %v5655_v2 = vsel %vm1468_vm3, %v5652_v46, %v5654_v15  ;;  %v15832_v42 = vld [vmem:[#allocation19_spill] sm:$0xff] }
 0x4a0   : > { %v13609_v49 = vpack.c.bf16 %v15827_v34, %v15825_v39  ;;  %10515 = vmatpush1.bf16.msra.mxu0 %v13364_v36  ;;  %v13614_v11 = vsub.f32 %v5653_v25, %v13595_v17  ;;  %4699 = vmatprep.mubr.f32.mxu0 %v15830_v29  ;;  %v15831_v35 = vand.u32 4294901760, %v13577_v6  ;;  %v15833_v61 = vand.u32 4294901760, %v15832_v42 }
 0x4a1   : > { %15823 = vst [vmem:[#allocation99_spill] sm:$0xff] %v13600_v13  ;;  %v15835_v24 = vand.u32 4294901760, %v15834_v4  ;;  %v13626_v39 = vand.u32 4294901760, %v5655_v2  ;;  %v13629_v46 = vand.u32 4294901760, %v13603_v54  ;;  %v5656_v36 = vrot.slane %v13603_v54, 1  ;;  %10517 = vmatprep.subr.bf16.mxu0 %v13376_v45  ;;  %v15842_v4 = vld [vmem:[#allocation22_spill] sm:$0xff] }
 0x4a2   : > { %15828 = vst [vmem:[#allocation17_spill] sm:$0xff] %v13609_v49  ;;  %15829 = vst [vmem:[#allocation18_spill] sm:$0xff] %v13614_v11  ;;  %v4703_v10 = vsub.f32 %v13577_v6, %v15831_v35  ;;  %7240 = vmatmul.mubr.f32.vlgmr.msra.gmra.mrb[12].mxu1 %v13614_v11  ;;  %v4555_v25 = vpop.f32.mrb[10].mxu1  ;;  %v15843_v6 = vand.u32 4294901760, %v15842_v4  ;;  %v15849_v4 = vld [vmem:[#allocation24_spill] sm:$0xff] }
 0x4a3   : > { %v13624_v23 = vpack.c.bf16 %v15835_v24, %v15833_v61  ;;  %15837 = vst [vmem:[#allocation20_spill] sm:$0xff] %v13626_v39  ;;  %15838 = vst [vmem:[#allocation100_spill] sm:$0xff] %v13629_v46  ;;  %v13636_v42 = vsub.f32 %v5655_v2, %v13626_v39  ;;  %v15840_v24 = vld [vmem:[#allocation21_spill] sm:$0xff]  ;;  %v13646_v8 = vsub.f32 %v13603_v54, %v13629_v46  ;;  %10963 = vmatpush1.bf16.msra.mxu1 %v13609_v49  ;;  %v10041_v34 = vpop.f32.mrb[11].mxu1 }
 0x4a4   : > { %v4704_v35 = vand.u32 4294901760, %v4703_v10  ;;  %v15841_v61 = vand.u32 4294901760, %v15840_v24  ;;  %v11256_v45 = vadd.f32 %v4555_v25, %v13356_v22  ;;  %7245 = vmatprep.mubr.f32.mxu1 %v15830_v29  ;;  %v15846_v2 = vand.u32 4294901760, %v13600_v13  ;;  %v15852_v49 = vld [vmem:[#allocation85_spill] sm:$0xff] }
 0x4a5   : > { %15836 = vst [vmem:[#allocation19_spill] sm:$0xff] %v13624_v23  ;;  %15839 = vst [vmem:[#allocation101_spill] sm:$0xff] %v13636_v42  ;;  %v7763_v24 = vrot.slane %v13603_v54, 2  ;;  %10965 = vmatprep.subr.bf16.mxu1 %v13624_v23  ;;  %v15850_v39 = vand.u32 4294901760, %v15849_v4  ;;  %v5657_v22 = vsel %vm1468_vm3, %v5654_v15, %v5656_v36  ;;  %10519 = vmatpush1.bf16.msra.mxu0 %v15852_v49  ;;  %v15854_v54 = vld [vmem:[#allocation86_spill] sm:$0xff]  ;;  %v15857_v4 = vld [vmem:[#allocation28_spill] sm:$0xff] }
 0x4a6   : > { %v13642_v17 = vpack.c.bf16 %v15843_v6, %v15841_v61  ;;  %15845 = vst [vmem:[#allocation22_spill] sm:$0xff] %v13646_v8  ;;  %v4714_v10 = vsub.f32 %v13600_v13, %v15846_v2  ;;  %4705 = vmatmul.mubr.f32.gmra.mrb[20].mxu0 %v4704_v35  ;;  %v15847_v6 = vld [vmem:[#allocation23_spill] sm:$0xff]  ;;  %v5658_v34 = vrot.slane %v11256_v45, 1  ;;  %v7765_v25 = vrot.slane %v11256_v45, 2  ;;  %7248 = vmatmul.mubr.f32.gmra.mrb[14].mxu1 %v13636_v42 }
 0x4a7   : > { %v15848_v61 = vand.u32 4294901760, %v15847_v6  ;;  %4710 = vmatprep.mubr.f32.mxu0 %v15830_v29  ;;  %v13665_v13 = vand.u32 4294901760, %v5657_v22  ;;  %10521 = vmatprep.subr.bf16.mxu0 %v15854_v54  ;;  %v15855_v35 = vld [vmem:[#allocation27_spill] sm:$0xff]  ;;  %v15414_v15 = vand.u32 4294901760, %v13646_v8  ;;  %v7761_v54 = vrot.slane %v13585_v59, 2  ;;  %v15869_v59 = vld [vmem:[#allocation88_spill] sm:$0xff] }
 0x4a8   : > { %15844 = vst [vmem:[#allocation21_spill] sm:$0xff] %v13642_v17  ;;  %v4715_v2 = vand.u32 4294901760, %v4714_v10  ;;  %v15856_v6 = vand.u32 4294901760, %v15855_v35  ;;  %v5659_v45 = vsel %vm1468_vm3, %v5656_v36, %v5658_v34  ;;  %v13678_v49 = vsel %vm2662_vm4, %v7763_v24, %v7765_v25  ;;  %10967 = vmatpush1.bf16.msra.mxu1 %v13642_v17  ;;  %7253 = vmatprep.mubr.f32.mxu1 %v15830_v29  ;;  %v15863_v34 = vld [vmem:[#allocation31_spill] sm:$0xff] }
 0x4a9   : > { %v13660_v19 = vpack.c.bf16 %v15850_v39, %v15848_v61  ;;  %15853 = vst [vmem:[#allocation24_spill] sm:$0xff] %v13665_v13  ;;  %v15858_v39 = vand.u32 4294901760, %v15857_v4  ;;  %15860 = vst [vmem:[#allocation86_spill] sm:$0xff] %v13678_v49  ;;  %v13683_v10 = vsub.f32 %v5657_v22, %v13665_v13  ;;  %v13686_v35 = vand.u32 4294901760, %v5659_v45  ;;  %v15868_v49 = vld [vmem:[#allocation87_spill] sm:$0xff] }
 0x4aa   : > { %4716 = vmatmul.mubr.f32.gmra.mrb[22].mxu0 %v4715_v2  ;;  %v4725_v36 = vsub.f32 %v13646_v8, %v15414_v15  ;;  %v15864_v25 = vand.u32 4294901760, %v15863_v34  ;;  %v15871_v34 = vld [vmem:[#allocation37_spill] sm:$0xff] }
 0x4ab   : > { %15851 = vst [vmem:[#allocation23_spill] sm:$0xff] %v13660_v19  ;;  %v13673_v61 = vpack.c.bf16 %v15858_v39, %v15856_v6  ;;  %15861 = vst [vmem:[#allocation27_spill] sm:$0xff] %v13683_v10  ;;  %10969 = vmatprep.subr.bf16.mxu1 %v13660_v19  ;;  %v15865_v6 = vld [vmem:[#allocation32_spill] sm:$0xff]  ;;  %10523 = vmatpush1.bf16.msra.mxu0 %v15868_v49  ;;  %v13703_v2 = vsub.f32 %v5659_v45, %v13686_v35  ;;  %v15876_v49 = vld [vmem:[#allocation39_spill] sm:$0xff]  ;;  %v15881_v45 = vrot.slane %v13567_v55, 2 }
 0x4ac   : > { %15862 = vst [vmem:[#allocation28_spill] sm:$0xff] %v13686_v35  ;;  %v15866_v4 = vand.u32 4294901760, %v15865_v6  ;;  %4721 = vmatprep.mubr.f32.mxu0 %v15830_v29  ;;  %7256 = vmatmul.mubr.f32.gmra.mrb[16].mxu1 %v13683_v10  ;;  %v4726_v22 = vand.u32 4294901760, %v4725_v36  ;;  %v15872_v6 = vand.u32 4294901760, %v15871_v34  ;;  %v15877_v8 = vand.u32 4294901760, %v15876_v49  ;;  %v15884_v34 = vld [vmem:[#allocation45_spill] sm:$0xff] }
 0x4ad   : > { %15859 = vst [vmem:[#allocation85_spill] sm:$0xff] %v13673_v61  ;;  %10525 = vmatprep.subr.bf16.mxu0 %v15869_v59  ;;  %15870 = vst [vmem:[#allocation32_spill] sm:$0xff] %v13703_v2  ;;  %10971 = vmatpush1.bf16.msra.mxu1 %v13673_v61  ;;  %v15878_v59 = vld [vmem:[#allocation40_spill] sm:$0xff]  ;;  %v13723_v35 = vsel %vm2662_vm4, %v15881_v45, %v7761_v54  ;;  %v15890_v55 = vld [vmem:[#allocation90_spill] sm:$0xff] }
 0x4ae   : > { %v13696_v39 = vpack.c.bf16 %v15866_v4, %v15864_v25  ;;  %7261 = vmatprep.mubr.f32.mxu1 %v15830_v29  ;;  %v15873_v25 = vld [vmem:[#allocation38_spill] sm:$0xff]  ;;  %4727 = vmatmul.mubr.f32.gmra.mrb[24].mxu0 %v4726_v22  ;;  %v15879_v36 = vand.u32 4294901760, %v15878_v59  ;;  %15882 = vst [vmem:[#allocation37_spill] sm:$0xff] %v13723_v35  ;;  %v15883_v22 = vld [vmem:[#allocation89_spill] sm:$0xff]  ;;  %v15891_v49 = vld [vmem:[#allocation92_spill] sm:$0xff] }
 0x4af   : > { %v15874_v4 = vand.u32 4294901760, %v15873_v25  ;;  %10527 = vmatpush1.bf16.msra.mxu0 %v13424_v12  ;;  %4957 = vmatprep.mubr.f32.mxu0 %v15830_v29  ;;  %v15886_v25 = vld [vmem:[#allocation46_spill] sm:$0xff]  ;;  %v13740_v12 = vsel %vm2662_vm4, %v7761_v54, %v7763_v24  ;;  %v15892_v59 = vld [vmem:[#allocation15_spill] sm:$0xff]  ;;  %v15895_v24 = vld [vmem:[#allocation25_spill] sm:$0xff] }
 0x4b0   : > { %15867 = vst [vmem:[#allocation31_spill] sm:$0xff] %v13696_v39  ;;  %10973 = vmatprep.subr.bf16.mxu1 %v13696_v39  ;;  %v13718_v13 = vpack.c.bf16 %v15879_v36, %v15877_v8  ;;  %7264 = vmatmul.mubr.f32.gmra.mrb[18].mxu1 %v13703_v2  ;;  %v15887_v8 = vand.u32 4294901760, %v15886_v25  ;;  %15889 = vst [vmem:[#allocation39_spill] sm:$0xff] %v13740_v12  ;;  %v15424_v36 = vand.u32 4294901760, %v15892_v59  ;;  %v15431_v54 = vand.u32 4294901760, %v15895_v24  ;;  %v15898_v25 = vld [vmem:[#allocation30_spill] sm:$0xff] }
 0x4b1   : > { %v13711_v15 = vpack.c.bf16 %v15874_v4, %v15872_v6  ;;  %10529 = vmatprep.subr.bf16.mxu0 %v15883_v22  ;;  %v15885_v6 = vand.u32 4294901760, %v15884_v34  ;;  %7366 = vmatprep.mubr.f32.mxu1 %v15830_v29  ;;  %v15896_v22 = vld [vmem:[#allocation26_spill] sm:$0xff]  ;;  %v15897_v34 = vld [vmem:[#allocation29_spill] sm:$0xff]  ;;  %v15904_v12 = vld [vmem:[#allocation35_spill] sm:$0xff]  ;;  %v13801_v24 = vand.u32 4294901760, %v13636_v42 }
 0x4b2   : > { %15880 = vst [vmem:[#allocation88_spill] sm:$0xff] %v13718_v13  ;;  %v15900_v59 = vld [vmem:[#allocation33_spill] sm:$0xff]  ;;  %v15905_v35 = vld [vmem:[#allocation36_spill] sm:$0xff]  ;;  %v15923_v42 = vld [vmem:[#allocation50_spill] sm:$0xff] }
 0x4b3   : > { %15875 = vst [vmem:[#allocation87_spill] sm:$0xff] %v13711_v15  ;;  %10975 = vmatpush1.bf16.msra.mxu1 %v13711_v15  ;;  %v13734_v4 = vpack.c.bf16 %v15887_v8, %v15885_v6  ;;  %10531 = vmatpush1.bf16.msra.mxu0 %v13450_v63  ;;  %v15893_v63 = vld [vmem:[#allocation16_spill] sm:$0xff]  ;;  %v15430_v6 = vand.u32 4294901760, %v15897_v34  ;;  %v13776_v8 = vand.u32 4294901760, %v13614_v11  ;;  %15910 = vst [vmem:[#allocation89_spill] sm:$0xff] %v13801_v24  ;;  %v15913_v34 = vld [vmem:[#allocation43_spill] sm:$0xff] }
 0x4b4   : > { %10977 = vmatprep.subr.bf16.mxu1 %v13718_v13  ;;  %10533 = vmatprep.subr.bf16.mxu0 %v13468_v53  ;;  %v15423_v45 = vand.u32 4294901760, %v15893_v63  ;;  %v15894_v53 = vld [vmem:[#allocation93_spill] sm:$0xff]  ;;  %v15439_v63 = vand.u32 4294901760, %v15900_v59  ;;  %v15914_v11 = vld [vmem:[#allocation44_spill] sm:$0xff]  ;;  %v13826_v59 = vand.u32 4294901760, %v13683_v10  ;;  %v15932_v10 = vld [vmem:[#allocation54_spill] sm:$0xff] }
 0x4b5   : > { %15888 = vst [vmem:[#allocation38_spill] sm:$0xff] %v13734_v4  ;;  %15902 = vst [vmem:[#allocation40_spill] sm:$0xff] %v13776_v8 }
 0x4b6   : > { %15919 = vst [vmem:[#allocation45_spill] sm:$0xff] %v13826_v59 }
 0x4b7   : > { %10979 = vmatpush1.bf16.msra.mxu1 %v13734_v4  ;;  %10535 = vmatpush1.bf16.msra.mxu0 %v13482_v18  ;;  %v15429_v18 = vand.u32 4294901760, %v15896_v22  ;;  %v15909_v22 = vld [vmem:[#allocation42_spill] sm:$0xff] }
 0x4b8   : > { %10981 = vmatprep.subr.bf16.mxu1 %v15890_v55  ;;  %10537 = vmatprep.subr.bf16.mxu0 %v13499_v7  ;;  %v10992_v7 = vpack.c.bf16 %v15423_v45, %v15424_v36  ;;  %v15901_v45 = vld [vmem:[#allocation34_spill] sm:$0xff] }
 0x4b9   : > { %v15438_v36 = vand.u32 4294901760, %v15901_v45  ;;  %v15918_v45 = vld [vmem:[#allocation48_spill] sm:$0xff] }
 0x4bb   : > { %10983 = vmatpush1.bf16.msra.mxu1 %v13459_v0  ;;  %10539 = vmatpush1.bf16.msra.mxu0 %v13513_v14  ;;  %v15899_v14 = vpack.c.bf16 %v12734_v60, %v12732_v33 }
 0x4bc   : > { %10985 = vmatprep.subr.bf16.mxu1 %v15891_v49  ;;  %10541 = vmatprep.subr.bf16.mxu0 %v13526_v50  ;;  %v10994_v50 = vpack.c.bf16 %v15429_v18, %v15431_v54  ;;  %v15906_v18 = vpack.c.bf16 %v12743_v38, %v12736_v43 }
 0x4bf   : > { %10987 = vmatpush1.bf16.msra.mxu1 %v15894_v53  ;;  %10543 = vmatpush1.bf16.msra.mxu0 %v13530_v32  ;;  %v15903_v32 = vand.u32 4294901760, %v15898_v25 }
 0x4c0   : > { %10989 = vmatprep.subr.bf16.mxu1 %v13511_v21  ;;  %10545 = vmatprep.subr.bf16.mxu0 %v15899_v14 }
 0x4c1   : > { %v10996_v14 = vpack.c.bf16 %v15903_v32, %v15430_v6  ;;  %v10998_v32 = vpack.c.bf16 %v15438_v36, %v15439_v63  ;;  %v15908_v6 = vld [vmem:[#allocation41_spill] sm:$0xff]  ;;  %v15915_v36 = vpack.c.bf16 %v12769_v31, %v12767_v20 }
 0x4c2   : > { %4959 = vmatmul.mubr.f32.vlgmr.msra.gmra.mrb[18].mxu0 %v13561_v1  ;;  %v15447_v54 = vand.u32 4294901760, %v15908_v6  ;;  %v13851_v6 = vand.u32 4294901760, %v13703_v2  ;;  %v15939_v2 = vld [vmem:[#allocation60_spill] sm:$0xff] }
 0x4c3   : > { %10991 = vmatpush1.bf16.msra.mxu1 %v13522_v44  ;;  %10547 = vmatpush1.bf16.msra.mxu0 %v15906_v18  ;;  %v15446_v18 = vand.u32 4294901760, %v15909_v22  ;;  %v15927_v22 = vld [vmem:[#allocation52_spill] sm:$0xff] }
 0x4c4   : > { %10993 = vmatprep.subr.bf16.mxu1 %v10992_v7  ;;  %4964 = vmatprep.mubr.f32.mxu0 %v15830_v29  ;;  %v15907_v7 = vpack.c.bf16 %v12763_v57, %v12760_v16  ;;  %15928 = vst [vmem:[#allocation46_spill] sm:$0xff] %v13851_v6 }
 0x4c6   : > { %7370 = vmatmul.mubr.f32.vlgmr.msra.gmra.mrb[12].mxu1 %v13776_v8  ;;  %10549 = vmatprep.subr.bf16.mxu0 %v15907_v7  ;;  %v15911_v7 = vand.u32 4294901760, %v15904_v12  ;;  %v15922_v12 = vld [vmem:[#allocation49_spill] sm:$0xff]  ;;  %v15959_v8 = vld [vmem:[#allocation78_spill] sm:$0xff] }
 0x4c7   : > { %10995 = vmatpush1.bf16.msra.mxu1 %v10994_v50  ;;  %7375 = vmatprep.mubr.f32.mxu1 %v15830_v29  ;;  %v15912_v50 = vand.u32 4294901760, %v15905_v35 }
 0x4c8   : > { %4966 = vmatmul.mubr.f32.gmra.mrb[20].mxu0 %v13571_v30  ;;  %10997 = vmatprep.subr.bf16.mxu1 %v10996_v14  ;;  %v15916_v14 = vpack.c.bf16 %v12786_v9, %v12784_v41 }
 0x4c9   : > { %v11000_v25 = vpack.c.bf16 %v15912_v50, %v15911_v7  ;;  %10551 = vmatpush1.bf16.msra.mxu0 %v15915_v36  ;;  %4971 = vmatprep.mubr.f32.mxu0 %v15830_v29  ;;  %v11002_v7 = vpack.c.bf16 %v15446_v18, %v15447_v54  ;;  %v15917_v50 = vld [vmem:[#allocation47_spill] sm:$0xff]  ;;  %v15454_v36 = vand.u32 4294901760, %v15918_v45  ;;  %v15924_v18 = vpack.c.bf16 %v12797_v28, %v12793_v40 }
 0x4ca   : > { %7379 = vmatmul.mubr.f32.gmra.mrb[14].mxu1 %v13801_v24  ;;  %10553 = vmatprep.subr.bf16.mxu0 %v15916_v14  ;;  %v15455_v63 = vand.u32 4294901760, %v15917_v50  ;;  %v15920_v14 = vand.u32 4294901760, %v15913_v34  ;;  %v15931_v34 = vld [vmem:[#allocation53_spill] sm:$0xff]  ;;  %v15936_v45 = vld [vmem:[#allocation59_spill] sm:$0xff] }
 0x4cb   : > { %10999 = vmatpush1.bf16.msra.mxu1 %v10998_v32  ;;  %7384 = vmatprep.mubr.f32.mxu1 %v15830_v29  ;;  %v15921_v32 = vand.u32 4294901760, %v15914_v11  ;;  %v15472_v50 = vand.u32 4294901760, %v15936_v45  ;;  %v15951_v45 = vld [vmem:[#allocation77_spill] sm:$0xff]  ;;  %v15958_v24 = vld [vmem:[#allocation79_spill] sm:$0xff] }
 0x4cc   : > { %4973 = vmatmul.mubr.f32.gmra.mrb[22].mxu0 %v13592_v5  ;;  %11001 = vmatprep.subr.bf16.mxu1 %v11000_v25  ;;  %v15925_v25 = vpack.c.bf16 %v12810_v48, %v12808_v47  ;;  %v7728_v5 = vld [vmem:[#allocation2 + $0x310] sm:$0xff] }
 0x4cd   : > { %v11004_v35 = vpack.c.bf16 %v15921_v32, %v15920_v14  ;;  %10555 = vmatpush1.bf16.msra.mxu0 %v15924_v18  ;;  %4978 = vmatprep.mubr.f32.mxu0 %v15830_v29  ;;  %v11006_v14 = vpack.c.bf16 %v15454_v36, %v15455_v63  ;;  %v15926_v32 = vld [vmem:[#allocation51_spill] sm:$0xff]  ;;  %v15463_v18 = vand.u32 4294901760, %v15927_v22  ;;  %v15933_v36 = vpack.c.bf16 %v12816_v27, %v12814_v3 }
 0x4ce   : > { %7388 = vmatmul.mubr.f32.gmra.mrb[16].mxu1 %v13826_v59  ;;  %10557 = vmatprep.subr.bf16.mxu0 %v15925_v25  ;;  %v15464_v54 = vand.u32 4294901760, %v15926_v32  ;;  %v15929_v25 = vand.u32 4294901760, %v15922_v12  ;;  %v15941_v22 = vpack.c.bf16 %v12835_v37, %v12833_v62  ;;  %v15948_v59 = vld [vmem:[#allocation70_spill] sm:$0xff] }
 0x4cf   : > { %11003 = vmatpush1.bf16.msra.mxu1 %v11002_v7  ;;  %7393 = vmatprep.mubr.f32.mxu1 %v15830_v29  ;;  %v15930_v7 = vand.u32 4294901760, %v15923_v42  ;;  %v15938_v42 = vand.u32 4294901760, %v15932_v10 }
 0x4d0   : > { %4980 = vmatmul.mubr.f32.gmra.mrb[24].mxu0 %v13629_v46  ;;  %11005 = vmatprep.subr.bf16.mxu1 %v11004_v35  ;;  %v15934_v35 = vpack.c.bf16 %v12829_v58, %v12827_v56  ;;  %v15960_v46 = vpack.c.bf16 %v15958_v24, %v15959_v8  ;;  %v7734_v8 = vld [vmem:[#allocation2 + $0x340] sm:$0xff] }
 0x4d1   : > { %v11008_v11 = vpack.c.bf16 %v15930_v7, %v15929_v25  ;;  %10559 = vmatpush1.bf16.msra.mxu0 %v15933_v36  ;;  %5114 = vmatprep.mubr.f32.mxu0 %v15830_v29  ;;  %v11010_v25 = vpack.c.bf16 %v15463_v18, %v15464_v54  ;;  %v15935_v7 = vld [vmem:[#allocation56_spill] sm:$0xff]  ;;  %v15937_v36 = vand.u32 4294901760, %v15931_v34  ;;  %v15942_v18 = vpack.c.bf16 %v13261_v51, %v13256_v52  ;;  %v15943_v54 = vld [vmem:[#allocation67_spill] sm:$0xff]  ;;  %v15947_v34 = vld [vmem:[#allocation69_spill] sm:$0xff] }
 0x4d2   : > { %7397 = vmatmul.mubr.f32.gmra.mrb[18].mxu1 %v13851_v6  ;;  %10561 = vmatprep.subr.bf16.mxu0 %v15934_v35  ;;  %v15473_v63 = vand.u32 4294901760, %v15935_v7  ;;  %v15945_v6 = vand.u32 4294901760, %v15939_v2  ;;  %v15957_v2 = vand.u32 4294901760, %v15948_v59  ;;  %v15970_v59 = vld [vmem:[#allocation6_spill] sm:$0xff] }
 0x4d3   : > { %11007 = vmatpush1.bf16.msra.mxu1 %v11006_v14  ;;  %7563 = vmatprep.mubr.f32.mxu1 %v15830_v29  ;;  %v11012_v12 = vpack.c.bf16 %v15938_v42, %v15937_v36  ;;  %v15940_v14 = vld [vmem:[#allocation61_spill] sm:$0xff]  ;;  %v15484_v42 = vand.u32 4294901760, %v15943_v54  ;;  %v15944_v36 = vld [vmem:[#allocation68_spill] sm:$0xff] }
 0x4d4   : > { %11009 = vmatprep.subr.bf16.mxu1 %v11008_v11  ;;  %v11014_v11 = vpack.c.bf16 %v15472_v50, %v15473_v63  ;;  %v15483_v35 = vand.u32 4294901760, %v15944_v36  ;;  %v15946_v10 = vand.u32 4294901760, %v15940_v14  ;;  %v15952_v50 = vld [vmem:[#allocation76_spill] sm:$0xff]  ;;  %v15954_v14 = vld [vmem:[#allocation74_spill] sm:$0xff] }
 0x4d5   : > { %10563 = vmatpush1.bf16.msra.mxu0 %v15941_v22  ;;  %v15953_v63 = vpack.c.bf16 %v15951_v45, %v15952_v50  ;;  %v15980_v36 = vld [vmem:[#allocation24_spill] sm:$0xff]  ;;  %v16004_v45 = vand.u32 4294901760, %v12767_v20  ;;  %v16005_v50 = vand.u32 4294901760, %v12769_v31 }
 0x4d6   : > { %10565 = vmatprep.subr.bf16.mxu0 %v15942_v18  ;;  %v11016_v22 = vpack.c.bf16 %v15946_v10, %v15945_v6  ;;  %v15488_v10 = vand.u32 4294901760, %v15954_v14  ;;  %v15955_v6 = vld [vmem:[#allocation75_spill] sm:$0xff]  ;;  %v15956_v18 = vand.u32 4294901760, %v15947_v34  ;;  %v15979_v14 = vld [vmem:[#allocation10_spill] sm:$0xff] }
 0x4d7   : > { %11011 = vmatpush1.bf16.msra.mxu1 %v11010_v25  ;;  %v15949_v25 = vld [vmem:[#allocation71_spill] sm:$0xff]  ;;  %v15487_v32 = vand.u32 4294901760, %v15955_v6 }
 0x4d8   : > { %11013 = vmatprep.subr.bf16.mxu1 %v11012_v12  ;;  %v15950_v7 = vpack.c.bf16 %v13271_v26, %v15949_v25  ;;  %v11018_v12 = vpack.c.bf16 %v15483_v35, %v15484_v42  ;;  %v15965_v42 = vld [vmem:[#allocation82_spill] sm:$0xff]  ;;  %v15978_v6 = vld [vmem:[#allocation99_spill] sm:$0xff] }
 0x4d9   : > { %v11022_v35 = vpack.c.bf16 %v15487_v32, %v15488_v10  ;;  %v15976_v32 = vld [vmem:[#allocation20_spill] sm:$0xff]  ;;  %v15977_v10 = vld [vmem:[#allocation9_spill] sm:$0xff] }
 0x4da   : > { %10567 = vmatpush1.bf16.msra.mxu0 %v15950_v7  ;;  %v11020_v7 = vpack.c.bf16 %v15957_v2, %v15956_v18  ;;  %v15967_v2 = vld [vmem:[#allocation5_spill] sm:$0xff]  ;;  %v15968_v18 = vld [vmem:[#allocation94_spill] sm:$0xff] }
 0x4db   : > { %10569 = vmatprep.subr.bf16.mxu0 %v15953_v63  ;;  %11015 = vmatpush1.bf16.msra.mxu1 %v11014_v11  ;;  %v15961_v63 = vld [vmem:[#allocation81_spill] sm:$0xff]  ;;  %v15962_v11 = vld [vmem:[#allocation80_spill] sm:$0xff] }
 0x4dc   : > { %11017 = vmatprep.subr.bf16.mxu1 %v11016_v22  ;;  %v15963_v54 = vpack.c.bf16 %v15961_v63, %v15962_v11  ;;  %v15964_v22 = vld [vmem:[#allocation83_spill] sm:$0xff]  ;;  %v7735_v11 = vld [vmem:[#allocation2 + $0x348] sm:$0xff] }
 0x4dd   : > { %v15966_v34 = vpack.c.bf16 %v15964_v22, %v15965_v42 }
 0x4de   : > { %10571 = vmatpush1.bf16.msra.mxu0 %v15960_v46  ;;  %v15969_v46 = vld [vmem:[#allocation84_spill] sm:$0xff] }
 0x4df   : > { %10573 = vmatprep.subr.bf16.mxu0 %v15963_v54  ;;  %11019 = vmatpush1.bf16.msra.mxu1 %v11018_v12  ;;  %v15971_v54 = vld [vmem:[#allocation98_spill] sm:$0xff]  ;;  %v15972_v12 = vld [vmem:[#allocation7_spill] sm:$0xff] }
 0x4e0   : > { %11021 = vmatprep.subr.bf16.mxu1 %v11020_v7  ;;  %v15973_v7 = vld [vmem:[#allocation17_spill] sm:$0xff] }
 0x4e2   : > { %10575 = vmatpush1.bf16.msra.mxu0 %v15966_v34  ;;  %v15974_v34 = vld [vmem:[#allocation95_spill] sm:$0xff] }
 0x4e3   : > { %10577 = vmatprep.subr.bf16.mxu0 %v15967_v2  ;;  %11023 = vmatpush1.bf16.msra.mxu1 %v11022_v35  ;;  %v15975_v35 = vld [vmem:[#allocation8_spill] sm:$0xff]  ;;  %v15994_v2 = vand.u32 4294901760, %v12743_v38 }
 0x4e4   : > { %11025 = vmatprep.subr.bf16.mxu1 %v15969_v46  ;;  %v15985_v46 = vld [vmem:[#allocation13_spill] sm:$0xff] }
 0x4e5   : > { %5117 = vmatmul.mubr.f32.vlgmr.msra.gmra.mrb[18].mxu0 %v15968_v18 }
 0x4e6   : > { %10579 = vmatpush1.bf16.msra.mxu0 %v15970_v59  ;;  %5122 = vmatprep.mubr.f32.mxu0 %v15830_v29  ;;  %v7732_v59 = vld [vmem:[#allocation2 + $0x330] sm:$0xff] }
 0x4e7   : > { %7565 = vmatmul.mubr.f32.vlgmr.msra.gmra.mrb[12].mxu1 %v15971_v54  ;;  %10581 = vmatprep.subr.bf16.mxu0 %v15972_v12  ;;  %v7731_v12 = vld [vmem:[#allocation2 + $0x328] sm:$0xff] }
 0x4e8   : > { %11027 = vmatpush1.bf16.msra.mxu1 %v15973_v7  ;;  %7570 = vmatprep.mubr.f32.mxu1 %v15830_v29  ;;  %v15982_v7 = vld [vmem:[#allocation22_spill] sm:$0xff]  ;;  %v7779_v42 = vand.u32 4294901760, %v7731_v12 }
 0x4e9   : > { %5125 = vmatmul.mubr.f32.gmra.mrb[20].mxu0 %v15974_v34  ;;  %11029 = vmatprep.subr.bf16.mxu1 %v13624_v23  ;;  %v15981_v23 = vld [vmem:[#allocation11_spill] sm:$0xff] }
 0x4ea   : > { %10583 = vmatpush1.bf16.msra.mxu0 %v15975_v35  ;;  %5130 = vmatprep.mubr.f32.mxu0 %v15830_v29 }
 0x4eb   : > { %7572 = vmatmul.mubr.f32.gmra.mrb[14].mxu1 %v15976_v32  ;;  %10585 = vmatprep.subr.bf16.mxu0 %v15977_v10  ;;  %v15988_v10 = vld [vmem:[#allocation58_spill] sm:$0xff] }
 0x4ec   : > { %11031 = vmatpush1.bf16.msra.mxu1 %v13642_v17  ;;  %7577 = vmatprep.mubr.f32.mxu1 %v15830_v29  ;;  %v15983_v17 = vld [vmem:[#allocation12_spill] sm:$0xff] }
 0x4ed   : > { %5133 = vmatmul.mubr.f32.gmra.mrb[22].mxu0 %v15978_v6  ;;  %11033 = vmatprep.subr.bf16.mxu1 %v13660_v19  ;;  %v15984_v19 = vld [vmem:[#allocation28_spill] sm:$0xff] }
 0x4ee   : > { %10587 = vmatpush1.bf16.msra.mxu0 %v15979_v14  ;;  %5138 = vmatprep.mubr.f32.mxu0 %v15830_v29  ;;  %v7727_v14 = vld [vmem:[#allocation2 + $0x308] sm:$0xff] }
 0x4ef   : > { %7579 = vmatmul.mubr.f32.gmra.mrb[16].mxu1 %v15980_v36  ;;  %10589 = vmatprep.subr.bf16.mxu0 %v15981_v23  ;;  %v15987_v23 = vld [vmem:[#allocation55_spill] sm:$0xff] }
 0x4f0   : > { %11035 = vmatpush1.bf16.msra.mxu1 %v13673_v61  ;;  %7584 = vmatprep.mubr.f32.mxu1 %v15830_v29  ;;  %v15986_v61 = vld [vmem:[#allocation14_spill] sm:$0xff] }
 0x4f1   : > { %5141 = vmatmul.mubr.f32.gmra.mrb[24].mxu0 %v15982_v7  ;;  %11037 = vmatprep.subr.bf16.mxu1 %v13696_v39  ;;  %v7729_v39 = vld [vmem:[#allocation2 + $0x318] sm:$0xff] }
 0x4f2   : > { %10591 = vmatpush1.bf16.msra.mxu0 %v15983_v17  ;;  %5243 = vmatprep.mubr.f32.mxu0 %v15830_v29  ;;  %v7726_v17 = vld [vmem:[#allocation2 + $0x300] sm:$0xff]  ;;  %v7775_v35 = vand.u32 4294901760, %v7729_v39 }
 0x4f3   : > { %7586 = vmatmul.mubr.f32.gmra.mrb[18].mxu1 %v15984_v19  ;;  %10593 = vmatprep.subr.bf16.mxu0 %v15985_v46  ;;  %v15989_v46 = vld [vmem:[#allocation62_spill] sm:$0xff]  ;;  %v7773_v30 = vand.u32 4294901760, %v7726_v17  ;;  %v15995_v19 = vld [vmem:[#allocation72_spill] sm:$0xff] }
 0x4f4   : > { %11039 = vmatpush1.bf16.msra.mxu1 %v13711_v15  ;;  %7688 = vmatprep.mubr.f32.mxu1 %v15830_v29  ;;  %v7771_v15 = vand.u32 4294901760, %v7727_v14  ;;  %v13986_v38 = vsub.f32 %v7729_v39, %v7775_v35  ;;  %v7739_v39 = vld [vmem:[#allocation2 + $0x368] sm:$0xff] }
 0x4f5   : > { %11041 = vmatprep.subr.bf16.mxu1 %v13718_v13  ;;  %v7777_v13 = vand.u32 4294901760, %v7728_v5 }
 0x4f6   : > { %10595 = vmatpush1.bf16.msra.mxu0 %v15986_v61  ;;  %v7733_v61 = vld [vmem:[#allocation2 + $0x338] sm:$0xff]  ;;  %v13979_v24 = vpack.c.bf16 %v7775_v35, %v7771_v15  ;;  %15999 = vst [vmem:[#allocation99_spill] sm:$0xff] %v13986_v38 }
 0x4f7   : > { %10597 = vmatprep.subr.bf16.mxu0 %v15987_v23  ;;  %v7730_v23 = vld [vmem:[#allocation2 + $0x320] sm:$0xff]  ;;  %v7783_v63 = vand.u32 4294901760, %v7733_v61  ;;  %v7741_v35 = vld [vmem:[#allocation2 + $0x378] sm:$0xff] }
 0x4f8   : > { %11043 = vmatpush1.bf16.msra.mxu1 %v13734_v4  ;;  %v15990_v4 = vld [vmem:[#allocation65_spill] sm:$0xff]  ;;  %15996 = vst [vmem:[#allocation71_spill] sm:$0xff] %v13979_v24 }
 0x4f9   : > { %11045 = vmatprep.subr.bf16.mxu1 %v15890_v55  ;;  %v15991_v55 = vand.u32 4294901760, %v12732_v33  ;;  %v7785_v33 = vand.u32 4294901760, %v7732_v59 }
 0x4fa   : > { %10599 = vmatpush1.bf16.msra.mxu0 %v15988_v10  ;;  %v15992_v10 = vand.u32 4294901760, %v12734_v60  ;;  %v7736_v60 = vld [vmem:[#allocation2 + $0x350] sm:$0xff] }
 0x4fb   : > { %10601 = vmatprep.subr.bf16.mxu0 %v15989_v46  ;;  %v15993_v46 = vand.u32 4294901760, %v12736_v43  ;;  %v13984_v43 = vsub.f32 %v7727_v14, %v7771_v15  ;;  %v7787_v15 = vand.u32 4294901760, %v7735_v11 }
 0x4fc   : > { %11047 = vmatpush1.bf16.msra.mxu1 %v13459_v0  ;;  %v10608_v1 = vpack.c.bf16 %v15992_v10, %v15991_v55  ;;  %v7737_v0 = vld [vmem:[#allocation2 + $0x358] sm:$0xff]  ;;  %v13988_v55 = vsub.f32 %v7726_v17, %v7773_v30  ;;  %v13990_v10 = vsub.f32 %v7728_v5, %v7777_v13  ;;  %v16006_v17 = vld [vmem:[#allocation73_spill] sm:$0xff]  ;;  %v14002_v5 = vpack.c.bf16 %v7783_v63, %v7779_v42 }
 0x4fd   : > { %11049 = vmatprep.subr.bf16.mxu1 %v15891_v49  ;;  %v10610_v22 = vpack.c.bf16 %v15994_v2, %v15993_v46  ;;  %v13981_v49 = vpack.c.bf16 %v7777_v13, %v7773_v30  ;;  %15998 = vst [vmem:[#allocation95_spill] sm:$0xff] %v13984_v43  ;;  %v16002_v2 = vand.u32 4294901760, %v12760_v16  ;;  %v16003_v46 = vand.u32 4294901760, %v12763_v57  ;;  %v7740_v57 = vld [vmem:[#allocation2 + $0x370] sm:$0xff] }
 0x4fe   : > { %10603 = vmatpush1.bf16.msra.mxu0 %v15990_v4  ;;  %v7781_v4 = vand.u32 4294901760, %v7730_v23  ;;  %16000 = vst [vmem:[#allocation22_spill] sm:$0xff] %v13988_v55  ;;  %16001 = vst [vmem:[#allocation102_spill] sm:$0xff] %v13990_v10  ;;  %v7791_v14 = vand.u32 4294901760, %v7737_v0  ;;  %v14004_v30 = vsub.f32 %v7731_v12, %v7779_v42  ;;  %v7789_v13 = vand.u32 4294901760, %v7734_v8 }
 0x4ff   : > { %10605 = vmatprep.subr.bf16.mxu0 %v15995_v19  ;;  %15997 = vst [vmem:[#allocation94_spill] sm:$0xff] %v13981_v49  ;;  %v10612_v19 = vpack.c.bf16 %v16003_v46, %v16002_v2  ;;  %16007 = vst [vmem:[#allocation103_spill] sm:$0xff] %v14002_v5  ;;  %v7793_v16 = vand.u32 4294901760, %v7736_v60  ;;  %v14006_v2 = vsub.f32 %v7733_v61, %v7783_v63  ;;  %v16014_v42 = vand.u32 4294901760, %v12786_v9 }
 0x500   : > { %11051 = vmatpush1.bf16.msra.mxu1 %v15894_v53  ;;  %v10614_v53 = vpack.c.bf16 %v16005_v50, %v16004_v45  ;;  %16008 = vst [vmem:[#allocation104_spill] sm:$0xff] %v14004_v30  ;;  %v14008_v20 = vpack.c.bf16 %v7785_v33, %v7781_v4  ;;  %v14010_v31 = vsub.f32 %v7730_v23, %v7781_v4  ;;  %v16013_v50 = vand.u32 4294901760, %v12784_v41  ;;  %v7745_v23 = vld [vmem:[#allocation2 + $0x398] sm:$0xff] }
 0x501   : > { %11053 = vmatprep.subr.bf16.mxu1 %v13511_v21  ;;  %v7738_v21 = vld [vmem:[#allocation2 + $0x360] sm:$0xff]  ;;  %16009 = vst [vmem:[#allocation105_spill] sm:$0xff] %v14006_v2  ;;  %v14012_v45 = vsub.f32 %v7732_v59, %v7785_v33  ;;  %v16015_v46 = vand.u32 4294901760, %v12793_v40  ;;  %v7795_v61 = vand.u32 4294901760, %v7739_v39  ;;  %v7799_v63 = vand.u32 4294901760, %v7741_v35  ;;  %v7743_v2 = vld [vmem:[#allocation2 + $0x388] sm:$0xff] }
 0x502   : > { %10607 = vmatpush1.bf16.msra.mxu0 %v16006_v17  ;;  %16010 = vst [vmem:[#allocation106_spill] sm:$0xff] %v14008_v20  ;;  %16011 = vst [vmem:[#allocation107_spill] sm:$0xff] %v14010_v31  ;;  %v10616_v12 = vpack.c.bf16 %v16014_v42, %v16013_v50  ;;  %v16016_v17 = vand.u32 4294901760, %v12797_v28  ;;  %v16017_v4 = vand.u32 4294901760, %v15968_v18  ;;  %v14028_v59 = vpack.c.bf16 %v7791_v14, %v7787_v15  ;;  %v7742_v50 = vld [vmem:[#allocation2 + $0x380] sm:$0xff]  ;;  %v7744_v18 = vld [vmem:[#allocation2 + $0x390] sm:$0xff] }
 0x503   : > { %10609 = vmatprep.subr.bf16.mxu0 %v10608_v1  ;;  %16012 = vst [vmem:[#allocation108_spill] sm:$0xff] %v14012_v45  ;;  %v14030_v41 = vsub.f32 %v7735_v11, %v7787_v15  ;;  %v7797_v9 = vand.u32 4294901760, %v7738_v21  ;;  %v7801_v33 = vand.u32 4294901760, %v7740_v57  ;;  %v14033_v40 = vsub.f32 %v7737_v0, %v7791_v14 }
 0x504   : > { %11055 = vmatpush1.bf16.msra.mxu1 %v13522_v44  ;;  %v14023_v1 = vpack.c.bf16 %v16016_v17, %v16015_v46  ;;  %16018 = vst [vmem:[#allocation109_spill] sm:$0xff] %v14028_v59  ;;  %v14035_v28 = vpack.c.bf16 %v7793_v16, %v7789_v13  ;;  %v14037_v17 = vsub.f32 %v7734_v8, %v7789_v13  ;;  %v16024_v11 = vand.u32 4294901760, %v12808_v47  ;;  %v7746_v44 = vld [vmem:[#allocation2 + $0x3a0] sm:$0xff] }
 0x505   : > { %5247 = vmatmul.mubr.f32.vlgmr.msra.gmra.mrb[18].mxu0 %v16017_v4  ;;  %11057 = vmatprep.subr.bf16.mxu1 %v13979_v24  ;;  %16019 = vst [vmem:[#allocation110_spill] sm:$0xff] %v14030_v41  ;;  %16020 = vst [vmem:[#allocation111_spill] sm:$0xff] %v14033_v40  ;;  %v14040_v42 = vsub.f32 %v7736_v60, %v7793_v16  ;;  %v16025_v15 = vand.u32 4294901760, %v12810_v48  ;;  %v7803_v46 = vand.u32 4294901760, %v7743_v2  ;;  %v7807_v4 = vand.u32 4294901760, %v7745_v23  ;;  %v7747_v60 = vld [vmem:[#allocation2 + $0x3a8] sm:$0xff] }
 0x506   : > { %10611 = vmatpush1.bf16.msra.mxu0 %v10610_v22  ;;  %5252 = vmatprep.mubr.f32.mxu0 %v15830_v29  ;;  %16021 = vst [vmem:[#allocation112_spill] sm:$0xff] %v14035_v28  ;;  %16022 = vst [vmem:[#allocation113_spill] sm:$0xff] %v14037_v17  ;;  %v16026_v0 = vand.u32 4294901760, %v12814_v3  ;;  %v16027_v8 = vand.u32 4294901760, %v12816_v27  ;;  %v14052_v13 = vpack.c.bf16 %v7799_v63, %v7795_v61  ;;  %v16030_v47 = vand.u32 4294901760, %v15974_v34  ;;  %v7749_v3 = vld [vmem:[#allocation2 + $0x3b8] sm:$0xff] }
 0x507   : > { %7690 = vmatmul.mubr.f32.vlgmr.msra.gmra.mrb[12].mxu1 %v15971_v54  ;;  %10613 = vmatprep.subr.bf16.mxu0 %v10612_v19  ;;  %16023 = vst [vmem:[#allocation114_spill] sm:$0xff] %v14040_v42  ;;  %v10620_v22 = vpack.c.bf16 %v16025_v15, %v16024_v11  ;;  %v14054_v19 = vsub.f32 %v7739_v39, %v7795_v61  ;;  %v7805_v11 = vand.u32 4294901760, %v7742_v50  ;;  %v7809_v15 = vand.u32 4294901760, %v7744_v18  ;;  %v7748_v27 = vld [vmem:[#allocation2 + $0x3b0] sm:$0xff] }
 0x508   : > { %11059 = vmatpush1.bf16.msra.mxu1 %v13981_v49  ;;  %7695 = vmatprep.mubr.f32.mxu1 %v15830_v29  ;;  %v10622_v14 = vpack.c.bf16 %v16027_v8, %v16026_v0  ;;  %16028 = vst [vmem:[#allocation115_spill] sm:$0xff] %v14052_v13  ;;  %v14059_v48 = vsub.f32 %v7741_v35, %v7799_v63  ;;  %v16033_v34 = vand.u32 4294901760, %v12827_v56  ;;  %v16034_v0 = vand.u32 4294901760, %v12829_v58 }
 0x509   : > { %16029 = vst [vmem:[#allocation116_spill] sm:$0xff] %v14054_v19  ;;  %5256 = vmatmul.mubr.f32.gmra.mrb[20].mxu0 %v16030_v47  ;;  %11061 = vmatprep.subr.bf16.mxu1 %v14002_v5  ;;  %v14061_v16 = vpack.c.bf16 %v7801_v33, %v7797_v9  ;;  %v14064_v39 = vsub.f32 %v7738_v21, %v7797_v9  ;;  %v16035_v63 = vand.u32 4294901760, %v12833_v62  ;;  %v16036_v8 = vand.u32 4294901760, %v12835_v37  ;;  %v7753_v9 = vld [vmem:[#allocation2 + $0x3d8] sm:$0xff]  ;;  %v7752_v62 = vld [vmem:[#allocation2 + $0x3d0] sm:$0xff]  ;;  %v16089_v5 = vld [vmem:[#allocation86_spill] sm:$0xff] }
 0x50a   : > { %16031 = vst [vmem:[#allocation117_spill] sm:$0xff] %v14059_v48  ;;  %10615 = vmatpush1.bf16.msra.mxu0 %v10614_v53  ;;  %5261 = vmatprep.mubr.f32.mxu0 %v15830_v29  ;;  %v14066_v61 = vsub.f32 %v7740_v57, %v7801_v33  ;;  %v10624_v35 = vpack.c.bf16 %v16034_v0, %v16033_v34  ;;  %v7751_v57 = vld [vmem:[#allocation2 + $0x3c8] sm:$0xff]  ;;  %v7811_v56 = vand.u32 4294901760, %v7747_v60  ;;  %v7815_v58 = vand.u32 4294901760, %v7749_v3  ;;  %v7750_v34 = vld [vmem:[#allocation2 + $0x3c0] sm:$0xff] }
 0x50b   : > { %16032 = vst [vmem:[#allocation118_spill] sm:$0xff] %v14061_v16  ;;  %7697 = vmatmul.mubr.f32.gmra.mrb[14].mxu1 %v15976_v32  ;;  %10617 = vmatprep.subr.bf16.mxu0 %v10616_v12  ;;  %v14077_v47 = vpack.c.bf16 %v16036_v8, %v16035_v63  ;;  %v14079_v53 = vpack.c.bf16 %v7807_v4, %v7803_v46  ;;  %v7813_v33 = vand.u32 4294901760, %v7746_v44  ;;  %v7817_v12 = vand.u32 4294901760, %v7748_v27 }
 0x50c   : > { %v14081_v21 = vsub.f32 %v7743_v2, %v7803_v46  ;;  %11063 = vmatpush1.bf16.msra.mxu1 %v14008_v20  ;;  %7702 = vmatprep.mubr.f32.mxu1 %v15830_v29  ;;  %v16038_v37 = vand.u32 4294901760, %v15978_v6  ;;  %v14088_v0 = vsub.f32 %v7745_v23, %v7807_v4  ;;  %v14090_v2 = vpack.c.bf16 %v7809_v15, %v7805_v11 }
 0x50d   : > { %16037 = vst [vmem:[#allocation119_spill] sm:$0xff] %v14079_v53  ;;  %11065 = vmatprep.subr.bf16.mxu1 %v14028_v59  ;;  %v14092_v46 = vsub.f32 %v7742_v50, %v7805_v11  ;;  %v14096_v63 = vsub.f32 %v7744_v18, %v7809_v15  ;;  %v16043_v8 = vand.u32 4294901760, %v13256_v52  ;;  %v16044_v32 = vand.u32 4294901760, %v13261_v51  ;;  %v16048_v15 = vld [vmem:[#allocation96_spill] sm:$0xff] }
 0x50e   : > { %5265 = vmatmul.mubr.f32.gmra.mrb[22].mxu0 %v16038_v37  ;;  %16039 = vst [vmem:[#allocation120_spill] sm:$0xff] %v14088_v0  ;;  %16040 = vst [vmem:[#allocation121_spill] sm:$0xff] %v14090_v2  ;;  %v7819_v37 = vand.u32 4294901760, %v7751_v57  ;;  %v7823_v54 = vand.u32 4294901760, %v7753_v9  ;;  %v16045_v23 = vand.u32 4294901760, %v15949_v25  ;;  %v16046_v50 = vand.u32 4294901760, %v13271_v26 }
 0x50f   : > { %16041 = vst [vmem:[#allocation122_spill] sm:$0xff] %v14092_v46  ;;  %10619 = vmatpush1.bf16.msra.mxu0 %v14023_v1  ;;  %5270 = vmatprep.mubr.f32.mxu0 %v15830_v29  ;;  %16042 = vst [vmem:[#allocation123_spill] sm:$0xff] %v14096_v63  ;;  %v10628_v6 = vpack.c.bf16 %v16044_v32, %v16043_v8  ;;  %v14107_v1 = vsub.f32 %v7747_v60, %v7811_v56  ;;  %v7821_v11 = vand.u32 4294901760, %v7750_v34  ;;  %v16056_v60 = vld [vmem:[#allocation76_spill] sm:$0xff] }
 0x510   : > { %7704 = vmatmul.mubr.f32.gmra.mrb[16].mxu1 %v15980_v36  ;;  %10621 = vmatprep.subr.bf16.mxu0 %v10620_v22  ;;  %v10630_v4 = vpack.c.bf16 %v16046_v50, %v16045_v23  ;;  %v7825_v18 = vand.u32 4294901760, %v7752_v62  ;;  %v14110_v59 = vand.u32 4294901760, %v16048_v15  ;;  %v14114_v51 = vpack.c.bf16 %v7815_v58, %v7811_v56  ;;  %v16058_v23 = vld [vmem:[#allocation77_spill] sm:$0xff]  ;;  %v16060_v56 = vld [vmem:[#allocation78_spill] sm:$0xff] }
 0x511   : > { %16047 = vst [vmem:[#allocation124_spill] sm:$0xff] %v14107_v1  ;;  %11067 = vmatpush1.bf16.msra.mxu1 %v14035_v28  ;;  %7709 = vmatprep.mubr.f32.mxu1 %v15830_v29  ;;  %v14116_v52 = vsub.f32 %v7749_v3, %v7815_v58  ;;  %v14118_v32 = vpack.c.bf16 %v7817_v12, %v7813_v33  ;;  %v16053_v26 = vand.u32 4294901760, %v15982_v7  ;;  %v16057_v8 = vand.u32 4294901760, %v16056_v60  ;;  %v16062_v58 = vld [vmem:[#allocation79_spill] sm:$0xff] }
 0x512   : > { %16049 = vst [vmem:[#allocation96_spill] sm:$0xff] %v14110_v59  ;;  %16050 = vst [vmem:[#allocation125_spill] sm:$0xff] %v14114_v51  ;;  %11069 = vmatprep.subr.bf16.mxu1 %v14052_v13  ;;  %v14123_v25 = vsub.f32 %v7746_v44, %v7813_v33  ;;  %v14125_v22 = vsub.f32 %v7748_v27, %v7817_v12  ;;  %v16059_v50 = vand.u32 4294901760, %v16058_v23  ;;  %v16061_v3 = vand.u32 4294901760, %v16060_v56  ;;  %v7755_v44 = vld [vmem:[#allocation2 + $0x3e8] sm:$0xff]  ;;  %v7757_v33 = vld [vmem:[#allocation2 + $0x3f8] sm:$0xff] }
 0x513   : > { %16051 = vst [vmem:[#allocation126_spill] sm:$0xff] %v14116_v52  ;;  %16052 = vst [vmem:[#allocation127_spill] sm:$0xff] %v14118_v32  ;;  %5274 = vmatmul.mubr.f32.gmra.mrb[24].mxu0 %v16053_v26  ;;  %v16063_v28 = vand.u32 4294901760, %v16062_v58  ;;  %v14137_v7 = vpack.c.bf16 %v7823_v54, %v7819_v37  ;;  %v14139_v26 = vsub.f32 %v7751_v57, %v7819_v37  ;;  %v16066_v27 = vld [vmem:[#allocation28_spill] sm:$0xff]  ;;  %v7754_v37 = vld [vmem:[#allocation2 + $0x3e0] sm:$0xff] }
 0x514   : > { %16054 = vst [vmem:[#allocation128_spill] sm:$0xff] %v14123_v25  ;;  %16055 = vst [vmem:[#allocation129_spill] sm:$0xff] %v14125_v22  ;;  %v10632_v36 = vpack.c.bf16 %v16059_v50, %v16057_v8  ;;  %10623 = vmatpush1.bf16.msra.mxu0 %v10622_v14  ;;  %5440 = vmatprep.mubr.f32.mxu0 %v15830_v29  ;;  %v14143_v12 = vsub.f32 %v7753_v9, %v7823_v54  ;;  %v7831_v9 = vand.u32 4294901760, %v7757_v33  ;;  %v16074_v23 = vld [vmem:[#allocation81_spill] sm:$0xff]  ;;  %v16078_v54 = vld [vmem:[#allocation83_spill] sm:$0xff] }
 0x515   : > { %v14135_v20 = vpack.c.bf16 %v16063_v28, %v16061_v3  ;;  %16064 = vst [vmem:[#allocation76_spill] sm:$0xff] %v14137_v7  ;;  %16065 = vst [vmem:[#allocation77_spill] sm:$0xff] %v14139_v26  ;;  %7711 = vmatmul.mubr.f32.gmra.mrb[18].mxu1 %v16066_v27  ;;  %10625 = vmatprep.subr.bf16.mxu0 %v10624_v35  ;;  %v14145_v14 = vpack.c.bf16 %v7825_v18, %v7821_v11  ;;  %v7827_v35 = vand.u32 4294901760, %v7755_v44  ;;  %v16076_v3 = vld [vmem:[#allocation82_spill] sm:$0xff] }
 0x516   : > { %16067 = vst [vmem:[#allocation78_spill] sm:$0xff] %v14143_v12  ;;  %v14147_v60 = vsub.f32 %v7750_v34, %v7821_v11  ;;  %v14151_v28 = vsub.f32 %v16048_v15, %v14110_v59  ;;  %11071 = vmatpush1.bf16.msra.mxu1 %v14061_v16  ;;  %v14154_v57 = vsub.f32 %v7752_v62, %v7825_v18  ;;  %v14160_v34 = vld [vmem:[#allocation2 + $0x3f0] sm:$0xff]  ;;  %v16072_v62 = vld [vmem:[#allocation80_spill] sm:$0xff]  ;;  %v16075_v50 = vand.u32 4294901760, %v16074_v23  ;;  %v16082_v15 = vld [vmem:[#allocation105_spill] sm:$0xff] }
 0x517   : > { %16068 = vst [vmem:[#allocation79_spill] sm:$0xff] %v14145_v14  ;;  %7867 = vmatprep.mubr.f32.mxu1 %v15830_v29  ;;  %11073 = vmatprep.subr.bf16.mxu1 %v14079_v53  ;;  %v16073_v18 = vand.u32 4294901760, %v16072_v62  ;;  %v16077_v58 = vand.u32 4294901760, %v16076_v3  ;;  %v16079_v8 = vand.u32 4294901760, %v16078_v54  ;;  %v16080_v53 = vld [vmem:[#allocation37_spill] sm:$0xff]  ;;  %v7829_v11 = vand.u32 4294901760, %v7754_v37 }
 0x518   : > { %16069 = vst [vmem:[#allocation130_spill] sm:$0xff] %v14147_v60  ;;  %16070 = vst [vmem:[#allocation131_spill] sm:$0xff] %v14151_v28  ;;  %10627 = vmatpush1.bf16.msra.mxu0 %v14077_v47  ;;  %v14174_v16 = vand.u32 4294901760, %v16080_v53  ;;  %v14190_v3 = vpack.c.bf16 %v7831_v9, %v7827_v35  ;;  %v16087_v62 = vand.u32 4294901760, %v13988_v55  ;;  %v16088_v54 = vand.u32 4294901760, %v13990_v10 }
 0x519   : > { %16071 = vst [vmem:[#allocation132_spill] sm:$0xff] %v14154_v57  ;;  %v10636_v56 = vpack.c.bf16 %v16075_v50, %v16073_v18  ;;  %v10638_v27 = vpack.c.bf16 %v16079_v8, %v16077_v58  ;;  %10629 = vmatprep.subr.bf16.mxu0 %v10628_v6  ;;  %v16083_v8 = vand.u32 4294901760, %v13984_v43  ;;  %v16084_v50 = vand.u32 4294901760, %v13986_v38 }
 0x51a   : > { %16081 = vst [vmem:[#allocation80_spill] sm:$0xff] %v14174_v16  ;;  %11075 = vmatpush1.bf16.msra.mxu1 %v14090_v2  ;;  %16085 = vst [vmem:[#allocation81_spill] sm:$0xff] %v14190_v3  ;;  %v14192_v58 = vsub.f32 %v7755_v44, %v7827_v35  ;;  %v7921_v18 = vsub.f32 %v13988_v55, %v16087_v62  ;;  %v7933_v47 = vsub.f32 %v13990_v10, %v16088_v54 }
 0x51b   : > { %v7915_v23 = vsub.f32 %v13984_v43, %v16083_v8  ;;  %v7927_v6 = vsub.f32 %v13986_v38, %v16084_v50  ;;  %11077 = vmatprep.subr.bf16.mxu1 %v14114_v51  ;;  %v14201_v8 = vand.u32 4294901760, %v16089_v5  ;;  %v14203_v13 = vsub.f32 %v7757_v33, %v7831_v9  ;;  %v16097_v9 = vld [vmem:[#allocation39_spill] sm:$0xff] }
 0x51c   : > { %16086 = vst [vmem:[#allocation82_spill] sm:$0xff] %v14192_v58  ;;  %10631 = vmatpush1.bf16.msra.mxu0 %v10630_v4  ;;  %v14207_v50 = vsub.f32 %v16080_v53, %v14174_v16  ;;  %v16093_v44 = vand.u32 4294901760, %v14004_v30  ;;  %v16094_v62 = vand.u32 4294901760, %v16082_v15  ;;  %v16095_v54 = vand.u32 4294901760, %v14010_v31 }
 0x51d   : > { %16090 = vst [vmem:[#allocation83_spill] sm:$0xff] %v14201_v8  ;;  %16091 = vst [vmem:[#allocation37_spill] sm:$0xff] %v14203_v13  ;;  %10633 = vmatprep.subr.bf16.mxu0 %v10632_v36  ;;  %v16096_v4 = vand.u32 4294901760, %v14012_v45  ;;  %v14222_v53 = vand.u32 4294901760, %v16097_v9  ;;  %v16101_v49 = vand.u32 4294901760, %v14151_v28  ;;  %v7916_v24 = vand.u32 4294901760, %v7915_v23 }
 0x51e   : > { %16092 = vst [vmem:[#allocation86_spill] sm:$0xff] %v14207_v50  ;;  %v7939_v35 = vsub.f32 %v14004_v30, %v16093_v44  ;;  %v7951_v51 = vsub.f32 %v16082_v15, %v16094_v62  ;;  %v7945_v2 = vsub.f32 %v14010_v31, %v16095_v54  ;;  %11079 = vmatpush1.bf16.msra.mxu1 %v14118_v32  ;;  %v16099_v44 = vand.u32 4294901760, %v14160_v34 }
 0x51f   : > { %v7957_v33 = vsub.f32 %v14012_v45, %v16096_v4  ;;  %16098 = vst [vmem:[#allocation39_spill] sm:$0xff] %v14222_v53  ;;  %v7871_v62 = vsub.f32 %v14151_v28, %v16101_v49  ;;  %v7928_v16 = vand.u32 4294901760, %v7927_v6  ;;  %11081 = vmatprep.subr.bf16.mxu1 %v14137_v7  ;;  %v7922_v54 = vand.u32 4294901760, %v7921_v18  ;;  %v16137_v28 = vld [vmem:[#allocation72_spill] sm:$0xff] }
 0x520   : > { %v14227_v36 = vpack.c.bf16 %v16099_v44, %v7829_v11  ;;  %v7934_v59 = vand.u32 4294901760, %v7933_v47  ;;  %v15550_v4 = vand.u32 4294901760, %v14030_v41  ;;  %v15549_v45 = vand.u32 4294901760, %v14033_v40  ;;  %10635 = vmatpush1.bf16.msra.mxu0 %v14135_v20 }
 0x521   : > { %v15551_v32 = vand.u32 4294901760, %v14207_v50  ;;  %v7940_v44 = vand.u32 4294901760, %v7939_v35  ;;  %v15552_v15 = vand.u32 4294901760, %v14040_v42  ;;  %10637 = vmatprep.subr.bf16.mxu0 %v10636_v56  ;;  %v7952_v49 = vand.u32 4294901760, %v7951_v51 }
 0x522   : > { %16100 = vst [vmem:[#allocation133_spill] sm:$0xff] %v14227_v36  ;;  %v7946_v23 = vand.u32 4294901760, %v7945_v2  ;;  %v7958_v6 = vand.u32 4294901760, %v7957_v33  ;;  %v14241_v47 = vsub.f32 %v16097_v9, %v14222_v53  ;;  %v14245_v18 = vsub.f32 %v16089_v5, %v14201_v8  ;;  %11083 = vmatpush1.bf16.msra.mxu1 %v14145_v14  ;;  %v16106_v9 = vld [vmem:[#allocation5_spill] sm:$0xff] }
 0x523   : > { %v14248_v20 = vsub.f32 %v7754_v37, %v7829_v11  ;;  %v7872_v35 = vand.u32 4294901760, %v7871_v62  ;;  %v11088_v31 = vpack.c.bf16 %v7928_v16, %v7916_v24  ;;  %11085 = vmatprep.subr.bf16.mxu1 %v14190_v3  ;;  %v7963_v2 = vsub.f32 %v14030_v41, %v15550_v4  ;;  %v16107_v5 = vld [vmem:[#allocation57_spill] sm:$0xff] }
 0x524   : > { %16102 = vst [vmem:[#allocation134_spill] sm:$0xff] %v14241_v47  ;;  %16103 = vst [vmem:[#allocation135_spill] sm:$0xff] %v14245_v18  ;;  %v7975_v51 = vsub.f32 %v14033_v40, %v15549_v45  ;;  %v15554_v56 = vand.u32 4294901760, %v14054_v19  ;;  %10639 = vmatpush1.bf16.msra.mxu0 %v10638_v27  ;;  %v11090_v33 = vpack.c.bf16 %v7934_v59, %v7922_v54  ;;  %v16105_v16 = vand.u32 4294901760, %v14037_v17 }
 0x525   : > { %16104 = vst [vmem:[#allocation136_spill] sm:$0xff] %v14248_v20  ;;  %v7882_v24 = vsub.f32 %v14207_v50, %v15551_v32  ;;  %v7981_v11 = vsub.f32 %v14040_v42, %v15552_v15  ;;  %10641 = vmatprep.subr.bf16.mxu0 %v16106_v9  ;;  %v11092_v62 = vpack.c.bf16 %v7952_v49, %v7940_v44  ;;  %v15553_v4 = vand.u32 4294901760, %v14241_v47  ;;  %v16109_v15 = vld [vmem:[#allocation6_spill] sm:$0xff] }
 0x526   : > { %v7969_v37 = vsub.f32 %v14037_v17, %v16105_v16  ;;  %v11094_v45 = vpack.c.bf16 %v7958_v6, %v7946_v23  ;;  %v15555_v59 = vand.u32 4294901760, %v14064_v39  ;;  %11087 = vmatpush1.bf16.msra.mxu1 %v14227_v36  ;;  %v15558_v54 = vand.u32 4294901760, %v14066_v61  ;;  %v16115_v36 = vld [vmem:[#allocation8_spill] sm:$0xff] }
 0x527   : > { %5442 = vmatmul.mubr.f32.vlgmr.msra.gmra.mrb[18].mxu0 %v16107_v5  ;;  %11089 = vmatprep.subr.bf16.mxu1 %v11088_v31  ;;  %v7964_v9 = vand.u32 4294901760, %v7963_v2  ;;  %v7976_v44 = vand.u32 4294901760, %v7975_v51  ;;  %v7987_v49 = vsub.f32 %v14054_v19, %v15554_v56  ;;  %v16108_v23 = vand.u32 4294901760, %v14059_v48  ;;  %v16110_v2 = vld [vmem:[#allocation7_spill] sm:$0xff]  ;;  %v16113_v31 = vld [vmem:[#allocation66_spill] sm:$0xff] }
 0x528   : > { %10643 = vmatpush1.bf16.msra.mxu0 %v16109_v15  ;;  %5447 = vmatprep.mubr.f32.mxu0 %v15830_v29  ;;  %v7970_v27 = vand.u32 4294901760, %v7969_v37  ;;  %v7982_v16 = vand.u32 4294901760, %v7981_v11  ;;  %v7893_v51 = vsub.f32 %v14241_v47, %v15553_v4  ;;  %v7883_v11 = vand.u32 4294901760, %v7882_v24  ;;  %v5619_v47 = vld [vmem:[#allocation2 + $0x128] sm:$0xff] }
 0x529   : > { %v7999_v6 = vsub.f32 %v14059_v48, %v16108_v23  ;;  %7873 = vmatmul.mubr.f32.vlgmr.msra.gmra.mrb[12].mxu1 %v7872_v35  ;;  %10645 = vmatprep.subr.bf16.mxu0 %v16110_v2  ;;  %v7993_v23 = vsub.f32 %v14064_v39, %v15555_v59  ;;  %v8005_v35 = vsub.f32 %v14066_v61, %v15558_v54  ;;  %v16111_v2 = vand.u32 4294901760, %v14081_v21 }
 0x52a   : > { %11091 = vmatpush1.bf16.msra.mxu1 %v11090_v33  ;;  %7878 = vmatprep.mubr.f32.mxu1 %v15830_v29  ;;  %v16112_v56 = vand.u32 4294901760, %v14088_v0  ;;  %v11096_v37 = vpack.c.bf16 %v7976_v44, %v7964_v9  ;;  %v16114_v33 = vand.u32 4294901760, %v14245_v18  ;;  %v7988_v15 = vand.u32 4294901760, %v7987_v49  ;;  %v16118_v9 = vld [vmem:[#allocation9_spill] sm:$0xff] }
 0x52b   : > { %v8011_v4 = vsub.f32 %v14081_v21, %v16111_v2  ;;  %5449 = vmatmul.mubr.f32.gmra.mrb[20].mxu0 %v16113_v31  ;;  %11093 = vmatprep.subr.bf16.mxu1 %v11092_v62  ;;  %v8000_v32 = vand.u32 4294901760, %v7999_v6  ;;  %v11098_v54 = vpack.c.bf16 %v7982_v16, %v7970_v27  ;;  %v16116_v2 = vand.u32 4294901760, %v14092_v46 }
 0x52c   : > { %v8023_v59 = vsub.f32 %v14088_v0, %v16112_v56  ;;  %v7904_v24 = vsub.f32 %v14245_v18, %v16114_v33  ;;  %10647 = vmatpush1.bf16.msra.mxu0 %v16115_v36  ;;  %5454 = vmatprep.mubr.f32.mxu0 %v15830_v29  ;;  %v16117_v56 = vand.u32 4294901760, %v14096_v63  ;;  %v16119_v44 = vand.u32 4294901760, %v14107_v1 }
 0x52d   : > { %v8017_v3 = vsub.f32 %v14092_v46, %v16116_v2  ;;  %7884 = vmatmul.mubr.f32.gmra.mrb[14].mxu1 %v7883_v11  ;;  %10649 = vmatprep.subr.bf16.mxu0 %v16118_v9  ;;  %v16120_v36 = vand.u32 4294901760, %v14116_v52  ;;  %v7994_v33 = vand.u32 4294901760, %v7993_v23  ;;  %v8006_v2 = vand.u32 4294901760, %v8005_v35  ;;  %v16121_v9 = vld [vmem:[#allocation97_spill] sm:$0xff] }
 0x52e   : > { %v8029_v62 = vsub.f32 %v14096_v63, %v16117_v56  ;;  %v8035_v49 = vsub.f32 %v14107_v1, %v16119_v44  ;;  %11095 = vmatpush1.bf16.msra.mxu1 %v11094_v45  ;;  %7889 = vmatprep.mubr.f32.mxu1 %v15830_v29  ;;  %v8012_v11 = vand.u32 4294901760, %v8011_v4  ;;  %v8024_v56 = vand.u32 4294901760, %v8023_v59  ;;  %v16124_v45 = vld [vmem:[#allocation10_spill] sm:$0xff] }
 0x52f   : > { %v8047_v6 = vsub.f32 %v14116_v52, %v16120_v36  ;;  %5456 = vmatmul.mubr.f32.gmra.mrb[22].mxu0 %v16121_v9  ;;  %v7894_v14 = vand.u32 4294901760, %v7893_v51  ;;  %11097 = vmatprep.subr.bf16.mxu1 %v11096_v37  ;;  %v11100_v44 = vpack.c.bf16 %v8000_v32, %v7988_v15  ;;  %v15565_v7 = vand.u32 4294901760, %v14139_v26  ;;  %v16125_v51 = vld [vmem:[#allocation11_spill] sm:$0xff] }
 0x530   : > { %v16122_v27 = vand.u32 4294901760, %v14160_v34  ;;  %10651 = vmatpush1.bf16.msra.mxu0 %v16124_v45  ;;  %5461 = vmatprep.mubr.f32.mxu0 %v15830_v29  ;;  %v7905_v4 = vand.u32 4294901760, %v7904_v24  ;;  %v8018_v59 = vand.u32 4294901760, %v8017_v3  ;;  %v8030_v23 = vand.u32 4294901760, %v8029_v62  ;;  %v16128_v62 = vld [vmem:[#allocation100_spill] sm:$0xff] }
 0x531   : > { %7895 = vmatmul.mubr.f32.gmra.mrb[16].mxu1 %v7894_v14  ;;  %10653 = vmatprep.subr.bf16.mxu0 %v16125_v51  ;;  %v8036_v32 = vand.u32 4294901760, %v8035_v49  ;;  %v8048_v15 = vand.u32 4294901760, %v8047_v6  ;;  %v16126_v37 = vand.u32 4294901760, %v14123_v25  ;;  %v16127_v36 = vand.u32 4294901760, %v14125_v22 }
 0x532   : > { %v14334_v16 = vsub.f32 %v14160_v34, %v16122_v27  ;;  %11099 = vmatpush1.bf16.msra.mxu1 %v11098_v54  ;;  %7900 = vmatprep.mubr.f32.mxu1 %v15830_v29  ;;  %v11102_v27 = vpack.c.bf16 %v8006_v2, %v7994_v33  ;;  %v11104_v24 = vpack.c.bf16 %v8024_v56, %v8012_v11  ;;  %v15569_v3 = vand.u32 4294901760, %v14147_v60  ;;  %v16130_v2 = vld [vmem:[#allocation12_spill] sm:$0xff]  ;;  %v16131_v11 = vld [vmem:[#allocation13_spill] sm:$0xff] }
 0x533   : > { %v8041_v35 = vsub.f32 %v14123_v25, %v16126_v37  ;;  %v8053_v34 = vsub.f32 %v14125_v22, %v16127_v36  ;;  %v15568_v14 = vand.u32 4294901760, %v14154_v57  ;;  %5463 = vmatmul.mubr.f32.gmra.mrb[24].mxu0 %v16128_v62  ;;  %11101 = vmatprep.subr.bf16.mxu1 %v11100_v44  ;;  %v8059_v49 = vsub.f32 %v14139_v26, %v15565_v7 }
 0x534   : > { %16123 = vst [vmem:[#allocation5_spill] sm:$0xff] %v14334_v16  ;;  %v16129_v6 = vand.u32 4294901760, %v14143_v12  ;;  %v15566_v54 = vand.u32 4294901760, %v14192_v58  ;;  %v15567_v33 = vand.u32 4294901760, %v14203_v13  ;;  %10655 = vmatpush1.bf16.msra.mxu0 %v16130_v2  ;;  %5565 = vmatprep.mubr.f32.mxu0 %v15830_v29  ;;  %v11106_v56 = vpack.c.bf16 %v8030_v23, %v8018_v59 }
 0x535   : > { %7906 = vmatmul.mubr.f32.gmra.mrb[18].mxu1 %v7905_v4  ;;  %10657 = vmatprep.subr.bf16.mxu0 %v16131_v11  ;;  %v11108_v44 = vpack.c.bf16 %v8048_v15, %v8036_v32  ;;  %v8042_v45 = vand.u32 4294901760, %v8041_v35  ;;  %v8054_v51 = vand.u32 4294901760, %v8053_v34  ;;  %v8065_v37 = vsub.f32 %v14147_v60, %v15569_v3  ;;  %v16132_v15 = vld [vmem:[#allocation14_spill] sm:$0xff]  ;;  %v16133_v35 = vld [vmem:[#allocation55_spill] sm:$0xff] }
 0x536   : > { %v8071_v36 = vsub.f32 %v14143_v12, %v16129_v6  ;;  %11103 = vmatpush1.bf16.msra.mxu1 %v11102_v27  ;;  %v8077_v6 = vsub.f32 %v14154_v57, %v15568_v14  ;;  %v15570_v2 = vand.u32 4294901760, %v14248_v20  ;;  %v15575_v7 = vand.u32 4294901760, %v14334_v16  ;;  %8136 = vmatprep.mubr.f32.mxu1 %v15830_v29  ;;  %v16134_v3 = vld [vmem:[#allocation58_spill] sm:$0xff] }
 0x537   : > { %11105 = vmatprep.subr.bf16.mxu1 %v11104_v24  ;;  %v8060_v4 = vand.u32 4294901760, %v8059_v49  ;;  %v8083_v23 = vsub.f32 %v14192_v58, %v15566_v54  ;;  %v8095_v32 = vsub.f32 %v14203_v13, %v15567_v33  ;;  %v11110_v34 = vpack.c.bf16 %v8054_v51, %v8042_v45  ;;  %v5617_v54 = vld [vmem:[#allocation2 + $0x118] sm:$0xff]  ;;  %v16135_v45 = vld [vmem:[#allocation62_spill] sm:$0xff]  ;;  %v16139_v58 = vld [vmem:[#allocation73_spill] sm:$0xff] }
 0x538   : > { %v8072_v59 = vand.u32 4294901760, %v8071_v36  ;;  %10659 = vmatpush1.bf16.msra.mxu0 %v16132_v15  ;;  %v8066_v27 = vand.u32 4294901760, %v8065_v37  ;;  %v8078_v11 = vand.u32 4294901760, %v8077_v6  ;;  %v8089_v24 = vsub.f32 %v14248_v20, %v15570_v2  ;;  %v5615_v36 = vld [vmem:[#allocation2 + $0x108] sm:$0xff]  ;;  %v5614_v37 = vld [vmem:[#allocation2 + $0x100] sm:$0xff]  ;;  %v5616_v6 = vld [vmem:[#allocation2 + $0x110] sm:$0xff] }
 0x539   : > { %10661 = vmatprep.subr.bf16.mxu0 %v16133_v35  ;;  %v8101_v49 = vsub.f32 %v14334_v16, %v15575_v7  ;;  %v8084_v14 = vand.u32 4294901760, %v8083_v23  ;;  %v8096_v15 = vand.u32 4294901760, %v8095_v32  ;;  %v5668_v51 = vand.u32 4294901760, %v5617_v54  ;;  %v5621_v7 = vld [vmem:[#allocation2 + $0x138] sm:$0xff]  ;;  %v5623_v32 = vld [vmem:[#allocation2 + $0x148] sm:$0xff] }
 0x53a   : > { %11107 = vmatpush1.bf16.msra.mxu1 %v11106_v56  ;;  %v11112_v33 = vpack.c.bf16 %v8072_v59, %v8060_v4  ;;  %v5664_v56 = vand.u32 4294901760, %v5615_v36  ;;  %v11114_v35 = vpack.c.bf16 %v8078_v11, %v8066_v27  ;;  %v8090_v2 = vand.u32 4294901760, %v8089_v24  ;;  %v16136_v4 = vld [vmem:[#allocation65_spill] sm:$0xff] }
 0x53b   : > { %11109 = vmatprep.subr.bf16.mxu1 %v11108_v44  ;;  %v8102_v18 = vand.u32 4294901760, %v8101_v49  ;;  %v11116_v50 = vpack.c.bf16 %v8096_v15, %v8084_v14  ;;  %v5618_v44 = vld [vmem:[#allocation2 + $0x120] sm:$0xff]  ;;  %v5666_v59 = vand.u32 4294901760, %v5614_v37  ;;  %v5670_v23 = vand.u32 4294901760, %v5616_v6  ;;  %v5624_v15 = vld [vmem:[#allocation2 + $0x150] sm:$0xff] }
 0x53c   : > { %10663 = vmatpush1.bf16.msra.mxu0 %v16134_v3  ;;  %v5620_v3 = vld [vmem:[#allocation2 + $0x130] sm:$0xff]  ;;  %v14387_v16 = vpack.c.bf16 %v5668_v51, %v5664_v56  ;;  %v5676_v27 = vand.u32 4294901760, %v5621_v7  ;;  %v14389_v24 = vsub.f32 %v5615_v36, %v5664_v56  ;;  %v11120_v14 = vpack.c.bf16 %v13986_v38, %v13984_v43  ;;  %v5622_v49 = vld [vmem:[#allocation2 + $0x140] sm:$0xff]  ;;  %v5629_v38 = vld [vmem:[#allocation2 + $0x178] sm:$0xff] }
 0x53d   : > { %10665 = vmatprep.subr.bf16.mxu0 %v16135_v45  ;;  %v5625_v45 = vld [vmem:[#allocation2 + $0x158] sm:$0xff]  ;;  %v11118_v11 = vpack.c.bf16 %v8102_v18, %v8090_v2  ;;  %v5678_v20 = vand.u32 4294901760, %v5620_v3  ;;  %v5680_v13 = vand.u32 4294901760, %v5623_v32  ;;  %v14396_v57 = vpack.c.bf16 %v5670_v23, %v5666_v59  ;;  %v5628_v43 = vld [vmem:[#allocation2 + $0x170] sm:$0xff] }
 0x53e   : > { %11111 = vmatpush1.bf16.msra.mxu1 %v11110_v34  ;;  %16138 = vst [vmem:[#allocation57_spill] sm:$0xff] %v14387_v16  ;;  %v5672_v34 = vand.u32 4294901760, %v5619_v47  ;;  %v14400_v18 = vsub.f32 %v5616_v6, %v5670_v23  ;;  %v5682_v36 = vand.u32 4294901760, %v5622_v49  ;;  %v5686_v56 = vand.u32 4294901760, %v5624_v15  ;;  %v16142_v6 = vld [vmem:[#allocation105_spill] sm:$0xff]  ;;  %v16143_v23 = vld [vmem:[#allocation107_spill] sm:$0xff] }
 0x53f   : > { %11113 = vmatprep.subr.bf16.mxu1 %v11112_v33  ;;  %v14391_v33 = vsub.f32 %v5617_v54, %v5668_v51  ;;  %16140 = vst [vmem:[#allocation6_spill] sm:$0xff] %v14396_v57  ;;  %v11122_v54 = vpack.c.bf16 %v13990_v10, %v13988_v55  ;;  %v5627_v51 = vld [vmem:[#allocation2 + $0x168] sm:$0xff]  ;;  %v16144_v10 = vld [vmem:[#allocation108_spill] sm:$0xff] }
 0x540   : > { %10667 = vmatpush1.bf16.msra.mxu0 %v16136_v4  ;;  %v5674_v4 = vand.u32 4294901760, %v5618_v44  ;;  %v14405_v2 = vpack.c.bf16 %v5676_v27, %v5672_v34  ;;  %v11126_v55 = vpack.c.bf16 %v16144_v10, %v16143_v23  ;;  %v5688_v23 = vand.u32 4294901760, %v5627_v51 }
 0x541   : > { %10669 = vmatprep.subr.bf16.mxu0 %v16137_v28  ;;  %v5684_v28 = vand.u32 4294901760, %v5625_v45 }
 0x542   : > { %11115 = vmatpush1.bf16.msra.mxu1 %v11114_v35  ;;  %v14398_v35 = vsub.f32 %v5614_v37, %v5666_v59  ;;  %16141 = vst [vmem:[#allocation7_spill] sm:$0xff] %v14405_v2  ;;  %v14411_v37 = vsub.f32 %v5618_v44, %v5674_v4  ;;  %v11124_v59 = vpack.c.bf16 %v16142_v6, %v14004_v30  ;;  %v5633_v44 = vld [vmem:[#allocation2 + $0x198] sm:$0xff]  ;;  %v5692_v6 = vand.u32 4294901760, %v5629_v38  ;;  %v5632_v30 = vld [vmem:[#allocation2 + $0x190] sm:$0xff] }
 0x543   : > { %11117 = vmatprep.subr.bf16.mxu1 %v11116_v50  ;;  %v14407_v50 = vsub.f32 %v5619_v47, %v5672_v34  ;;  %v14418_v47 = vpack.c.bf16 %v5678_v20, %v5674_v4  ;;  %v14420_v34 = vsub.f32 %v5620_v3, %v5678_v20  ;;  %v14428_v10 = vsub.f32 %v5625_v45, %v5684_v28 }
 0x544   : > { %10671 = vmatpush1.bf16.msra.mxu0 %v16139_v58  ;;  %v14409_v58 = vsub.f32 %v5621_v7, %v5676_v27  ;;  %v5631_v7 = vld [vmem:[#allocation2 + $0x188] sm:$0xff]  ;;  %v14426_v27 = vsub.f32 %v5623_v32, %v5680_v13  ;;  %v14432_v20 = vpack.c.bf16 %v5686_v56, %v5682_v36  ;;  %v11128_v3 = vpack.c.bf16 %v14033_v40, %v14030_v41 }
 0x545   : > { %10673 = vmatprep.subr.bf16.mxu0 %v14387_v16  ;;  %v5626_v16 = vld [vmem:[#allocation2 + $0x160] sm:$0xff]  ;;  %16145 = vst [vmem:[#allocation66_spill] sm:$0xff] %v14418_v47  ;;  %v5694_v4 = vand.u32 4294901760, %v5628_v43  ;;  %v14439_v32 = vsub.f32 %v5624_v15, %v5686_v56  ;;  %v5696_v45 = vand.u32 4294901760, %v5631_v7  ;;  %v11130_v40 = vpack.c.bf16 %v14040_v42, %v14037_v17  ;;  %v5639_v17 = vld [vmem:[#allocation2 + $0x1c8] sm:$0xff] }
 0x546   : > { %11119 = vmatpush1.bf16.msra.mxu1 %v11118_v11  ;;  %v14422_v11 = vpack.c.bf16 %v5684_v28, %v5680_v13  ;;  %16148 = vst [vmem:[#allocation9_spill] sm:$0xff] %v14432_v20  ;;  %v14437_v13 = vsub.f32 %v5622_v49, %v5682_v36  ;;  %v5700_v28 = vand.u32 4294901760, %v5633_v44  ;;  %v11132_v41 = vpack.c.bf16 %v14059_v48, %v14054_v19  ;;  %v5634_v56 = vld [vmem:[#allocation2 + $0x1a0] sm:$0xff] }
 0x547   : > { %5567 = vmatmul.mubr.f32.vlgmr.msra.gmra.mrb[18].mxu0 %v16107_v5  ;;  %11121 = vmatprep.subr.bf16.mxu1 %v11120_v14  ;;  %v16147_v5 = vld [vmem:[#allocation96_spill] sm:$0xff]  ;;  %v5690_v14 = vand.u32 4294901760, %v5626_v16  ;;  %16149 = vst [vmem:[#allocation97_spill] sm:$0xff] %v14439_v32  ;;  %v14450_v49 = vpack.c.bf16 %v5692_v6, %v5688_v23  ;;  %v14452_v15 = vsub.f32 %v5627_v51, %v5688_v23 }
 0x548   : > { %16146 = vst [vmem:[#allocation8_spill] sm:$0xff] %v14422_v11  ;;  %10675 = vmatpush1.bf16.msra.mxu0 %v14396_v57  ;;  %5572 = vmatprep.mubr.f32.mxu0 %v15830_v29  ;;  %v5630_v57 = vld [vmem:[#allocation2 + $0x180] sm:$0xff]  ;;  %v16151_v32 = vld [vmem:[#allocation80_spill] sm:$0xff]  ;;  %v14456_v48 = vsub.f32 %v5629_v38, %v5692_v6  ;;  %v14463_v51 = vsub.f32 %v5628_v43, %v5694_v4  ;;  %v5706_v6 = vand.u32 4294901760, %v5634_v56 }
 0x549   : > { %8138 = vmatmul.mubr.f32.vlgmr.msra.gmra.mrb[12].mxu1 %v16147_v5  ;;  %10677 = vmatprep.subr.bf16.mxu0 %v14405_v2  ;;  %v5635_v5 = vld [vmem:[#allocation2 + $0x1a8] sm:$0xff]  ;;  %v5637_v2 = vld [vmem:[#allocation2 + $0x1b8] sm:$0xff]  ;;  %16150 = vst [vmem:[#allocation10_spill] sm:$0xff] %v14450_v49  ;;  %v5698_v36 = vand.u32 4294901760, %v5630_v57  ;;  %v14458_v19 = vpack.c.bf16 %v5694_v4, %v5690_v14  ;;  %v14461_v42 = vsub.f32 %v5626_v16, %v5690_v14 }
 0x54a   : > { %11123 = vmatpush1.bf16.msra.mxu1 %v11122_v54  ;;  %8143 = vmatprep.mubr.f32.mxu1 %v15830_v29  ;;  %16152 = vst [vmem:[#allocation11_spill] sm:$0xff] %v14456_v48  ;;  %v5704_v54 = vand.u32 4294901760, %v5635_v5  ;;  %v14465_v23 = vpack.c.bf16 %v5700_v28, %v5696_v45  ;;  %v14470_v38 = vsub.f32 %v5633_v44, %v5700_v28  ;;  %v5641_v48 = vld [vmem:[#allocation2 + $0x1d8] sm:$0xff]  ;;  %v5712_v28 = vand.u32 4294901760, %v5639_v17 }
 0x54b   : > { %5574 = vmatmul.mubr.f32.gmra.mrb[20].mxu0 %v16113_v31  ;;  %11125 = vmatprep.subr.bf16.mxu1 %v11124_v59  ;;  %v5702_v31 = vand.u32 4294901760, %v5632_v30  ;;  %v5636_v59 = vld [vmem:[#allocation2 + $0x1b0] sm:$0xff]  ;;  %16153 = vst [vmem:[#allocation100_spill] sm:$0xff] %v14458_v19  ;;  %v11136_v43 = vpack.c.bf16 %v14088_v0, %v14081_v21  ;;  %v11138_v16 = vpack.c.bf16 %v14096_v63, %v14092_v46  ;;  %v5643_v63 = vld [vmem:[#allocation2 + $0x1e8] sm:$0xff]  ;;  %v5645_v46 = vld [vmem:[#allocation2 + $0x1f8] sm:$0xff] }
 0x54c   : > { %10679 = vmatpush1.bf16.msra.mxu0 %v14418_v47  ;;  %5579 = vmatprep.mubr.f32.mxu0 %v15830_v29  ;;  %v5708_v47 = vand.u32 4294901760, %v5637_v2  ;;  %16154 = vst [vmem:[#allocation12_spill] sm:$0xff] %v14465_v23  ;;  %v14482_v44 = vsub.f32 %v5630_v57, %v5698_v36  ;;  %v14489_v4 = vsub.f32 %v5635_v5, %v5704_v54  ;;  %v5720_v5 = vand.u32 4294901760, %v5643_v63 }
 0x54d   : > { %8145 = vmatmul.mubr.f32.gmra.mrb[14].mxu1 %v16151_v32  ;;  %10681 = vmatprep.subr.bf16.mxu0 %v14422_v11  ;;  %v14468_v32 = vsub.f32 %v5631_v7, %v5696_v45  ;;  %v5710_v11 = vand.u32 4294901760, %v5636_v59  ;;  %v5640_v7 = vld [vmem:[#allocation2 + $0x1d0] sm:$0xff] }
 0x54e   : > { %11127 = vmatpush1.bf16.msra.mxu1 %v11126_v55  ;;  %8150 = vmatprep.mubr.f32.mxu1 %v15830_v29  ;;  %v14474_v55 = vpack.c.bf16 %v5702_v31, %v5698_v36  ;;  %v14486_v14 = vpack.c.bf16 %v5708_v47, %v5704_v54  ;;  %v14491_v45 = vsub.f32 %v5637_v2, %v5708_v47  ;;  %v5724_v54 = vand.u32 4294901760, %v5645_v46 }
 0x54f   : > { %5581 = vmatmul.mubr.f32.gmra.mrb[22].mxu0 %v16121_v9  ;;  %11129 = vmatprep.subr.bf16.mxu1 %v11128_v3  ;;  %v5638_v9 = vld [vmem:[#allocation2 + $0x1c0] sm:$0xff]  ;;  %v14484_v3 = vsub.f32 %v5632_v30, %v5702_v31  ;;  %v14494_v57 = vpack.c.bf16 %v5710_v11, %v5706_v6  ;;  %v14496_v30 = vsub.f32 %v5634_v56, %v5706_v6  ;;  %v5718_v31 = vand.u32 4294901760, %v5640_v7 }
 0x550   : > { %10683 = vmatpush1.bf16.msra.mxu0 %v14432_v20  ;;  %5586 = vmatprep.mubr.f32.mxu0 %v15830_v29  ;;  %16155 = vst [vmem:[#allocation13_spill] sm:$0xff] %v14474_v55  ;;  %16156 = vst [vmem:[#allocation14_spill] sm:$0xff] %v14486_v14  ;;  %v5716_v20 = vand.u32 4294901760, %v5641_v48  ;;  %v5714_v36 = vand.u32 4294901760, %v5638_v9  ;;  %v11140_v2 = vpack.c.bf16 %v14116_v52, %v14107_v1 }
 0x551   : > { %8152 = vmatmul.mubr.f32.gmra.mrb[16].mxu1 %v14222_v53  ;;  %10685 = vmatprep.subr.bf16.mxu0 %v14450_v49  ;;  %16157 = vst [vmem:[#allocation55_spill] sm:$0xff] %v14494_v57  ;;  %v16158_v56 = vpack.c.bf16 %v14066_v61, %v14064_v39  ;;  %v14517_v6 = vsub.f32 %v5639_v17, %v5712_v28  ;;  %v14526_v49 = vld [vmem:[#allocation2 + $0x1f0] sm:$0xff]  ;;  %v16162_v17 = vand.u32 4294901760, %v14389_v24 }
 0x552   : > { %11131 = vmatpush1.bf16.msra.mxu1 %v11130_v40  ;;  %8157 = vmatprep.mubr.f32.mxu1 %v15830_v29  ;;  %v14499_v40 = vsub.f32 %v5636_v59, %v5710_v11  ;;  %v11144_v11 = vpack.c.bf16 %v14143_v12, %v14139_v26  ;;  %v14515_v59 = vpack.c.bf16 %v5716_v20, %v5712_v28  ;;  %v16165_v26 = vld [vmem:[#allocation40_spill] sm:$0xff] }
 0x553   : > { %5588 = vmatmul.mubr.f32.gmra.mrb[24].mxu0 %v16128_v62  ;;  %11133 = vmatprep.subr.bf16.mxu1 %v11132_v41  ;;  %v11142_v41 = vpack.c.bf16 %v14125_v22, %v14123_v25  ;;  %v16160_v62 = vld [vmem:[#allocation132_spill] sm:$0xff]  ;;  %v5808_v28 = vsub.f32 %v14389_v24, %v16162_v17  ;;  %v14542_v53 = vsub.f32 %v5640_v7, %v5718_v31  ;;  %v16168_v7 = vand.u32 4294901760, %v14400_v18 }
 0x554   : > { %10687 = vmatpush1.bf16.msra.mxu0 %v14458_v19  ;;  %5760 = vmatprep.mubr.f32.mxu0 %v15830_v29  ;;  %16159 = vst [vmem:[#allocation58_spill] sm:$0xff] %v14515_v59  ;;  %v11146_v47 = vpack.c.bf16 %v16160_v62, %v14147_v60  ;;  %v14524_v19 = vpack.c.bf16 %v5718_v31, %v5714_v36  ;;  %v16163_v62 = vand.u32 4294901760, %v14391_v33 }
 0x555   : > { %8159 = vmatmul.mubr.f32.gmra.mrb[18].mxu1 %v14201_v8  ;;  %10689 = vmatprep.subr.bf16.mxu0 %v14465_v23  ;;  %v5642_v23 = vld [vmem:[#allocation2 + $0x1e0] sm:$0xff]  ;;  %v14522_v8 = vsub.f32 %v5641_v48, %v5716_v20  ;;  %v14540_v60 = vsub.f32 %v5638_v9, %v5714_v36  ;;  %v14546_v12 = vsub.f32 %v5643_v63, %v5720_v5  ;;  %v16166_v48 = vld [vmem:[#allocation18_spill] sm:$0xff]  ;;  %v16167_v20 = vand.u32 4294901760, %v14398_v35 }
 0x556   : > { %11135 = vmatpush1.bf16.msra.mxu1 %v16158_v56  ;;  %8293 = vmatprep.mubr.f32.mxu1 %v15830_v29  ;;  %16161 = vst [vmem:[#allocation62_spill] sm:$0xff] %v14524_v19  ;;  %v14544_v56 = vpack.c.bf16 %v5724_v54, %v5720_v5  ;;  %v14548_v17 = vsub.f32 %v5645_v46, %v5724_v54  ;;  %v5809_v46 = vand.u32 4294901760, %v5808_v28  ;;  %v16169_v5 = vand.u32 4294901760, %v14407_v50 }
 0x557   : > { %11137 = vmatprep.subr.bf16.mxu1 %v11136_v43  ;;  %v5820_v43 = vsub.f32 %v14391_v33, %v16163_v62  ;;  %v5764_v22 = vsub.f32 %v16166_v48, %v16165_v26  ;;  %v5814_v9 = vsub.f32 %v14398_v35, %v16167_v20  ;;  %v5826_v36 = vsub.f32 %v14400_v18, %v16168_v7  ;;  %v16171_v7 = vld [vmem:[#allocation82_spill] sm:$0xff] }
 0x558   : > { %10691 = vmatpush1.bf16.msra.mxu0 %v14474_v55  ;;  %16164 = vst [vmem:[#allocation65_spill] sm:$0xff] %v14544_v56  ;;  %v5722_v55 = vand.u32 4294901760, %v5642_v23  ;;  %v16170_v54 = vand.u32 4294901760, %v14409_v58 }
 0x559   : > { %10693 = vmatprep.subr.bf16.mxu0 %v14486_v14  ;;  %v5821_v31 = vand.u32 4294901760, %v5820_v43  ;;  %v16173_v43 = vand.u32 4294901760, %v14526_v49  ;;  %v16176_v14 = vld [vmem:[#allocation5_spill] sm:$0xff]  ;;  %v5815_v25 = vand.u32 4294901760, %v5814_v9  ;;  %v5827_v52 = vand.u32 4294901760, %v5826_v36 }
 0x55a   : > { %11139 = vmatpush1.bf16.msra.mxu1 %v11138_v16  ;;  %v5844_v20 = vsub.f32 %v14409_v58, %v16170_v54  ;;  %v14569_v62 = vsub.f32 %v5642_v23, %v5722_v55  ;;  %v16172_v16 = vld [vmem:[#allocation37_spill] sm:$0xff]  ;;  %v16182_v36 = vand.u32 4294901760, %v14428_v10 }
 0x55b   : > { %11141 = vmatprep.subr.bf16.mxu1 %v11140_v2  ;;  %v5832_v2 = vsub.f32 %v14407_v50, %v16169_v5  ;;  %v11148_v26 = vpack.c.bf16 %v16172_v16, %v16171_v7  ;;  %v16175_v5 = vld [vmem:[#allocation136_spill] sm:$0xff]  ;;  %v16178_v16 = vand.u32 4294901760, %v14411_v37 }
 0x55c   : > { %10695 = vmatpush1.bf16.msra.mxu0 %v14494_v57  ;;  %v14577_v57 = vpack.c.bf16 %v16173_v43, %v5722_v55  ;;  %v11150_v48 = vpack.c.bf16 %v16176_v14, %v16175_v5  ;;  %v14590_v55 = vand.u32 4294901760, %v5764_v22  ;;  %v10704_v43 = vpack.c.bf16 %v5821_v31, %v5809_v46  ;;  %v16184_v22 = vld [vmem:[#allocation89_spill] sm:$0xff] }
 0x55d   : > { %10697 = vmatprep.subr.bf16.mxu0 %v14515_v59  ;;  %v16177_v59 = vld [vmem:[#allocation97_spill] sm:$0xff]  ;;  %v5838_v63 = vsub.f32 %v14411_v37, %v16178_v16  ;;  %v5833_v14 = vand.u32 4294901760, %v5832_v2  ;;  %v5845_v54 = vand.u32 4294901760, %v5844_v20  ;;  %v5868_v16 = vsub.f32 %v14428_v10, %v16182_v36  ;;  %v16187_v2 = vld [vmem:[#allocation27_spill] sm:$0xff] }
 0x55e   : > { %11143 = vmatpush1.bf16.msra.mxu1 %v11142_v41  ;;  %16174 = vst [vmem:[#allocation72_spill] sm:$0xff] %v14577_v57  ;;  %v16179_v41 = vand.u32 4294901760, %v14420_v34  ;;  %16180 = vst [vmem:[#allocation73_spill] sm:$0xff] %v14590_v55  ;;  %v16186_v31 = vld [vmem:[#allocation45_spill] sm:$0xff]  ;;  %v10706_v36 = vpack.c.bf16 %v5827_v52, %v5815_v25 }
 0x55f   : > { %11145 = vmatprep.subr.bf16.mxu1 %v11144_v11  ;;  %v16181_v11 = vand.u32 4294901760, %v14426_v27  ;;  %v5786_v20 = vsub.f32 %v16187_v2, %v16186_v31  ;;  %v5839_v23 = vand.u32 4294901760, %v5838_v63  ;;  %v10708_v5 = vpack.c.bf16 %v5845_v54, %v5833_v14 }
 0x560   : > { %v5850_v28 = vsub.f32 %v14420_v34, %v16179_v41  ;;  %10699 = vmatpush1.bf16.msra.mxu0 %v14524_v19  ;;  %v16183_v41 = vld [vmem:[#allocation11_spill] sm:$0xff]  ;;  %v16185_v19 = vld [vmem:[#allocation101_spill] sm:$0xff]  ;;  %v15649_v31 = vand.u32 4294901760, %v14468_v32  ;;  %v15651_v2 = vand.u32 4294901760, %v14470_v38 }
 0x561   : > { %10701 = vmatprep.subr.bf16.mxu0 %v14544_v56  ;;  %v5856_v9 = vsub.f32 %v14426_v27, %v16181_v11  ;;  %v5775_v46 = vsub.f32 %v16185_v19, %v16184_v22  ;;  %v16188_v56 = vand.u32 4294901760, %v14437_v13  ;;  %v16189_v11 = vand.u32 4294901760, %v16177_v59 }
 0x562   : > { %11147 = vmatpush1.bf16.msra.mxu1 %v11146_v47  ;;  %v5851_v0 = vand.u32 4294901760, %v5850_v28  ;;  %v15647_v47 = vand.u32 4294901760, %v14461_v42  ;;  %v15648_v22 = vand.u32 4294901760, %v14463_v51  ;;  %v5869_v19 = vand.u32 4294901760, %v5868_v16  ;;  %v16197_v28 = vld [vmem:[#allocation94_spill] sm:$0xff] }
 0x563   : > { %v5862_v7 = vsub.f32 %v14437_v13, %v16188_v56  ;;  %v5874_v1 = vsub.f32 %v16177_v59, %v16189_v11  ;;  %11149 = vmatprep.subr.bf16.mxu1 %v11148_v26  ;;  %v5857_v56 = vand.u32 4294901760, %v5856_v9  ;;  %v16190_v11 = vand.u32 4294901760, %v14452_v15 }
 0x564   : > { %10703 = vmatpush1.bf16.msra.mxu0 %v14577_v57  ;;  %v16191_v25 = vand.u32 4294901760, %v16183_v41  ;;  %v10710_v9 = vpack.c.bf16 %v5851_v0, %v5839_v23  ;;  %v5886_v16 = vsub.f32 %v14461_v42, %v15647_v47  ;;  %v5904_v0 = vsub.f32 %v14468_v32, %v15649_v31  ;;  %v16194_v23 = vld [vmem:[#allocation131_spill] sm:$0xff]  ;;  %v16195_v47 = vld [vmem:[#allocation46_spill] sm:$0xff] }
 0x565   : > { %10705 = vmatprep.subr.bf16.mxu0 %v10704_v43  ;;  %v5880_v52 = vsub.f32 %v14452_v15, %v16190_v11  ;;  %v5863_v63 = vand.u32 4294901760, %v5862_v7  ;;  %v5875_v14 = vand.u32 4294901760, %v5874_v1  ;;  %v16192_v43 = vld [vmem:[#allocation71_spill] sm:$0xff]  ;;  %v14632_v1 = vand.u32 4294901760, %v5775_v46 }
 0x566   : > { %v5892_v26 = vsub.f32 %v16183_v41, %v16191_v25  ;;  %11151 = vmatpush1.bf16.msra.mxu1 %v11150_v48  ;;  %v5898_v48 = vsub.f32 %v14463_v51, %v15648_v22  ;;  %v5916_v7 = vsub.f32 %v14470_v38, %v15651_v2  ;;  %v16196_v25 = vld [vmem:[#allocation32_spill] sm:$0xff]  ;;  %v16198_v31 = vand.u32 4294901760, %v14482_v44 }
 0x567   : > { %5766 = vmatmul.mubr.f32.vlgmr.msra.gmra.mrb[18].mxu0 %v14590_v55  ;;  %11153 = vmatprep.subr.bf16.mxu1 %v16192_v43  ;;  %16193 = vst [vmem:[#allocation97_spill] sm:$0xff] %v14632_v1  ;;  %v5797_v46 = vsub.f32 %v16196_v25, %v16195_v47  ;;  %v5881_v11 = vand.u32 4294901760, %v5880_v52  ;;  %v10714_v22 = vpack.c.bf16 %v5875_v14, %v5863_v63  ;;  %v16199_v2 = vand.u32 4294901760, %v14484_v3  ;;  %v16203_v25 = vld [vmem:[#allocation86_spill] sm:$0xff] }
 0x568   : > { %10707 = vmatpush1.bf16.msra.mxu0 %v10706_v36  ;;  %5771 = vmatprep.mubr.f32.mxu0 %v15830_v29  ;;  %v10712_v36 = vpack.c.bf16 %v5869_v19, %v5857_v56  ;;  %v5893_v54 = vand.u32 4294901760, %v5892_v26  ;;  %v5910_v55 = vsub.f32 %v14482_v44, %v16198_v31  ;;  %v16200_v19 = vld [vmem:[#allocation103_spill] sm:$0xff]  ;;  %v16202_v52 = vand.u32 4294901760, %v14491_v45  ;;  %v16206_v31 = vld [vmem:[#allocation106_spill] sm:$0xff] }
 0x569   : > { %8296 = vmatmul.mubr.f32.vlgmr.msra.gmra.mrb[12].mxu1 %v16194_v23  ;;  %10709 = vmatprep.subr.bf16.mxu0 %v10708_v5  ;;  %v5922_v57 = vsub.f32 %v14484_v3, %v16199_v2  ;;  %v16201_v5 = vand.u32 4294901760, %v14489_v4  ;;  %v5887_v2 = vand.u32 4294901760, %v5886_v16  ;;  %v5899_v14 = vand.u32 4294901760, %v5898_v48 }
 0x56a   : > { %11155 = vmatpush1.bf16.msra.mxu1 %v16197_v28  ;;  %8301 = vmatprep.mubr.f32.mxu1 %v15830_v29  ;;  %v5940_v26 = vsub.f32 %v14491_v45, %v16202_v52  ;;  %v5917_v47 = vand.u32 4294901760, %v5916_v7  ;;  %v16205_v63 = vand.u32 4294901760, %v14526_v49  ;;  %v14677_v16 = vand.u32 4294901760, %v5797_v46  ;;  %v16211_v28 = vld [vmem:[#allocation134_spill] sm:$0xff] }
 0x56b   : > { %5777 = vmatmul.mubr.f32.gmra.mrb[20].mxu0 %v14632_v1  ;;  %11157 = vmatprep.subr.bf16.mxu1 %v16200_v19  ;;  %v5928_v56 = vsub.f32 %v14489_v4, %v16201_v5  ;;  %v5905_v1 = vand.u32 4294901760, %v5904_v0  ;;  %v14666_v19 = vand.u32 4294901760, %v5786_v20  ;;  %v10716_v5 = vpack.c.bf16 %v5893_v54, %v5881_v11  ;;  %v16208_v54 = vld [vmem:[#allocation109_spill] sm:$0xff] }
 0x56c   : > { %10711 = vmatpush1.bf16.msra.mxu0 %v10710_v9  ;;  %5782 = vmatprep.mubr.f32.mxu0 %v15830_v29  ;;  %v14673_v9 = vsub.f32 %v14526_v49, %v16205_v63  ;;  %16207 = vst [vmem:[#allocation71_spill] sm:$0xff] %v14677_v16  ;;  %v5911_v48 = vand.u32 4294901760, %v5910_v55  ;;  %v5923_v20 = vand.u32 4294901760, %v5922_v57  ;;  %v5941_v0 = vand.u32 4294901760, %v5940_v26 }
 0x56d   : > { %8304 = vmatmul.mubr.f32.gmra.mrb[14].mxu1 %v16203_v25  ;;  %16204 = vst [vmem:[#allocation11_spill] sm:$0xff] %v14666_v19  ;;  %10713 = vmatprep.subr.bf16.mxu0 %v10712_v36  ;;  %v5929_v11 = vand.u32 4294901760, %v5928_v56  ;;  %v16209_v7 = vand.u32 4294901760, %v14496_v30  ;;  %v16210_v49 = vand.u32 4294901760, %v14499_v40  ;;  %v10718_v46 = vpack.c.bf16 %v5899_v14, %v5887_v2 }
 0x56e   : > { %11159 = vmatpush1.bf16.msra.mxu1 %v16206_v31  ;;  %8309 = vmatprep.mubr.f32.mxu1 %v15830_v29  ;;  %v10720_v55 = vpack.c.bf16 %v5917_v47, %v5905_v1  ;;  %v15657_v57 = vand.u32 4294901760, %v14540_v60  ;;  %v16212_v56 = vand.u32 4294901760, %v14517_v6  ;;  %v16214_v47 = vld [vmem:[#allocation112_spill] sm:$0xff]  ;;  %v16215_v1 = vld [vmem:[#allocation115_spill] sm:$0xff]  ;;  %v10722_v14 = vpack.c.bf16 %v5923_v20, %v5911_v48  ;;  %v16224_v31 = vld [vmem:[#allocation125_spill] sm:$0xff] }
 0x56f   : > { %5788 = vmatmul.mubr.f32.gmra.mrb[22].mxu0 %v14666_v19  ;;  %11161 = vmatprep.subr.bf16.mxu1 %v16208_v54  ;;  %v5934_v36 = vsub.f32 %v14496_v30, %v16209_v7  ;;  %v5946_v63 = vsub.f32 %v14499_v40, %v16210_v49  ;;  %v16213_v7 = vand.u32 4294901760, %v14522_v8  ;;  %v15658_v19 = vand.u32 4294901760, %v14569_v62  ;;  %v16223_v54 = vld [vmem:[#allocation121_spill] sm:$0xff] }
 0x570   : > { %10715 = vmatpush1.bf16.msra.mxu0 %v10714_v22  ;;  %5793 = vmatprep.mubr.f32.mxu0 %v15830_v29  ;;  %v5952_v26 = vsub.f32 %v14517_v6, %v16212_v56  ;;  %v16216_v22 = vand.u32 4294901760, %v14542_v53 }
 0x571   : > { %8312 = vmatmul.mubr.f32.gmra.mrb[16].mxu1 %v16211_v28  ;;  %10717 = vmatprep.subr.bf16.mxu0 %v10716_v5  ;;  %v5964_v49 = vsub.f32 %v14522_v8, %v16213_v7  ;;  %v10724_v5 = vpack.c.bf16 %v5941_v0, %v5929_v11  ;;  %v5935_v52 = vand.u32 4294901760, %v5934_v36  ;;  %v5947_v56 = vand.u32 4294901760, %v5946_v63 }
 0x572   : > { %11163 = vmatpush1.bf16.msra.mxu1 %v16214_v47  ;;  %8317 = vmatprep.mubr.f32.mxu1 %v15830_v29  ;;  %v5958_v7 = vsub.f32 %v14540_v60, %v15657_v57  ;;  %v5970_v2 = vsub.f32 %v14542_v53, %v16216_v22  ;;  %v5953_v48 = vand.u32 4294901760, %v5952_v26  ;;  %v16218_v11 = vand.u32 4294901760, %v14546_v12  ;;  %v16221_v22 = vld [vmem:[#allocation119_spill] sm:$0xff] }
 0x573   : > { %5799 = vmatmul.mubr.f32.gmra.mrb[24].mxu0 %v14677_v16  ;;  %11165 = vmatprep.subr.bf16.mxu1 %v16215_v1  ;;  %v16217_v16 = vld [vmem:[#allocation135_spill] sm:$0xff]  ;;  %v5965_v20 = vand.u32 4294901760, %v5964_v49  ;;  %v16219_v36 = vand.u32 4294901760, %v14548_v17  ;;  %v10726_v57 = vpack.c.bf16 %v5947_v56, %v5935_v52  ;;  %v5982_v26 = vsub.f32 %v14569_v62, %v15658_v19  ;;  %v16226_v19 = vld [vmem:[#allocation76_spill] sm:$0xff] }
 0x574   : > { %10719 = vmatpush1.bf16.msra.mxu0 %v10718_v46  ;;  %6029 = vmatprep.mubr.f32.mxu0 %v15830_v29  ;;  %v5976_v0 = vsub.f32 %v14546_v12, %v16218_v11  ;;  %v16220_v46 = vld [vmem:[#allocation118_spill] sm:$0xff]  ;;  %v5959_v47 = vand.u32 4294901760, %v5958_v7  ;;  %v16222_v49 = vand.u32 4294901760, %v14673_v9  ;;  %v16225_v7 = vld [vmem:[#allocation127_spill] sm:$0xff] }
 0x575   : > { %8320 = vmatmul.mubr.f32.gmra.mrb[18].mxu1 %v16217_v16  ;;  %10721 = vmatprep.subr.bf16.mxu0 %v10720_v55  ;;  %v5988_v63 = vsub.f32 %v14548_v17, %v16219_v36  ;;  %v5971_v55 = vand.u32 4294901760, %v5970_v2  ;;  %v10728_v36 = vpack.c.bf16 %v5965_v20, %v5953_v48  ;;  %v16227_v48 = vld [vmem:[#allocation79_spill] sm:$0xff]  ;;  %v16228_v20 = vld [vmem:[#allocation81_spill] sm:$0xff] }
 0x576   : > { %11167 = vmatpush1.bf16.msra.mxu1 %v16220_v46  ;;  %8422 = vmatprep.mubr.f32.mxu1 %v15830_v29  ;;  %v5994_v11 = vsub.f32 %v14673_v9, %v16222_v49  ;;  %v5977_v1 = vand.u32 4294901760, %v5976_v0  ;;  %v16231_v0 = vld [vmem:[#allocation99_spill] sm:$0xff] }
 0x577   : > { %11169 = vmatprep.subr.bf16.mxu1 %v16221_v22  ;;  %v5989_v46 = vand.u32 4294901760, %v5988_v63  ;;  %v10730_v52 = vpack.c.bf16 %v5971_v55, %v5959_v47  ;;  %v16232_v63 = vand.u32 4294901760, %v16231_v0 }
 0x578   : > { %10723 = vmatpush1.bf16.msra.mxu0 %v10722_v14  ;;  %v5983_v14 = vand.u32 4294901760, %v5982_v26  ;;  %v5995_v2 = vand.u32 4294901760, %v5994_v11  ;;  %v16233_v26 = vld [vmem:[#allocation133_spill] sm:$0xff]  ;;  %v16234_v11 = vld [vmem:[#allocation22_spill] sm:$0xff] }
 0x579   : > { %10725 = vmatprep.subr.bf16.mxu0 %v10724_v5  ;;  %v10732_v56 = vpack.c.bf16 %v5989_v46, %v5977_v1  ;;  %v10736_v5 = vpack.c.bf16 %v14391_v33, %v14389_v24  ;;  %v10738_v1 = vpack.c.bf16 %v14400_v18, %v14398_v35  ;;  %v10740_v46 = vpack.c.bf16 %v14409_v58, %v14407_v50 }
 0x57a   : > { %11171 = vmatpush1.bf16.msra.mxu1 %v16223_v54  ;;  %v10734_v49 = vpack.c.bf16 %v5995_v2, %v5983_v14 }
 0x57b   : > { %11173 = vmatprep.subr.bf16.mxu1 %v16224_v31 }
 0x57c   : > { %10727 = vmatpush1.bf16.msra.mxu0 %v10726_v57  ;;  %v16229_v57 = vld [vmem:[#allocation95_spill] sm:$0xff] }
 0x57d   : > { %10729 = vmatprep.subr.bf16.mxu0 %v10728_v36  ;;  %v16230_v47 = vand.u32 4294901760, %v16229_v57  ;;  %v16235_v36 = vand.u32 4294901760, %v16234_v11  ;;  %v16239_v57 = vld [vmem:[#allocation104_spill] sm:$0xff]  ;;  %v10744_v11 = vpack.c.bf16 %v14428_v10, %v14426_v27 }
 0x57e   : > { %11175 = vmatpush1.bf16.msra.mxu1 %v16225_v7 }
 0x57f   : > { %11177 = vmatprep.subr.bf16.mxu1 %v16226_v19  ;;  %v11184_v55 = vpack.c.bf16 %v16232_v63, %v16230_v47  ;;  %v16240_v47 = vand.u32 4294901760, %v16239_v57  ;;  %v16248_v57 = vld [vmem:[#allocation20_spill] sm:$0xff] }
 0x580   : > { %10731 = vmatpush1.bf16.msra.mxu0 %v10730_v52  ;;  %v16236_v52 = vld [vmem:[#allocation102_spill] sm:$0xff] }
 0x581   : > { %10733 = vmatprep.subr.bf16.mxu0 %v10732_v56  ;;  %v16237_v14 = vand.u32 4294901760, %v16236_v52  ;;  %v16238_v56 = vld [vmem:[#allocation98_spill] sm:$0xff]  ;;  %v16246_v52 = vld [vmem:[#allocation108_spill] sm:$0xff] }
 0x582   : > { %11179 = vmatpush1.bf16.msra.mxu1 %v16227_v48 }
 0x583   : > { %11181 = vmatprep.subr.bf16.mxu1 %v16228_v20  ;;  %v11186_v2 = vpack.c.bf16 %v16237_v14, %v16235_v36  ;;  %v16247_v14 = vand.u32 4294901760, %v16246_v52  ;;  %v16256_v52 = vld [vmem:[#allocation114_spill] sm:$0xff] }
 0x584   : > { %10735 = vmatpush1.bf16.msra.mxu0 %v10734_v49  ;;  %v16241_v49 = vld [vmem:[#allocation105_spill] sm:$0xff] }
 0x585   : > { %10737 = vmatprep.subr.bf16.mxu0 %v10736_v5  ;;  %v16242_v0 = vand.u32 4294901760, %v16241_v49  ;;  %v10742_v5 = vpack.c.bf16 %v14420_v34, %v14411_v37 }
 0x586   : > { %11183 = vmatpush1.bf16.msra.mxu1 %v16233_v26  ;;  %v16243_v26 = vand.u32 4294901760, %v16194_v23 }
 0x587   : > { %6031 = vmatmul.mubr.f32.vlgmr.msra.gmra.mrb[18].mxu0 %v16238_v56  ;;  %11185 = vmatprep.subr.bf16.mxu1 %v11184_v55  ;;  %v11188_v63 = vpack.c.bf16 %v16242_v0, %v16240_v47  ;;  %v16244_v55 = vld [vmem:[#allocation107_spill] sm:$0xff]  ;;  %v16249_v47 = vld [vmem:[#allocation110_spill] sm:$0xff] }
 0x588   : > { %10739 = vmatpush1.bf16.msra.mxu0 %v10738_v1  ;;  %6036 = vmatprep.mubr.f32.mxu0 %v15830_v29  ;;  %v16245_v36 = vand.u32 4294901760, %v16244_v55  ;;  %v16250_v49 = vand.u32 4294901760, %v16249_v47  ;;  %v16251_v0 = vld [vmem:[#allocation111_spill] sm:$0xff]  ;;  %v10748_v55 = vpack.c.bf16 %v16183_v41, %v14452_v15  ;;  %v16258_v47 = vld [vmem:[#allocation24_spill] sm:$0xff] }
 0x589   : > { %8426 = vmatmul.mubr.f32.vlgmr.msra.gmra.mrb[12].mxu1 %v16243_v26  ;;  %10741 = vmatprep.subr.bf16.mxu0 %v10740_v46  ;;  %v16252_v23 = vand.u32 4294901760, %v16251_v0  ;;  %v10746_v46 = vpack.c.bf16 %v16177_v59, %v14437_v13 }
 0x58a   : > { %11187 = vmatpush1.bf16.msra.mxu1 %v11186_v2  ;;  %8431 = vmatprep.mubr.f32.mxu1 %v15830_v29  ;;  %v11190_v1 = vpack.c.bf16 %v16247_v14, %v16245_v36  ;;  %v16253_v2 = vand.u32 4294901760, %v16203_v25  ;;  %v16257_v14 = vand.u32 4294901760, %v16256_v52  ;;  %v16266_v52 = vld [vmem:[#allocation28_spill] sm:$0xff] }
 0x58b   : > { %6038 = vmatmul.mubr.f32.gmra.mrb[20].mxu0 %v16248_v57  ;;  %11189 = vmatprep.subr.bf16.mxu1 %v11188_v63  ;;  %v11192_v26 = vpack.c.bf16 %v16252_v23, %v16250_v49  ;;  %v16254_v63 = vld [vmem:[#allocation113_spill] sm:$0xff]  ;;  %v16259_v49 = vld [vmem:[#allocation116_spill] sm:$0xff] }
 0x58c   : > { %10743 = vmatpush1.bf16.msra.mxu0 %v10742_v5  ;;  %6043 = vmatprep.mubr.f32.mxu0 %v15830_v29  ;;  %v16255_v36 = vand.u32 4294901760, %v16254_v63  ;;  %v16260_v0 = vand.u32 4294901760, %v16259_v49  ;;  %v16261_v23 = vld [vmem:[#allocation117_spill] sm:$0xff]  ;;  %v10752_v63 = vpack.c.bf16 %v14470_v38, %v14468_v32  ;;  %v16268_v49 = vld [vmem:[#allocation120_spill] sm:$0xff] }
 0x58d   : > { %8435 = vmatmul.mubr.f32.gmra.mrb[14].mxu1 %v16253_v2  ;;  %10745 = vmatprep.subr.bf16.mxu0 %v10744_v11  ;;  %v16262_v25 = vand.u32 4294901760, %v16261_v23  ;;  %v10750_v11 = vpack.c.bf16 %v14463_v51, %v14461_v42 }
 0x58e   : > { %11191 = vmatpush1.bf16.msra.mxu1 %v11190_v1  ;;  %8440 = vmatprep.mubr.f32.mxu1 %v15830_v29  ;;  %v11194_v5 = vpack.c.bf16 %v16257_v14, %v16255_v36  ;;  %v16263_v1 = vand.u32 4294901760, %v16211_v28  ;;  %v16265_v36 = vand.u32 4294901760, %v14066_v61  ;;  %v16267_v14 = vand.u32 4294901760, %v14081_v21  ;;  %v16271_v61 = vld [vmem:[#allocation122_spill] sm:$0xff]  ;;  %v16273_v21 = vld [vmem:[#allocation123_spill] sm:$0xff] }
 0x58f   : > { %6045 = vmatmul.mubr.f32.gmra.mrb[22].mxu0 %v16258_v47  ;;  %11193 = vmatprep.subr.bf16.mxu1 %v11192_v26  ;;  %v11196_v2 = vpack.c.bf16 %v16262_v25, %v16260_v0  ;;  %v16264_v26 = vand.u32 4294901760, %v14064_v39  ;;  %v16269_v28 = vand.u32 4294901760, %v16268_v49  ;;  %v10756_v39 = vpack.c.bf16 %v14491_v45, %v14489_v4 }
 0x590   : > { %10747 = vmatpush1.bf16.msra.mxu0 %v10746_v46  ;;  %6050 = vmatprep.mubr.f32.mxu0 %v15830_v29  ;;  %v16272_v23 = vand.u32 4294901760, %v16271_v61  ;;  %v16274_v25 = vand.u32 4294901760, %v16273_v21  ;;  %v16285_v21 = vld [vmem:[#allocation78_spill] sm:$0xff] }
 0x591   : > { %8444 = vmatmul.mubr.f32.gmra.mrb[16].mxu1 %v16263_v1  ;;  %10749 = vmatprep.subr.bf16.mxu0 %v10748_v55  ;;  %v11198_v46 = vpack.c.bf16 %v16265_v36, %v16264_v26  ;;  %v11200_v0 = vpack.c.bf16 %v16269_v28, %v16267_v14  ;;  %v10754_v55 = vpack.c.bf16 %v14484_v3, %v14482_v44  ;;  %v16277_v26 = vld [vmem:[#allocation126_spill] sm:$0xff]  ;;  %v16281_v28 = vld [vmem:[#allocation129_spill] sm:$0xff] }
 0x592   : > { %11195 = vmatpush1.bf16.msra.mxu1 %v11194_v5  ;;  %8449 = vmatprep.mubr.f32.mxu1 %v15830_v29  ;;  %v16270_v5 = vand.u32 4294901760, %v16217_v16  ;;  %v16278_v36 = vand.u32 4294901760, %v16277_v26  ;;  %v10758_v16 = vpack.c.bf16 %v14499_v40, %v14496_v30  ;;  %v16289_v26 = vld [vmem:[#allocation132_spill] sm:$0xff] }
 0x593   : > { %6052 = vmatmul.mubr.f32.gmra.mrb[24].mxu0 %v16266_v52  ;;  %11197 = vmatprep.subr.bf16.mxu1 %v11196_v2  ;;  %v11202_v2 = vpack.c.bf16 %v16274_v25, %v16272_v23  ;;  %v16286_v25 = vand.u32 4294901760, %v16285_v21 }
 0x594   : > { %10751 = vmatpush1.bf16.msra.mxu0 %v10750_v11  ;;  %6186 = vmatprep.mubr.f32.mxu0 %v15830_v29  ;;  %v16275_v11 = vld [vmem:[#allocation124_spill] sm:$0xff] }
 0x595   : > { %8453 = vmatmul.mubr.f32.gmra.mrb[18].mxu1 %v16270_v5  ;;  %10753 = vmatprep.subr.bf16.mxu0 %v10752_v63  ;;  %v16276_v1 = vand.u32 4294901760, %v16275_v11  ;;  %v10760_v63 = vpack.c.bf16 %v14522_v8, %v14517_v6  ;;  %v16282_v5 = vand.u32 4294901760, %v16281_v28  ;;  %v16293_v28 = vld [vmem:[#allocation37_spill] sm:$0xff] }
 0x596   : > { %11199 = vmatpush1.bf16.msra.mxu1 %v11198_v46  ;;  %8619 = vmatprep.mubr.f32.mxu1 %v15830_v29  ;;  %v16279_v46 = vld [vmem:[#allocation128_spill] sm:$0xff] }
 0x597   : > { %11201 = vmatprep.subr.bf16.mxu1 %v11200_v0  ;;  %v11204_v14 = vpack.c.bf16 %v16278_v36, %v16276_v1  ;;  %v16280_v49 = vand.u32 4294901760, %v16279_v46  ;;  %v16283_v0 = vld [vmem:[#allocation77_spill] sm:$0xff]  ;;  %v16290_v36 = vand.u32 4294901760, %v16289_v26  ;;  %v16304_v26 = vld [vmem:[#allocation94_spill] sm:$0xff] }
 0x598   : > { %10755 = vmatpush1.bf16.msra.mxu0 %v10754_v55  ;;  %v16284_v23 = vand.u32 4294901760, %v16283_v0  ;;  %v10762_v55 = vpack.c.bf16 %v14542_v53, %v14540_v60 }
 0x599   : > { %10757 = vmatprep.subr.bf16.mxu0 %v10756_v39  ;;  %v11206_v61 = vpack.c.bf16 %v16282_v5, %v16280_v49  ;;  %v10764_v39 = vpack.c.bf16 %v14548_v17, %v14546_v12  ;;  %v16294_v5 = vand.u32 4294901760, %v16293_v28  ;;  %v16310_v28 = vld [vmem:[#allocation106_spill] sm:$0xff] }
 0x59a   : > { %11203 = vmatpush1.bf16.msra.mxu1 %v11202_v2  ;;  %v11208_v11 = vpack.c.bf16 %v16286_v25, %v16284_v23  ;;  %v16287_v2 = vld [vmem:[#allocation130_spill] sm:$0xff] }
 0x59b   : > { %11205 = vmatprep.subr.bf16.mxu1 %v11204_v14  ;;  %v16288_v1 = vand.u32 4294901760, %v16287_v2  ;;  %v16291_v14 = vld [vmem:[#allocation82_spill] sm:$0xff]  ;;  %v16299_v2 = vld [vmem:[#allocation57_spill] sm:$0xff] }
 0x59c   : > { %10759 = vmatpush1.bf16.msra.mxu0 %v10758_v16  ;;  %v16292_v49 = vand.u32 4294901760, %v16291_v14  ;;  %v10766_v16 = vpack.c.bf16 %v14673_v9, %v14569_v62  ;;  %v16307_v14 = vld [vmem:[#allocation66_spill] sm:$0xff] }
 0x59d   : > { %10761 = vmatprep.subr.bf16.mxu0 %v10760_v63  ;;  %v11210_v46 = vpack.c.bf16 %v16290_v36, %v16288_v1  ;;  %v16295_v63 = vld [vmem:[#allocation136_spill] sm:$0xff]  ;;  %v16303_v1 = vld [vmem:[#allocation7_spill] sm:$0xff]  ;;  %v16305_v36 = vld [vmem:[#allocation101_spill] sm:$0xff] }
 0x59e   : > { %11207 = vmatpush1.bf16.msra.mxu1 %v11206_v61  ;;  %v11212_v0 = vpack.c.bf16 %v16294_v5, %v16292_v49  ;;  %v16296_v23 = vand.u32 4294901760, %v16295_v63  ;;  %v16297_v61 = vld [vmem:[#allocation5_spill] sm:$0xff]  ;;  %v16309_v49 = vld [vmem:[#allocation8_spill] sm:$0xff]  ;;  %v16311_v5 = vld [vmem:[#allocation27_spill] sm:$0xff] }
 0x59f   : > { %11209 = vmatprep.subr.bf16.mxu1 %v11208_v11  ;;  %v16298_v21 = vand.u32 4294901760, %v16297_v61  ;;  %v16300_v11 = vld [vmem:[#allocation18_spill] sm:$0xff]  ;;  %v16314_v63 = vld [vmem:[#allocation39_spill] sm:$0xff]  ;;  %v16316_v61 = vld [vmem:[#allocation112_spill] sm:$0xff] }
 0x5a0   : > { %10763 = vmatpush1.bf16.msra.mxu0 %v10762_v55  ;;  %v16301_v55 = vld [vmem:[#allocation6_spill] sm:$0xff] }
 0x5a1   : > { %10765 = vmatprep.subr.bf16.mxu0 %v10764_v39  ;;  %v11214_v25 = vpack.c.bf16 %v16298_v21, %v16296_v23  ;;  %v16302_v39 = vld [vmem:[#allocation96_spill] sm:$0xff]  ;;  %v16315_v23 = vld [vmem:[#allocation10_spill] sm:$0xff] }
 0x5a2   : > { %11211 = vmatpush1.bf16.msra.mxu1 %v11210_v46  ;;  %v16306_v46 = vld [vmem:[#allocation103_spill] sm:$0xff]  ;;  %v16317_v21 = vld [vmem:[#allocation32_spill] sm:$0xff] }
 0x5a3   : > { %11213 = vmatprep.subr.bf16.mxu1 %v11212_v0  ;;  %v16312_v0 = vld [vmem:[#allocation109_spill] sm:$0xff] }
 0x5a4   : > { %10767 = vmatpush1.bf16.msra.mxu0 %v10766_v16  ;;  %v16313_v16 = vld [vmem:[#allocation9_spill] sm:$0xff] }
 0x5a5   : > { %10769 = vmatprep.subr.bf16.mxu0 %v16299_v2 }
 0x5a6   : > { %11215 = vmatpush1.bf16.msra.mxu1 %v11214_v25  ;;  %v16318_v25 = vld [vmem:[#allocation115_spill] sm:$0xff] }
 0x5a7   : > { %6189 = vmatmul.mubr.f32.vlgmr.msra.gmra.mrb[18].mxu0 %v16300_v11  ;;  %11217 = vmatprep.subr.bf16.mxu1 %v16192_v43  ;;  %v16308_v43 = vld [vmem:[#allocation80_spill] sm:$0xff] }
 0x5a8   : > { %10771 = vmatpush1.bf16.msra.mxu0 %v16301_v55  ;;  %6194 = vmatprep.mubr.f32.mxu0 %v15830_v29  ;;  %v16319_v11 = vld [vmem:[#allocation100_spill] sm:$0xff] }
 0x5a9   : > { %8621 = vmatmul.mubr.f32.vlgmr.msra.gmra.mrb[12].mxu1 %v16302_v39  ;;  %10773 = vmatprep.subr.bf16.mxu0 %v16303_v1 }
 0x5aa   : > { %11219 = vmatpush1.bf16.msra.mxu1 %v16304_v26  ;;  %8626 = vmatprep.mubr.f32.mxu1 %v15830_v29  ;;  %v16320_v26 = vld [vmem:[#allocation83_spill] sm:$0xff] }
 0x5ab   : > { %6197 = vmatmul.mubr.f32.gmra.mrb[20].mxu0 %v16305_v36  ;;  %11221 = vmatprep.subr.bf16.mxu1 %v16306_v46  ;;  %v16321_v36 = vld [vmem:[#allocation12_spill] sm:$0xff]  ;;  %v16322_v46 = vld [vmem:[#allocation118_spill] sm:$0xff] }
 0x5ac   : > { %10775 = vmatpush1.bf16.msra.mxu0 %v16307_v14  ;;  %6202 = vmatprep.mubr.f32.mxu0 %v15830_v29 }
 0x5ad   : > { %8628 = vmatmul.mubr.f32.gmra.mrb[14].mxu1 %v16308_v43  ;;  %10777 = vmatprep.subr.bf16.mxu0 %v16309_v49 }
 0x5ae   : > { %11223 = vmatpush1.bf16.msra.mxu1 %v16310_v28  ;;  %8633 = vmatprep.mubr.f32.mxu1 %v15830_v29  ;;  %v16323_v28 = vld [vmem:[#allocation13_spill] sm:$0xff] }
 0x5af   : > { %6205 = vmatmul.mubr.f32.gmra.mrb[22].mxu0 %v16311_v5  ;;  %11225 = vmatprep.subr.bf16.mxu1 %v16312_v0  ;;  %v16324_v5 = vld [vmem:[#allocation14_spill] sm:$0xff]  ;;  %v16325_v0 = vld [vmem:[#allocation55_spill] sm:$0xff] }
 0x5b0   : > { %10779 = vmatpush1.bf16.msra.mxu0 %v16313_v16  ;;  %6210 = vmatprep.mubr.f32.mxu0 %v15830_v29 }
 0x5b1   : > { %8635 = vmatmul.mubr.f32.gmra.mrb[16].mxu1 %v16314_v63  ;;  %10781 = vmatprep.subr.bf16.mxu0 %v16315_v23 }
 0x5b2   : > { %11227 = vmatpush1.bf16.msra.mxu1 %v16316_v61  ;;  %8640 = vmatprep.mubr.f32.mxu1 %v15830_v29  ;;  %v16326_v61 = vld [vmem:[#allocation58_spill] sm:$0xff] }
 0x5b3   : > { %6213 = vmatmul.mubr.f32.gmra.mrb[24].mxu0 %v16317_v21  ;;  %11229 = vmatprep.subr.bf16.mxu1 %v16318_v25  ;;  %v16327_v21 = vld [vmem:[#allocation62_spill] sm:$0xff]  ;;  %v16328_v25 = vld [vmem:[#allocation65_spill] sm:$0xff] }
 0x5b4   : > { %10783 = vmatpush1.bf16.msra.mxu0 %v16319_v11  ;;  %6315 = vmatprep.mubr.f32.mxu0 %v15830_v29 }
 0x5b5   : > { %8642 = vmatmul.mubr.f32.gmra.mrb[18].mxu1 %v16320_v26  ;;  %10785 = vmatprep.subr.bf16.mxu0 %v16321_v36 }
 0x5b6   : > { %11231 = vmatpush1.bf16.msra.mxu1 %v16322_v46  ;;  %8744 = vmatprep.mubr.f32.mxu1 %v15830_v29  ;;  %v16330_v46 = vand.u32 4294901760, %v14391_v33  ;;  %v16337_v33 = vld [vmem:[#allocation40_spill] sm:$0xff] }
 0x5b7   : > { %11233 = vmatprep.subr.bf16.mxu1 %v16221_v22  ;;  %v16329_v22 = vand.u32 4294901760, %v14389_v24 }
 0x5b8   : > { %10787 = vmatpush1.bf16.msra.mxu0 %v16323_v28 }
 0x5b9   : > { %10789 = vmatprep.subr.bf16.mxu0 %v16324_v5  ;;  %v10800_v5 = vpack.c.bf16 %v16330_v46, %v16329_v22  ;;  %v16352_v22 = vld [vmem:[#allocation46_spill] sm:$0xff]  ;;  %v16353_v46 = vand.u32 4294901760, %v14482_v44  ;;  %v16359_v44 = vand.u32 4294901760, %v14517_v6  ;;  %v16366_v6 = vand.u32 4294901760, %v14673_v9  ;;  %v16373_v9 = vld [vmem:[#allocation19_spill] sm:$0xff] }
 0x5ba   : > { %11235 = vmatpush1.bf16.msra.mxu1 %v16223_v54  ;;  %v16332_v54 = vand.u32 4294901760, %v14398_v35  ;;  %v16339_v35 = vand.u32 4294901760, %v14420_v34  ;;  %v16344_v34 = vand.u32 4294901760, %v16177_v59  ;;  %v16349_v59 = vand.u32 4294901760, %v14463_v51 }
 0x5bb   : > { %11237 = vmatprep.subr.bf16.mxu1 %v16224_v31  ;;  %v16331_v31 = vld [vmem:[#allocation72_spill] sm:$0xff]  ;;  %v16356_v51 = vand.u32 4294901760, %v14491_v45  ;;  %v16363_v45 = vand.u32 4294901760, %v14546_v12  ;;  %v16367_v12 = vld [vmem:[#allocation14_spill] sm:$0xff] }
 0x5bc   : > { %10791 = vmatpush1.bf16.msra.mxu0 %v16325_v0 }
 0x5bd   : > { %10793 = vmatprep.subr.bf16.mxu0 %v16326_v61  ;;  %v16336_v61 = vld [vmem:[#allocation133_spill] sm:$0xff] }
 0x5be   : > { %11239 = vmatpush1.bf16.msra.mxu1 %v16225_v7  ;;  %v16333_v7 = vand.u32 4294901760, %v14400_v18  ;;  %v16340_v18 = vand.u32 4294901760, %v14426_v27  ;;  %v16345_v27 = vand.u32 4294901760, %v14452_v15  ;;  %v16350_v15 = vand.u32 4294901760, %v14468_v32 }
 0x5bf   : > { %11241 = vmatprep.subr.bf16.mxu1 %v16226_v19  ;;  %v16355_v32 = vand.u32 4294901760, %v14489_v4  ;;  %v16362_v4 = vand.u32 4294901760, %v14542_v53  ;;  %v16370_v53 = vld [vmem:[#allocation65_spill] sm:$0xff] }
 0x5c0   : > { %10795 = vmatpush1.bf16.msra.mxu0 %v16327_v21  ;;  %v10802_v19 = vpack.c.bf16 %v16333_v7, %v16332_v54  ;;  %v16334_v21 = vand.u32 4294901760, %v14407_v50  ;;  %v16341_v50 = vand.u32 4294901760, %v14428_v10  ;;  %v16346_v10 = vand.u32 4294901760, %v16183_v41 }
 0x5c1   : > { %10797 = vmatprep.subr.bf16.mxu0 %v16328_v25  ;;  %v16335_v25 = vand.u32 4294901760, %v14409_v58  ;;  %v16351_v41 = vand.u32 4294901760, %v14470_v38  ;;  %v10820_v38 = vpack.c.bf16 %v16356_v51, %v16355_v32  ;;  %v16358_v7 = vand.u32 4294901760, %v14499_v40 }
 0x5c2   : > { %11243 = vmatpush1.bf16.msra.mxu1 %v16227_v48  ;;  %v16338_v48 = vand.u32 4294901760, %v14411_v37  ;;  %v10808_v58 = vpack.c.bf16 %v16341_v50, %v16340_v18  ;;  %v16343_v37 = vand.u32 4294901760, %v14437_v13  ;;  %v16348_v13 = vand.u32 4294901760, %v14461_v42  ;;  %v16386_v50 = vld [vmem:[#allocation91_spill] sm:$0xff] }
 0x5c3   : > { %11245 = vmatprep.subr.bf16.mxu1 %v16228_v20  ;;  %v10804_v24 = vpack.c.bf16 %v16335_v25, %v16334_v21  ;;  %v16347_v21 = vld [vmem:[#allocation45_spill] sm:$0xff]  ;;  %v16354_v42 = vand.u32 4294901760, %v14484_v3  ;;  %v16360_v3 = vand.u32 4294901760, %v14522_v8  ;;  %v16365_v40 = vand.u32 4294901760, %v14569_v62  ;;  %v16369_v8 = vld [vmem:[#allocation62_spill] sm:$0xff] }
 0x5c4   : > { %10799 = vmatpush1.bf16.msra.mxu0 %v16331_v31  ;;  %v10806_v20 = vpack.c.bf16 %v16339_v35, %v16338_v48  ;;  %v10814_v25 = vpack.c.bf16 %v16349_v59, %v16348_v13  ;;  %v16372_v62 = vld [vmem:[#allocation17_spill] sm:$0xff] }
 0x5c5   : > { %10801 = vmatprep.subr.bf16.mxu0 %v10800_v5  ;;  %v16342_v5 = vld [vmem:[#allocation89_spill] sm:$0xff]  ;;  %v10818_v54 = vpack.c.bf16 %v16354_v42, %v16353_v46  ;;  %v10830_v35 = vpack.c.bf16 %v16366_v6, %v16365_v40 }
 0x5c6   : > { %11247 = vmatpush1.bf16.msra.mxu1 %v16336_v61  ;;  %v10810_v61 = vpack.c.bf16 %v16344_v34, %v16343_v37  ;;  %v16389_v34 = vld [vmem:[#allocation26_spill] sm:$0xff]  ;;  %v16392_v13 = vld [vmem:[#allocation29_spill] sm:$0xff] }
 0x5c7   : > { %6319 = vmatmul.mubr.f32.vlgmr.msra.gmra.mrb[18].mxu0 %v16337_v33  ;;  %v16393_v59 = vand.u32 4294901760, %v16392_v13 }
 0x5c8   : > { %10803 = vmatpush1.bf16.msra.mxu0 %v10802_v19  ;;  %6324 = vmatprep.mubr.f32.mxu0 %v15830_v29 }
 0x5c9   : > { %8746 = vmatmul.mubr.f32.vlgmr.msra.gmra.mrb[12].mxu1 %v16302_v39  ;;  %10805 = vmatprep.subr.bf16.mxu0 %v10804_v24  ;;  %v10812_v39 = vpack.c.bf16 %v16346_v10, %v16345_v27  ;;  %v10824_v24 = vpack.c.bf16 %v16360_v3, %v16359_v44  ;;  %v16391_v10 = vld [vmem:[#allocation92_spill] sm:$0xff] }
 0x5ca   : > { %8751 = vmatprep.mubr.f32.mxu1 %v15830_v29 }
 0x5cb   : > { %6328 = vmatmul.mubr.f32.gmra.mrb[20].mxu0 %v16342_v5 }
 0x5cc   : > { %10807 = vmatpush1.bf16.msra.mxu0 %v10806_v20  ;;  %6333 = vmatprep.mubr.f32.mxu0 %v15830_v29 }
 0x5cd   : > { %8753 = vmatmul.mubr.f32.gmra.mrb[14].mxu1 %v16308_v43  ;;  %10809 = vmatprep.subr.bf16.mxu0 %v10808_v58  ;;  %v10816_v43 = vpack.c.bf16 %v16351_v41, %v16350_v15  ;;  %v16387_v58 = vld [vmem:[#allocation25_spill] sm:$0xff]  ;;  %v16394_v15 = vld [vmem:[#allocation30_spill] sm:$0xff] }
 0x5ce   : > { %8758 = vmatprep.mubr.f32.mxu1 %v15830_v29  ;;  %v16388_v5 = vand.u32 4294901760, %v16387_v58  ;;  %v16395_v41 = vand.u32 4294901760, %v16394_v15 }
 0x5cf   : > { %6337 = vmatmul.mubr.f32.gmra.mrb[22].mxu0 %v16347_v21 }
 0x5d0   : > { %10811 = vmatpush1.bf16.msra.mxu0 %v10810_v61  ;;  %6342 = vmatprep.mubr.f32.mxu0 %v15830_v29  ;;  %v6865_v37 = vsub.f32 %v16387_v58, %v16388_v5  ;;  %v16390_v61 = vand.u32 4294901760, %v16389_v34 }
 0x5d1   : > { %8760 = vmatmul.mubr.f32.gmra.mrb[16].mxu1 %v16314_v63  ;;  %10813 = vmatprep.subr.bf16.mxu0 %v10812_v39  ;;  %v16357_v63 = vand.u32 4294901760, %v14496_v30  ;;  %v16364_v30 = vand.u32 4294901760, %v14548_v17  ;;  %v16371_v17 = vld [vmem:[#allocation84_spill] sm:$0xff] }
 0x5d2   : > { %8765 = vmatprep.mubr.f32.mxu1 %v15830_v29  ;;  %v6877_v27 = vsub.f32 %v16389_v34, %v16390_v61 }
 0x5d3   : > { %6346 = vmatmul.mubr.f32.gmra.mrb[24].mxu0 %v16352_v22  ;;  %v10822_v19 = vpack.c.bf16 %v16358_v7, %v16357_v63  ;;  %v10828_v48 = vpack.c.bf16 %v16364_v30, %v16363_v45  ;;  %v16396_v22 = vld [vmem:[#allocation33_spill] sm:$0xff]  ;;  %v6866_v63 = vand.u32 4294901760, %v6865_v37  ;;  %v16418_v37 = vld [vmem:[#allocation48_spill] sm:$0xff] }
 0x5d4   : > { %10815 = vmatpush1.bf16.msra.mxu0 %v10814_v25  ;;  %6512 = vmatprep.mubr.f32.mxu0 %v15830_v29  ;;  %v6883_v25 = vsub.f32 %v16392_v13, %v16393_v59  ;;  %v16397_v46 = vand.u32 4294901760, %v16396_v22  ;;  %v6878_v7 = vand.u32 4294901760, %v6877_v27  ;;  %v16419_v34 = vand.u32 4294901760, %v16418_v37  ;;  %v16422_v59 = vld [vmem:[#allocation50_spill] sm:$0xff] }
 0x5d5   : > { %8767 = vmatmul.mubr.f32.gmra.mrb[18].mxu1 %v16320_v26  ;;  %10817 = vmatprep.subr.bf16.mxu0 %v10816_v43  ;;  %v16361_v26 = vand.u32 4294901760, %v14540_v60  ;;  %v16368_v60 = vld [vmem:[#allocation58_spill] sm:$0xff]  ;;  %v6895_v43 = vsub.f32 %v16394_v15, %v16395_v41  ;;  %v16424_v41 = vld [vmem:[#allocation97_spill] sm:$0xff] }
 0x5d6   : > { %v6889_v42 = vsub.f32 %v16396_v22, %v16397_v46  ;;  %v6884_v30 = vand.u32 4294901760, %v6883_v25  ;;  %v6949_v61 = vsub.f32 %v16418_v37, %v16419_v34  ;;  %v16423_v25 = vand.u32 4294901760, %v16422_v59  ;;  %v16425_v22 = vld [vmem:[#allocation51_spill] sm:$0xff] }
 0x5d7   : > { %v10826_v33 = vpack.c.bf16 %v16362_v4, %v16361_v26  ;;  %v16426_v46 = vand.u32 4294901760, %v16425_v22 }
 0x5d8   : > { %10819 = vmatpush1.bf16.msra.mxu0 %v10818_v54  ;;  %v16398_v54 = vld [vmem:[#allocation34_spill] sm:$0xff]  ;;  %v6890_v40 = vand.u32 4294901760, %v6889_v42  ;;  %v6967_v15 = vsub.f32 %v16422_v59, %v16423_v25 }
 0x5d9   : > { %10821 = vmatprep.subr.bf16.mxu0 %v10820_v38  ;;  %v16399_v32 = vand.u32 4294901760, %v16398_v54  ;;  %v16400_v38 = vld [vmem:[#allocation93_spill] sm:$0xff]  ;;  %v6961_v42 = vsub.f32 %v16425_v22, %v16426_v46 }
 0x5db   : > { %v6901_v51 = vsub.f32 %v16398_v54, %v16399_v32  ;;  %v16427_v54 = vld [vmem:[#allocation52_spill] sm:$0xff] }
 0x5dc   : > { %10823 = vmatpush1.bf16.msra.mxu0 %v10822_v19  ;;  %v16401_v19 = vld [vmem:[#allocation35_spill] sm:$0xff]  ;;  %v16428_v32 = vand.u32 4294901760, %v16427_v54 }
 0x5dd   : > { %10825 = vmatprep.subr.bf16.mxu0 %v10824_v24  ;;  %v16402_v44 = vand.u32 4294901760, %v16401_v19  ;;  %v16403_v24 = vld [vmem:[#allocation36_spill] sm:$0xff]  ;;  %v6902_v6 = vand.u32 4294901760, %v6901_v51 }
 0x5de   : > { %v16404_v26 = vand.u32 4294901760, %v16403_v24  ;;  %v6973_v51 = vsub.f32 %v16427_v54, %v16428_v32 }
 0x5df   : > { %v6907_v3 = vsub.f32 %v16401_v19, %v16402_v44 }
 0x5e0   : > { %10827 = vmatpush1.bf16.msra.mxu0 %v10826_v33  ;;  %v6919_v4 = vsub.f32 %v16403_v24, %v16404_v26  ;;  %v16405_v33 = vld [vmem:[#allocation63_spill] sm:$0xff] }
 0x5e1   : > { %10829 = vmatprep.subr.bf16.mxu0 %v10828_v48  ;;  %v6896_v48 = vand.u32 4294901760, %v6895_v43 }
 0x5e4   : > { %10831 = vmatpush1.bf16.msra.mxu0 %v10830_v35  ;;  %v16406_v35 = vld [vmem:[#allocation41_spill] sm:$0xff] }
 0x5e5   : > { %10833 = vmatprep.subr.bf16.mxu0 %v16299_v2  ;;  %v16374_v2 = vld [vmem:[#allocation21_spill] sm:$0xff] }
 0x5e7   : > { %6514 = vmatmul.mubr.f32.vlgmr.msra.gmra.mrb[18].mxu0 %v16238_v56 }
 0x5e8   : > { %10835 = vmatpush1.bf16.msra.mxu0 %v16301_v55  ;;  %6519 = vmatprep.mubr.f32.mxu0 %v15830_v29  ;;  %v16375_v55 = vld [vmem:[#allocation23_spill] sm:$0xff] }
 0x5e9   : > { %10837 = vmatprep.subr.bf16.mxu0 %v16303_v1  ;;  %v16376_v1 = vld [vmem:[#allocation85_spill] sm:$0xff] }
 0x5eb   : > { %6521 = vmatmul.mubr.f32.gmra.mrb[20].mxu0 %v16248_v57 }
 0x5ec   : > { %10839 = vmatpush1.bf16.msra.mxu0 %v16307_v14  ;;  %6526 = vmatprep.mubr.f32.mxu0 %v15830_v29  ;;  %v16377_v14 = vld [vmem:[#allocation31_spill] sm:$0xff] }
 0x5ed   : > { %10841 = vmatprep.subr.bf16.mxu0 %v16309_v49  ;;  %v16378_v49 = vld [vmem:[#allocation87_spill] sm:$0xff] }
 0x5ef   : > { %6528 = vmatmul.mubr.f32.gmra.mrb[22].mxu0 %v16258_v47 }
 0x5f0   : > { %10843 = vmatpush1.bf16.msra.mxu0 %v16313_v16  ;;  %6533 = vmatprep.mubr.f32.mxu0 %v15830_v29  ;;  %v16379_v16 = vld [vmem:[#allocation88_spill] sm:$0xff] }
 0x5f1   : > { %10845 = vmatprep.subr.bf16.mxu0 %v16315_v23  ;;  %v16380_v23 = vld [vmem:[#allocation38_spill] sm:$0xff] }
 0x5f3   : > { %6535 = vmatmul.mubr.f32.gmra.mrb[24].mxu0 %v16266_v52 }
 0x5f4   : > { %10847 = vmatpush1.bf16.msra.mxu0 %v16319_v11  ;;  %6637 = vmatprep.mubr.f32.mxu0 %v15830_v29  ;;  %v16381_v11 = vld [vmem:[#allocation90_spill] sm:$0xff] }
 0x5f5   : > { %10849 = vmatprep.subr.bf16.mxu0 %v16321_v36  ;;  %v16382_v36 = vld [vmem:[#allocation15_spill] sm:$0xff] }
 0x5f8   : > { %10851 = vmatpush1.bf16.msra.mxu0 %v16323_v28  ;;  %v16383_v28 = vand.u32 4294901760, %v16382_v36 }
 0x5f9   : > { %10853 = vmatprep.subr.bf16.mxu0 %v16367_v12  ;;  %v16407_v12 = vand.u32 4294901760, %v16406_v35 }
 0x5fc   : > { %10855 = vmatpush1.bf16.msra.mxu0 %v16325_v0  ;;  %v6859_v0 = vsub.f32 %v16382_v36, %v16383_v28  ;;  %v16415_v28 = vld [vmem:[#allocation73_spill] sm:$0xff] }
 0x5fd   : > { %10857 = vmatprep.subr.bf16.mxu0 %v16368_v60  ;;  %v6913_v60 = vsub.f32 %v16406_v35, %v16407_v12 }
 0x5fe   : > { %v6860_v39 = vand.u32 4294901760, %v6859_v0  ;;  %v10902_v0 = vpack.c.bf16 %v6902_v6, %v6890_v40  ;;  %v6974_v40 = vand.u32 4294901760, %v6973_v51  ;;  %v16434_v6 = vld [vmem:[#allocation56_spill] sm:$0xff] }
 0x5ff   : > { %v16435_v35 = vand.u32 4294901760, %v16434_v6 }
 0x600   : > { %10859 = vmatpush1.bf16.msra.mxu0 %v16369_v8  ;;  %v16408_v8 = vld [vmem:[#allocation42_spill] sm:$0xff] }
 0x601   : > { %10861 = vmatprep.subr.bf16.mxu0 %v16370_v53  ;;  %v16409_v53 = vand.u32 4294901760, %v16408_v8  ;;  %v6985_v12 = vsub.f32 %v16434_v6, %v16435_v35 }
 0x604   : > { %10863 = vmatpush1.bf16.msra.mxu0 %v16331_v31  ;;  %v16384_v31 = vld [vmem:[#allocation16_spill] sm:$0xff] }
 0x605   : > { %10865 = vmatprep.subr.bf16.mxu0 %v16371_v17  ;;  %v16385_v20 = vand.u32 4294901760, %v16384_v31  ;;  %v6925_v17 = vsub.f32 %v16408_v8, %v16409_v53 }
 0x607   : > { %6639 = vmatmul.mubr.f32.vlgmr.msra.gmra.mrb[18].mxu0 %v16238_v56  ;;  %v6871_v18 = vsub.f32 %v16384_v31, %v16385_v20  ;;  %v6914_v31 = vand.u32 4294901760, %v6913_v60  ;;  %v6926_v20 = vand.u32 4294901760, %v6925_v17  ;;  %v16436_v60 = vld [vmem:[#allocation59_spill] sm:$0xff] }
 0x608   : > { %10867 = vmatpush1.bf16.msra.mxu0 %v16372_v62  ;;  %6644 = vmatprep.mubr.f32.mxu0 %v15830_v29  ;;  %v16410_v62 = vld [vmem:[#allocation64_spill] sm:$0xff]  ;;  %v16437_v8 = vand.u32 4294901760, %v16436_v60 }
 0x609   : > { %10869 = vmatprep.subr.bf16.mxu0 %v16373_v9  ;;  %v6872_v21 = vand.u32 4294901760, %v6871_v18  ;;  %v10898_v9 = vpack.c.bf16 %v6878_v7, %v6866_v63  ;;  %v10906_v43 = vpack.c.bf16 %v6926_v20, %v6914_v31  ;;  %v6950_v63 = vand.u32 4294901760, %v6949_v61  ;;  %v16429_v7 = vld [vmem:[#allocation53_spill] sm:$0xff]  ;;  %v16443_v20 = vld [vmem:[#allocation67_spill] sm:$0xff] }
 0x60a   : > { %v16430_v19 = vand.u32 4294901760, %v16429_v7  ;;  %v6997_v53 = vsub.f32 %v16436_v60, %v16437_v8 }
 0x60b   : > { %6646 = vmatmul.mubr.f32.gmra.mrb[20].mxu0 %v16248_v57  ;;  %v10896_v45 = vpack.c.bf16 %v6872_v21, %v6860_v39  ;;  %v16420_v39 = vld [vmem:[#allocation49_spill] sm:$0xff] }
 0x60c   : > { %10871 = vmatpush1.bf16.msra.mxu0 %v16374_v2  ;;  %6651 = vmatprep.mubr.f32.mxu0 %v15830_v29  ;;  %v6908_v2 = vand.u32 4294901760, %v6907_v3  ;;  %v16421_v21 = vand.u32 4294901760, %v16420_v39  ;;  %v6979_v44 = vsub.f32 %v16429_v7, %v16430_v19  ;;  %v16431_v3 = vld [vmem:[#allocation54_spill] sm:$0xff] }
 0x60d   : > { %10873 = vmatprep.subr.bf16.mxu0 %v16375_v55  ;;  %v6920_v55 = vand.u32 4294901760, %v6919_v4  ;;  %v16432_v24 = vand.u32 4294901760, %v16431_v3 }
 0x60e   : > { %v6955_v13 = vsub.f32 %v16420_v39, %v16421_v21  ;;  %v16449_v21 = vld [vmem:[#allocation70_spill] sm:$0xff] }
 0x60f   : > { %6653 = vmatmul.mubr.f32.gmra.mrb[22].mxu0 %v16258_v47  ;;  %v10904_v18 = vpack.c.bf16 %v6920_v55, %v6908_v2  ;;  %v6991_v26 = vsub.f32 %v16431_v3, %v16432_v24  ;;  %v16438_v55 = vld [vmem:[#allocation60_spill] sm:$0xff] }
 0x610   : > { %10875 = vmatpush1.bf16.msra.mxu0 %v16376_v1  ;;  %6658 = vmatprep.mubr.f32.mxu0 %v15830_v29  ;;  %v10900_v1 = vpack.c.bf16 %v6896_v48, %v6884_v30  ;;  %v16433_v30 = vld [vmem:[#allocation11_spill] sm:$0xff]  ;;  %v6962_v48 = vand.u32 4294901760, %v6961_v42 }
 0x611   : > { %10877 = vmatprep.subr.bf16.mxu0 %v16377_v14  ;;  %v16411_v14 = vld [vmem:[#allocation43_spill] sm:$0xff] }
 0x612   : > { %v16453_v42 = vld [vmem:[#allocation75_spill] sm:$0xff] }
 0x613   : > { %6660 = vmatmul.mubr.f32.gmra.mrb[24].mxu0 %v16266_v52  ;;  %v16454_v54 = vand.u32 4294901760, %v16453_v42 }
 0x614   : > { %10879 = vmatpush1.bf16.msra.mxu0 %v16378_v49  ;;  %6811 = vmatprep.mubr.f32.mxu0 %v15830_v29  ;;  %v16412_v49 = vand.u32 4294901760, %v16411_v14 }
 0x615   : > { %10881 = vmatprep.subr.bf16.mxu0 %v16379_v16  ;;  %v7045_v32 = vsub.f32 %v16453_v42, %v16454_v54 }
 0x616   : > { %v6931_v16 = vsub.f32 %v16411_v14, %v16412_v49  ;;  %v16440_v49 = vld [vmem:[#allocation61_spill] sm:$0xff] }
 0x618   : > { %10883 = vmatpush1.bf16.msra.mxu0 %v16380_v23  ;;  %v16413_v23 = vld [vmem:[#allocation44_spill] sm:$0xff]  ;;  %v6932_v27 = vand.u32 4294901760, %v6931_v16  ;;  %v16441_v16 = vand.u32 4294901760, %v16440_v49 }
 0x619   : > { %10885 = vmatprep.subr.bf16.mxu0 %v16381_v11  ;;  %v16414_v11 = vand.u32 4294901760, %v16413_v23 }
 0x61b   : > { %v6943_v36 = vsub.f32 %v16413_v23, %v16414_v11  ;;  %v7015_v23 = vsub.f32 %v16440_v49, %v16441_v16  ;;  %v16442_v11 = vld [vmem:[#allocation71_spill] sm:$0xff] }
 0x61c   : > { %10887 = vmatpush1.bf16.msra.mxu0 %v16386_v50  ;;  %v16416_v50 = vld [vmem:[#allocation47_spill] sm:$0xff] }
 0x61d   : > { %10889 = vmatprep.subr.bf16.mxu0 %v16391_v10  ;;  %v16417_v58 = vand.u32 4294901760, %v16416_v50  ;;  %v6944_v10 = vand.u32 4294901760, %v6943_v36  ;;  %v10914_v36 = vpack.c.bf16 %v6974_v40, %v6962_v48  ;;  %v7016_v61 = vand.u32 4294901760, %v7015_v23 }
 0x61e   : > { %v5595_v40 = vlaneseq }
 0x61f   : > { %v6937_v5 = vsub.f32 %v16416_v50, %v16417_v58  ;;  %v10908_v4 = vpack.c.bf16 %v6944_v10, %v6932_v27  ;;  %v16445_v58 = vld [vmem:[#allocation68_spill] sm:$0xff]  ;;  %v16447_v27 = vld [vmem:[#allocation69_spill] sm:$0xff] }
 0x620   : > { %10891 = vmatpush1.bf16.msra.mxu0 %v16400_v38  ;;  %v16448_v10 = vand.u32 4294901760, %v16447_v27  ;;  %v5596_v6 = vshrl.u32 %v5595_v40, 7 }
 0x621   : > { %10893 = vmatprep.subr.bf16.mxu0 %v16405_v33  ;;  %v6938_v38 = vand.u32 4294901760, %v6937_v5  ;;  %v6956_v33 = vand.u32 4294901760, %v6955_v13  ;;  %v16446_v5 = vand.u32 4294901760, %v16445_v58  ;;  %v16450_v13 = vand.u32 4294901760, %v16449_v21 }
 0x622   : > { %v7027_v39 = vsub.f32 %v16447_v27, %v16448_v10 }
 0x623   : > { %v10910_v17 = vpack.c.bf16 %v6950_v63, %v6938_v38  ;;  %v7021_v37 = vsub.f32 %v16445_v58, %v16446_v5  ;;  %v7039_v59 = vsub.f32 %v16449_v21, %v16450_v13 }
 0x624   : > { %10895 = vmatpush1.bf16.msra.mxu0 %v16410_v62  ;;  %v6980_v62 = vand.u32 4294901760, %v6979_v44  ;;  %v7028_v38 = vand.u32 4294901760, %v7027_v39  ;;  %v7046_v44 = vand.u32 4294901760, %v7045_v32 }
 0x625   : > { %10897 = vmatprep.subr.bf16.mxu0 %v10896_v45  ;;  %v6968_v45 = vand.u32 4294901760, %v6967_v15  ;;  %v7040_v63 = vand.u32 4294901760, %v7039_v59 }
 0x627   : > { %6817 = vmatmul.mubr.f32.vlgmr.msra.gmra.mrb[26].mxu0 %v16415_v28  ;;  %v10912_v2 = vpack.c.bf16 %v6968_v45, %v6956_v33  ;;  %v6986_v28 = vand.u32 4294901760, %v6985_v12  ;;  %v10924_v3 = vpack.c.bf16 %v7040_v63, %v7028_v38 }
 0x628   : > { %10899 = vmatpush1.bf16.msra.mxu0 %v10898_v9  ;;  %6822 = vmatprep.mubr.f32.mxu0 %v15830_v29  ;;  %v6992_v9 = vand.u32 4294901760, %v6991_v26 }
 0x629   : > { %10901 = vmatprep.subr.bf16.mxu0 %v10900_v1  ;;  %v16439_v1 = vand.u32 4294901760, %v16438_v55 }
 0x62a   : > { %v10916_v31 = vpack.c.bf16 %v6992_v9, %v6980_v62 }
 0x62b   : > { %6828 = vmatmul.mubr.f32.gmra.mrb[28].mxu0 %v16424_v41  ;;  %v7003_v14 = vsub.f32 %v16438_v55, %v16439_v1  ;;  %v7022_v41 = vand.u32 4294901760, %v7021_v37 }
 0x62c   : > { %10903 = vmatpush1.bf16.msra.mxu0 %v10902_v0  ;;  %6833 = vmatprep.mubr.f32.mxu0 %v15830_v29  ;;  %v6998_v0 = vand.u32 4294901760, %v6997_v53 }
 0x62d   : > { %10905 = vmatprep.subr.bf16.mxu0 %v10904_v18  ;;  %v16444_v18 = vand.u32 4294901760, %v16443_v20  ;;  %v7004_v34 = vand.u32 4294901760, %v7003_v14 }
 0x62e   : > { %v10918_v25 = vpack.c.bf16 %v6998_v0, %v6986_v28 }
 0x62f   : > { %6839 = vmatmul.mubr.f32.gmra.mrb[30].mxu0 %v16433_v30  ;;  %v7009_v50 = vsub.f32 %v16443_v20, %v16444_v18  ;;  %v10920_v51 = vpack.c.bf16 %v7016_v61, %v7004_v34 }
 0x630   : > { %10907 = vmatpush1.bf16.msra.mxu0 %v10906_v43  ;;  %6844 = vmatprep.mubr.f32.mxu0 %v15830_v29  ;;  %v16451_v43 = vld [vmem:[#allocation74_spill] sm:$0xff] }
 0x631   : > { %10909 = vmatprep.subr.bf16.mxu0 %v10908_v4  ;;  %v7010_v15 = vand.u32 4294901760, %v7009_v50  ;;  %v16452_v22 = vand.u32 4294901760, %v16451_v43 }
 0x633   : > { %6850 = vmatmul.mubr.f32.gmra.mrb[32].mxu0 %v16442_v11  ;;  %v7033_v46 = vsub.f32 %v16451_v43, %v16452_v22  ;;  %v10922_v7 = vpack.c.bf16 %v7022_v41, %v7010_v15 }
 0x634   : > { %10911 = vmatpush1.bf16.msra.mxu0 %v10910_v17  ;;  %7080 = vmatprep.mubr.f32.mxu0 %v15830_v29 }
 0x635   : > { %10913 = vmatprep.subr.bf16.mxu0 %v10912_v2  ;;  %v7034_v19 = vand.u32 4294901760, %v7033_v46 }
 0x637   : > { %v10926_v24 = vpack.c.bf16 %v7046_v44, %v7034_v19 }
 0x638   : > { %10915 = vmatpush1.bf16.msra.mxu0 %v10914_v36 }
 0x639   : > { %10917 = vmatprep.subr.bf16.mxu0 %v10916_v31 }
 0x63c   : > { %10919 = vmatpush1.bf16.msra.mxu0 %v10918_v25 }
 0x63d   : > { %10921 = vmatprep.subr.bf16.mxu0 %v10920_v51 }
 0x640   : > { %10923 = vmatpush1.bf16.msra.mxu0 %v10922_v7 }
 0x641   : > { %10925 = vmatprep.subr.bf16.mxu0 %v10924_v3 }
 0x644   : > { %10927 = vmatpush1.bf16.msra.mxu0 %v10926_v24 }
 0x647   : > { %7082 = vmatmul.mubr.f32.vlgmr.msra.gmra.mrb[26].mxu0 %v16238_v56 }
 0x648   : > { %7087 = vmatprep.mubr.f32.mxu0 %v15830_v29 }
 0x64b   : > { %7089 = vmatmul.mubr.f32.gmra.mrb[28].mxu0 %v16248_v57 }
 0x64c   : > { %7094 = vmatprep.mubr.f32.mxu0 %v15830_v29 }
 0x64f   : > { %7096 = vmatmul.mubr.f32.gmra.mrb[30].mxu0 %v16258_v47  ;;  %v5597_v47 = vsub.s32 0, %v5596_v6 }
 0x650   : > { %7101 = vmatprep.mubr.f32.mxu0 %v15830_v29  ;;  %v4559_v29 = vld [vmem:[%s15203_s6] sm:$0x3] }
 0x651   : > { %v15148_v35 = vrot.slane %v4559_v29, %v5597_v47 }
 0x653   : > { %7103 = vmatmul.mubr.f32.gmra.mrb[32].mxu0 %v16266_v52  ;;  %v5601_v52 = vsub.s32 1, %v5596_v6 }
 0x655   : > { %v15150_v12 = vrot.slane %v4559_v29, %v5601_v52 }
 0x69c   : > { %v8747_v26 = vpop.f32.mrb[12].mxu1 }
 0x69d   : > { %v8749_v4 = vpop.f32.mrb[13].mxu1 }
 0x6a0   : > { %v8754_v33 = vpop.f32.mrb[14].mxu1 }
 0x6a1   : > { %v8756_v45 = vpop.f32.mrb[15].mxu1 }
 0x6a4   : > { %v15137_v30 = vpop.f32.mrb[16].mxu1 }
 0x6a5   : > { %v15139_v56 = vpop.f32.mrb[17].mxu1 }
 0x6a8   : > { %v15141_v48 = vpop.f32.mrb[18].mxu1 }
 0x6a9   : > { %v15143_v57 = vpop.f32.mrb[19].mxu1 }
 0x6da   : > { %v6640_v60 = vpop.f32.mrb[18].mxu0 }
 0x6db   : > { %v11257_v8 = vadd.f32 %v6640_v60, %v15148_v35  ;;  %v6642_v53 = vpop.f32.mrb[19].mxu0 }
 0x6dc   : > { %v11258_v17 = vadd.f32 %v6642_v53, %v15150_v12 }
 0x6dd   : > { %v6674_v62 = vmax.f32 %v11257_v8, 0.0 }
 0x6de   : > { %v6675_v9 = vmax.f32 %v11258_v17, 0.0  ;;  %v6647_v2 = vpop.f32.mrb[20].mxu0 }
 0x6df   : > { %8789 = vst [vmem:[%s15157_s15] sm:$0xff] %v6674_v62  ;;  %v11259_v55 = vadd.f32 %v6647_v2, %v15148_v35  ;;  %v6649_v1 = vpop.f32.mrb[21].mxu0 }
 0x6e0   : > { %8790 = vst [vmem:[%s15157_s15 + $0x8] sm:$0xff] %v6675_v9  ;;  %v11260_v14 = vadd.f32 %v6649_v1, %v15150_v12 }
 0x6e1   : > { %v6676_v49 = vmax.f32 %v11259_v55, 0.0 }
 0x6e2   : > { %v6677_v16 = vmax.f32 %v11260_v14, 0.0  ;;  %v6654_v23 = vpop.f32.mrb[22].mxu0 }
 0x6e3   : > { %8791 = vst [vmem:[%s15157_s15 + $0x10] sm:$0xff] %v6676_v49  ;;  %v11261_v11 = vadd.f32 %v6654_v23, %v15148_v35  ;;  %v6656_v36 = vpop.f32.mrb[23].mxu0 }
 0x6e4   : > { %8792 = vst [vmem:[%s15157_s15 + $0x18] sm:$0xff] %v6677_v16  ;;  %v11262_v28 = vadd.f32 %v6656_v36, %v15150_v12 }
 0x6e5   : > { %v6678_v0 = vmax.f32 %v11261_v11, 0.0 }
 0x6e6   : > { %v6679_v31 = vmax.f32 %v11262_v28, 0.0  ;;  %v6661_v20 = vpop.f32.mrb[24].mxu0 }
 0x6e7   : > { %8793 = vst [vmem:[%s15157_s15 + $0x20] sm:$0xff] %v6678_v0  ;;  %v11263_v18 = vadd.f32 %v6661_v20, %v15148_v35  ;;  %v6663_v50 = vpop.f32.mrb[25].mxu0 }
 0x6e8   : > { %8794 = vst [vmem:[%s15157_s15 + $0x28] sm:$0xff] %v6679_v31  ;;  %v11264_v58 = vadd.f32 %v6663_v50, %v15150_v12 }
 0x6e9   : > { %v6680_v5 = vmax.f32 %v11263_v18, 0.0 }
 0x6ea   : > { %v6681_v37 = vmax.f32 %v11264_v58, 0.0 }
 0x6eb   : > { %8795 = vst [vmem:[%s15157_s15 + $0x30] sm:$0xff] %v6680_v5 }
 0x6ec   : > { %8796 = vst [vmem:[%s15157_s15 + $0x38] sm:$0xff] %v6681_v37 }
 0x71a   : > { %v7083_v34 = vpop.f32.mrb[26].mxu0 }
 0x71b   : > { %v11265_v61 = vadd.f32 %v7083_v34, %v15148_v35  ;;  %v7085_v27 = vpop.f32.mrb[27].mxu0 }
 0x71c   : > { %v11267_v10 = vadd.f32 %v7085_v27, %v15150_v12 }
 0x71d   : > { %v11266_v39 = vadd.f32 %v11265_v61, %v8747_v26 }
 0x71e   : > { %v11268_v21 = vadd.f32 %v11267_v10, %v8749_v4  ;;  %v7090_v13 = vpop.f32.mrb[28].mxu0 }
 0x71f   : > { %v8781_v59 = vmax.f32 %v11266_v39, 0.0  ;;  %v11269_v25 = vadd.f32 %v7090_v13, %v15148_v35  ;;  %v7092_v15 = vpop.f32.mrb[29].mxu0 }
 0x720   : > { %v8782_v41 = vmax.f32 %v11268_v21, 0.0  ;;  %v11271_v43 = vadd.f32 %v7092_v15, %v15150_v12 }
 0x721   : > { %8914 = vst [vmem:[%s15157_s15 + $0x40] sm:$0xff] %v8781_v59  ;;  %v11270_v22 = vadd.f32 %v11269_v25, %v8754_v33 }
 0x722   : > { %8915 = vst [vmem:[%s15157_s15 + $0x48] sm:$0xff] %v8782_v41  ;;  %v11272_v46 = vadd.f32 %v11271_v43, %v8756_v45  ;;  %v7097_v42 = vpop.f32.mrb[30].mxu0 }
 0x723   : > { %v8783_v54 = vmax.f32 %v11270_v22, 0.0  ;;  %v11273_v32 = vadd.f32 %v7097_v42, %v15148_v35  ;;  %v7099_v51 = vpop.f32.mrb[31].mxu0 }
 0x724   : > { %v8784_v38 = vmax.f32 %v11272_v46, 0.0  ;;  %v11275_v63 = vadd.f32 %v7099_v51, %v15150_v12 }
 0x725   : > { %8916 = vst [vmem:[%s15157_s15 + $0x50] sm:$0xff] %v8783_v54  ;;  %v11274_v7 = vadd.f32 %v11273_v32, %v15137_v30 }
 0x726   : > { %8917 = vst [vmem:[%s15157_s15 + $0x58] sm:$0xff] %v8784_v38  ;;  %v11276_v19 = vadd.f32 %v11275_v63, %v15139_v56  ;;  %v7104_v44 = vpop.f32.mrb[32].mxu0 }
 0x727   : > { %v8785_v3 = vmax.f32 %v11274_v7, 0.0  ;;  %v11277_v24 = vadd.f32 %v7104_v44, %v15148_v35  ;;  %v7106_v26 = vpop.f32.mrb[33].mxu0 }
 0x728   : > { %v8786_v4 = vmax.f32 %v11276_v19, 0.0  ;;  %v11279_v33 = vadd.f32 %v7106_v26, %v15150_v12 }
 0x729   : > { %8918 = vst [vmem:[%s15157_s15 + $0x60] sm:$0xff] %v8785_v3  ;;  %v11278_v45 = vadd.f32 %v11277_v24, %v15141_v48 }
 0x72a   : > { %8919 = vst [vmem:[%s15157_s15 + $0x68] sm:$0xff] %v8786_v4  ;;  %v11280_v40 = vadd.f32 %v11279_v33, %v15143_v57 }
 0x72b   : > { %v8787_v6 = vmax.f32 %v11278_v45, 0.0 }
 0x72c   : > { %v8788_v30 = vmax.f32 %v11280_v40, 0.0 }
 0x72d   : > { %8920 = vst [vmem:[%s15157_s15 + $0x70] sm:$0xff] %v8787_v6 }
 0x72e   : > { %8921 = vst [vmem:[%s15157_s15 + $0x78] sm:$0xff] %v8788_v30 }
 0x72f PF: > { %s18_s24 = sadd.s32 1, %s11685_s24  }
 0x730   : > { %p15_p3 = scmp.ge.s32.totalorder %s18_s24, 4  }
 0x732   :  { %17 = sbr.rel (!%p15_p3) target bundleno = 1 (0x1), region = 91 }
 0x739   :  { %8827 = vsyncpa [#allocation3], 1 }
 0x73a   :  { %8829 = vsyncpa [#allocation3 + $0x1], 1 }

</bundles_post_ra>
